<compile_context>
chip_gen: v6e
topology: v6e:2x2x1
jax: 0.10.0
libtpu: 0.0.40
codegen_flags: <defaults>
</compile_context>

<pallas_src>
import functools

import jax
import jax.numpy as jnp
import numpy as np
from jax import lax
from jax.experimental import pallas as pl
from jax.experimental.pallas import tpu as pltpu

LANE = 128


def _round_up(v, m):
    return (v + m - 1) // m * m


def _pick_row_tile(H, target):
    """Largest row tile <= target that divides H (fallback: whole image)."""
    if H <= target:
        return H
    for th in range(target, 0, -1):
        if H % th == 0:
            return th if th >= 8 else H
    return H


def _dwconv3x3(y, w_ref, W):
    """Depthwise 3x3 conv, stride 1, zero ("SAME") padding at the tile edges.

    y:     (S, W, C)  rows x cols x channels (C on lanes), float32
    w_ref: (9, 1, C)  per-channel taps, tap index = ki*3 + kj
    """
    S, _, C = y.shape
    HW = S * W
    yf = y.reshape(HW, C)
    col = lax.broadcasted_iota(jnp.int32, (1, W, 1), 1)        # (1, W, 1)
    zrow = jnp.zeros((1, W, C), y.dtype)

    # One shifted plane per dx (shared by the three dy taps).  dy shifts are
    # then free leading-dim slices of the row-padded planes.
    planes = []
    for dx in (-1, 0, 1):
        if dx == 0:
            yd = y
        else:
            rolled = pltpu.roll(yf, (-dx) % HW, axis=0).reshape(S, W, C)
            valid = (col + dx >= 0) & (col + dx < W)           # W-border zeros
            yd = jnp.where(valid, rolled, 0.0)
        planes.append(jnp.concatenate([zrow, yd, zrow], axis=0))   # (S+2, W, C)

    taps = [w_ref[k] for k in range(9)]                        # (1, C) each, hoisted
    acc = y * taps[4]                                          # center tap (0, 0)
    for ki in range(3):          # dy = ki - 1
        for kj in range(3):      # dx = kj - 1
            if ki == 1 and kj == 1:
                continue
            acc = acc + planes[kj][ki:ki + S] * taps[ki * 3 + kj]
    return acc


def _iel_kernel(x_ref, w_in_ref, w_dwA_ref, w_dwB_ref, w_out_ref, o_ref,
                *, H, W, TH, HFp):
    S = TH + 4                                   # TH kept rows + 2-row halo each side
    t = pl.program_id(1)

    x = x_ref[0, 0]                              # (S, W, Cp), mxu dtype
    Cp = x.shape[-1]

    # project_in: one fused 1x1 matmul producing both chunks (MXU, f32 acc).
    y = jnp.dot(x.reshape(S * W, Cp), w_in_ref[...],
                preferred_element_type=jnp.float32).reshape(S, W, 2 * HFp)

    # first depthwise 3x3 over all 2*HFp channels at once.
    xd = _dwconv3x3(y, w_dwA_ref, W)

    # Rows outside the image act as the zero "SAME" padding of the second
    # depthwise stage (halo rows of interior tiles stay as real data).
    g = t * TH - 2 + lax.broadcasted_iota(jnp.int32, (S, W, 1), 0)
    xd = jnp.where((g >= 0) & (g < H), xd, 0.0)

    # dwconv1 / dwconv2 merged into one channel-concatenated depthwise pass.
    xx = jnp.tanh(_dwconv3x3(xd, w_dwB_ref, W)) + xd

    z = xx[:, :, :HFp] * xx[:, :, HFp:]          # x1 * x2 (lane-aligned split)

    # project_out on the TH kept rows only (drop the halo rows).
    zk = z[2:TH + 2].reshape(TH * W, HFp).astype(w_out_ref.dtype)
    out = jnp.dot(zk, w_out_ref[...], preferred_element_type=jnp.float32)
    o_ref[0] = out.reshape(TH, W, -1).astype(o_ref.dtype)


def iel_forward(x_nchw, params, *, row_tile=32, mxu_dtype=jnp.bfloat16):
    """x_nchw: (N, C, H, W) float32. Returns (N, C, H, W) float32."""
    w_in, w_dw, w_dw1, w_dw2, w_out = params
    N, C, H, W = x_nchw.shape
    hidden = w_dw1.shape[-1]

    Cp = _round_up(C, LANE)
    HFp = _round_up(hidden, LANE)
    TH = _pick_row_tile(H, row_tile)
    T = H // TH
    S = TH + 4

    # ---- plain-JAX glue: layout, lane padding, halo'd row slabs ----
    x = jnp.transpose(x_nchw, (0, 2, 3, 1))                         # (N, H, W, C)
    x = jnp.pad(x, ((0, 0), (2, 2), (0, 0), (0, Cp - C)))           # (N, H+4, W, Cp)
    rows = (jnp.arange(T) * TH)[:, None] + jnp.arange(S)[None, :]   # (T, S) overlapping
    x_slabs = x[:, rows].astype(mxu_dtype)                          # (N, T, S, W, Cp)

    # pad weights into lane-aligned, chunk-aligned layouts (padded lanes are 0,
    # so padded channels stay exactly 0 through the whole chain).
    f32 = jnp.float32
    w_in_p = jnp.zeros((Cp, 2 * HFp), f32)
    w_in_p = w_in_p.at[:C, :hidden].set(w_in[:, :hidden])
    w_in_p = w_in_p.at[:C, HFp:HFp + hidden].set(w_in[:, hidden:])
    w_dwA = jnp.zeros((9, 1, 2 * HFp), f32)
    w_dwA = w_dwA.at[:, :, :hidden].set(w_dw[:, :, :hidden])
    w_dwA = w_dwA.at[:, :, HFp:HFp + hidden].set(w_dw[:, :, hidden:])
    w_dwB = jnp.zeros((9, 1, 2 * HFp), f32)          # dwconv1 || dwconv2 merged
    w_dwB = w_dwB.at[:, :, :hidden].set(w_dw1)
    w_dwB = w_dwB.at[:, :, HFp:HFp + hidden].set(w_dw2)
    w_out_p = jnp.zeros((HFp, Cp), f32)
    w_out_p = w_out_p.at[:hidden, :C].set(w_out)
    w_in_p = w_in_p.astype(mxu_dtype)
    w_out_p = w_out_p.astype(mxu_dtype)

    kernel = functools.partial(_iel_kernel, H=H, W=W, TH=TH, HFp=HFp)
    full = lambda a: pl.BlockSpec(a.shape, lambda n, t: (0,) * a.ndim)

    out = pl.pallas_call(
        kernel,
        out_shape=jax.ShapeDtypeStruct((N, H, W, Cp), x_nchw.dtype),
        grid_spec=pltpu.PrefetchScalarGridSpec(
            num_scalar_prefetch=0,
            grid=(N, T),
            in_specs=[
                pl.BlockSpec((1, 1, S, W, Cp), lambda n, t: (n, t, 0, 0, 0)),
                full(w_in_p), full(w_dwA), full(w_dwB), full(w_out_p),
            ],
            out_specs=pl.BlockSpec((1, TH, W, Cp), lambda n, t: (n, t, 0, 0)),
        ),
        compiler_params=pltpu.CompilerParams(
            dimension_semantics=("parallel", "parallel"),
            vmem_limit_bytes=64 * 1024 * 1024),
    )(x_slabs, w_in_p, w_dwA, w_dwB, w_out_p)

    return jnp.transpose(out[..., :C], (0, 3, 1, 2))


def init_params(key, dim, ffn_expansion_factor=2.66):
    """Deterministic synthetic parameters (bias=False, as in the module).

    Conv2d 1x1 weights are stored pre-transposed as (C_in, C_out) matrices;
    depthwise 3x3 weights are stored as (9, 1, C) with tap index ki*3+kj.
    """
    hidden = int(dim * ffn_expansion_factor)
    k = jax.random.split(key, 5)
    w_in  = jax.random.normal(k[0], (dim, 2 * hidden), jnp.float32) * 0.1
    w_dw  = jax.random.normal(k[1], (9, 1, 2 * hidden), jnp.float32) * 0.1
    w_dw1 = jax.random.normal(k[2], (9, 1, hidden), jnp.float32) * 0.1
    w_dw2 = jax.random.normal(k[3], (9, 1, hidden), jnp.float32) * 0.1
    w_out = jax.random.normal(k[4], (hidden, dim), jnp.float32) * 0.1
    return (w_in, w_dw, w_dw1, w_dw2, w_out)


def iel_reference(x_nchw, params):
    """Pure-JAX reference (matches the PyTorch forward)."""
    w_in, w_dw, w_dw1, w_dw2, w_out = params
    hidden = w_dw1.shape[-1]
    x = jnp.transpose(x_nchw, (0, 2, 3, 1))          # NHWC

    def dw(v, w9):
        Cc = v.shape[-1]
        rhs = w9.reshape(3, 3, 1, Cc)                # HWIO depthwise
        return lax.conv_general_dilated(
            v, rhs, window_strides=(1, 1), padding="SAME",
            dimension_numbers=("NHWC", "HWIO", "NHWC"),
            feature_group_count=Cc)

    y = jnp.einsum("nhwc,cd->nhwd", x, w_in)
    yd = dw(y, w_dw)
    x1, x2 = yd[..., :hidden], yd[..., hidden:]
    x1 = jnp.tanh(dw(x1, w_dw1)) + x1
    x2 = jnp.tanh(dw(x2, w_dw2)) + x2
    z = x1 * x2
    out = jnp.einsum("nhwc,cd->nhwd", z, w_out)
    return jnp.transpose(out, (0, 3, 1, 2))


if __name__ == "__main__":
    key = jax.random.PRNGKey(0)
    kx, kp = jax.random.split(key)

    N, dim, H, W = 2, 4, 16, 16                      # small, module-consistent shapes
    x = jax.random.normal(kx, (N, dim, H, W), jnp.float32)
    params = init_params(kp, dim)                    # hidden_features = int(4*2.66) = 10

    ref = iel_reference(x, params)

    # Exact path: f32 MXU operands, spatially tiled (two 8-row tiles + halo).
    out_f32 = jax.block_until_ready(
        iel_forward(x, params, row_tile=8, mxu_dtype=jnp.float32))
    np.testing.assert_allclose(np.asarray(out_f32), np.asarray(ref),
                               rtol=1e-4, atol=1e-4)

    # Fast path: bf16 MXU operands (default), single row tile.
    out_bf16 = jax.block_until_ready(iel_forward(x, params))
    np.testing.assert_allclose(np.asarray(out_bf16), np.asarray(ref),
                               rtol=5e-2, atol=1e-3)

    print("KERNEL_OK")
</pallas_src>

<mosaic_0001>
module attributes {stable_mosaic.version = 11 : i64} {
  func.func @_iel_kernel(%arg0: i32, %arg1: i32, %arg2: memref<1x1x12x16x128xf32, #tpu.memory_space<vmem>>, %arg3: memref<128x256xf32, #tpu.memory_space<vmem>>, %arg4: memref<9x1x256xf32, #tpu.memory_space<vmem>>, %arg5: memref<9x1x256xf32, #tpu.memory_space<vmem>>, %arg6: memref<128x128xf32, #tpu.memory_space<vmem>>, %arg7: memref<1x8x16x128xf32, #tpu.memory_space<vmem>>) attributes {dimension_semantics = [#tpu.dimension_semantics<parallel>, #tpu.dimension_semantics<parallel>], iteration_bounds = array<i64: 2, 2>, scalar_prefetch = 0 : i64, scratch_operands = 0 : i64, tpu.core_type = #tpu.core_type<tc>, window_params = [{transform_indices = @transform_0, window_bounds = array<i64: 1, 1, 12, 16, 128>}, {pipeline_mode = #tpu.pipeline_mode<synchronous>, transform_indices = @transform_1, window_bounds = array<i64: 128, 256>}, {pipeline_mode = #tpu.pipeline_mode<synchronous>, transform_indices = @transform_2, window_bounds = array<i64: 9, 1, 256>}, {pipeline_mode = #tpu.pipeline_mode<synchronous>, transform_indices = @transform_3, window_bounds = array<i64: 9, 1, 256>}, {pipeline_mode = #tpu.pipeline_mode<synchronous>, transform_indices = @transform_4, window_bounds = array<i64: 128, 128>}, {transform_indices = @transform_5, window_bounds = array<i64: 1, 8, 16, 128>}]} {
    %c0 = arith.constant 0 : index
    %c0_0 = arith.constant 0 : index
    %c0_1 = arith.constant 0 : index
    %c0_2 = arith.constant 0 : index
    %c0_3 = arith.constant 0 : index
    %0 = vector.load %arg2[%c0, %c0_0, %c0_1, %c0_2, %c0_3] : memref<1x1x12x16x128xf32, #tpu.memory_space<vmem>>, vector<1x1x12x16x128xf32>
    %1 = vector.shape_cast %0 : vector<1x1x12x16x128xf32> to vector<12x16x128xf32>
    %2 = vector.shape_cast %1 : vector<12x16x128xf32> to vector<192x128xf32>
    %c0_4 = arith.constant 0 : index
    %c0_5 = arith.constant 0 : index
    %3 = vector.load %arg3[%c0_4, %c0_5] : memref<128x256xf32, #tpu.memory_space<vmem>>, vector<128x256xf32>
    %cst = arith.constant dense<0.000000e+00> : vector<192x256xf32>
    %4 = tpu.matmul %2, %3, %cst {dimension_numbers = #tpu.dot_dimension_numbers<[1], [0], [0], [1], [0, 0, 1, 1], [], []>} : vector<192x128xf32>, vector<128x256xf32>, vector<192x256xf32> -> vector<192x256xf32>
    %5 = vector.shape_cast %4 : vector<192x256xf32> to vector<12x16x256xf32>
    %6 = vector.shape_cast %5 : vector<12x16x256xf32> to vector<192x256xf32>
    %7 = tpu.iota {dimensions = array<i32: 1>} : vector<1x16x1xi32>
    %cst_6 = arith.constant 0.000000e+00 : f32
    %8 = vector.broadcast %cst_6 : f32 to vector<1x16x256xf32>
    %c1_i32 = arith.constant 1 : i32
    %9 = tpu.dynamic_rotate %6 by %c1_i32 dim 0 : vector<192x256xf32>, i32 -> vector<192x256xf32>
    %10 = vector.shape_cast %9 : vector<192x256xf32> to vector<12x16x256xf32>
    %c-1_i32 = arith.constant -1 : i32
    %11 = vector.broadcast %c-1_i32 : i32 to vector<1x16x1xi32>
    %12 = arith.addi %7, %11 : vector<1x16x1xi32>
    %c0_i32 = arith.constant 0 : i32
    %13 = vector.broadcast %c0_i32 : i32 to vector<1x16x1xi32>
    %14 = arith.cmpi sge, %12, %13 : vector<1x16x1xi32>
    %c-1_i32_7 = arith.constant -1 : i32
    %15 = vector.broadcast %c-1_i32_7 : i32 to vector<1x16x1xi32>
    %16 = arith.addi %7, %15 : vector<1x16x1xi32>
    %c16_i32 = arith.constant 16 : i32
    %17 = vector.broadcast %c16_i32 : i32 to vector<1x16x1xi32>
    %18 = arith.cmpi slt, %16, %17 : vector<1x16x1xi32>
    %19 = arith.andi %14, %18 : vector<1x16x1xi1>
    %cst_8 = arith.constant 0.000000e+00 : f32
    %20 = vector.shape_cast %19 : vector<1x16x1xi1> to vector<1x16x1xi1>
    %21 = vector.broadcast %20 : vector<1x16x1xi1> to vector<12x16x256xi1>
    %22 = vector.broadcast %cst_8 : f32 to vector<12x16x256xf32>
    %23 = arith.select %21, %10, %22 : vector<12x16x256xi1>, vector<12x16x256xf32>
    %24 = tpu.concatenate %8, %23, %8 in 0 : vector<1x16x256xf32>, vector<12x16x256xf32>, vector<1x16x256xf32> -> vector<14x16x256xf32>
    %25 = tpu.concatenate %8, %5, %8 in 0 : vector<1x16x256xf32>, vector<12x16x256xf32>, vector<1x16x256xf32> -> vector<14x16x256xf32>
    %c191_i32 = arith.constant 191 : i32
    %26 = tpu.dynamic_rotate %6 by %c191_i32 dim 0 : vector<192x256xf32>, i32 -> vector<192x256xf32>
    %27 = vector.shape_cast %26 : vector<192x256xf32> to vector<12x16x256xf32>
    %c1_i32_9 = arith.constant 1 : i32
    %28 = vector.broadcast %c1_i32_9 : i32 to vector<1x16x1xi32>
    %29 = arith.addi %7, %28 : vector<1x16x1xi32>
    %c0_i32_10 = arith.constant 0 : i32
    %30 = vector.broadcast %c0_i32_10 : i32 to vector<1x16x1xi32>
    %31 = arith.cmpi sge, %29, %30 : vector<1x16x1xi32>
    %c1_i32_11 = arith.constant 1 : i32
    %32 = vector.broadcast %c1_i32_11 : i32 to vector<1x16x1xi32>
    %33 = arith.addi %7, %32 : vector<1x16x1xi32>
    %c16_i32_12 = arith.constant 16 : i32
    %34 = vector.broadcast %c16_i32_12 : i32 to vector<1x16x1xi32>
    %35 = arith.cmpi slt, %33, %34 : vector<1x16x1xi32>
    %36 = arith.andi %31, %35 : vector<1x16x1xi1>
    %cst_13 = arith.constant 0.000000e+00 : f32
    %37 = vector.shape_cast %36 : vector<1x16x1xi1> to vector<1x16x1xi1>
    %38 = vector.broadcast %37 : vector<1x16x1xi1> to vector<12x16x256xi1>
    %39 = vector.broadcast %cst_13 : f32 to vector<12x16x256xf32>
    %40 = arith.select %38, %27, %39 : vector<12x16x256xi1>, vector<12x16x256xf32>
    %41 = tpu.concatenate %8, %40, %8 in 0 : vector<1x16x256xf32>, vector<12x16x256xf32>, vector<1x16x256xf32> -> vector<14x16x256xf32>
    %c0_14 = arith.constant 0 : index
    %c0_15 = arith.constant 0 : index
    %c0_16 = arith.constant 0 : index
    %42 = vector.load %arg4[%c0_14, %c0_15, %c0_16] : memref<9x1x256xf32, #tpu.memory_space<vmem>>, vector<1x1x256xf32>
    %43 = vector.shape_cast %42 : vector<1x1x256xf32> to vector<1x256xf32>
    %c1 = arith.constant 1 : index
    %c0_17 = arith.constant 0 : index
    %c0_18 = arith.constant 0 : index
    %44 = vector.load %arg4[%c1, %c0_17, %c0_18] : memref<9x1x256xf32, #tpu.memory_space<vmem>>, vector<1x1x256xf32>
    %45 = vector.shape_cast %44 : vector<1x1x256xf32> to vector<1x256xf32>
    %c2 = arith.constant 2 : index
    %c0_19 = arith.constant 0 : index
    %c0_20 = arith.constant 0 : index
    %46 = vector.load %arg4[%c2, %c0_19, %c0_20] : memref<9x1x256xf32, #tpu.memory_space<vmem>>, vector<1x1x256xf32>
    %47 = vector.shape_cast %46 : vector<1x1x256xf32> to vector<1x256xf32>
    %c3 = arith.constant 3 : index
    %c0_21 = arith.constant 0 : index
    %c0_22 = arith.constant 0 : index
    %48 = vector.load %arg4[%c3, %c0_21, %c0_22] : memref<9x1x256xf32, #tpu.memory_space<vmem>>, vector<1x1x256xf32>
    %49 = vector.shape_cast %48 : vector<1x1x256xf32> to vector<1x256xf32>
    %c4 = arith.constant 4 : index
    %c0_23 = arith.constant 0 : index
    %c0_24 = arith.constant 0 : index
    %50 = vector.load %arg4[%c4, %c0_23, %c0_24] : memref<9x1x256xf32, #tpu.memory_space<vmem>>, vector<1x1x256xf32>
    %51 = vector.shape_cast %50 : vector<1x1x256xf32> to vector<1x256xf32>
    %c5 = arith.constant 5 : index
    %c0_25 = arith.constant 0 : index
    %c0_26 = arith.constant 0 : index
    %52 = vector.load %arg4[%c5, %c0_25, %c0_26] : memref<9x1x256xf32, #tpu.memory_space<vmem>>, vector<1x1x256xf32>
    %53 = vector.shape_cast %52 : vector<1x1x256xf32> to vector<1x256xf32>
    %c6 = arith.constant 6 : index
    %c0_27 = arith.constant 0 : index
    %c0_28 = arith.constant 0 : index
    %54 = vector.load %arg4[%c6, %c0_27, %c0_28] : memref<9x1x256xf32, #tpu.memory_space<vmem>>, vector<1x1x256xf32>
    %55 = vector.shape_cast %54 : vector<1x1x256xf32> to vector<1x256xf32>
    %c7 = arith.constant 7 : index
    %c0_29 = arith.constant 0 : index
    %c0_30 = arith.constant 0 : index
    %56 = vector.load %arg4[%c7, %c0_29, %c0_30] : memref<9x1x256xf32, #tpu.memory_space<vmem>>, vector<1x1x256xf32>
    %57 = vector.shape_cast %56 : vector<1x1x256xf32> to vector<1x256xf32>
    %c8 = arith.constant 8 : index
    %c0_31 = arith.constant 0 : index
    %c0_32 = arith.constant 0 : index
    %58 = vector.load %arg4[%c8, %c0_31, %c0_32] : memref<9x1x256xf32, #tpu.memory_space<vmem>>, vector<1x1x256xf32>
    %59 = vector.shape_cast %58 : vector<1x1x256xf32> to vector<1x256xf32>
    %60 = vector.shape_cast %51 : vector<1x256xf32> to vector<1x1x256xf32>
    %61 = vector.broadcast %60 : vector<1x1x256xf32> to vector<12x16x256xf32>
    %62 = arith.mulf %5, %61 : vector<12x16x256xf32>
    %63 = vector.extract_strided_slice %24 {offsets = [0, 0, 0], sizes = [12, 16, 256], strides = [1, 1, 1]} : vector<14x16x256xf32> to vector<12x16x256xf32>
    %64 = vector.shape_cast %43 : vector<1x256xf32> to vector<1x1x256xf32>
    %65 = vector.broadcast %64 : vector<1x1x256xf32> to vector<12x16x256xf32>
    %66 = arith.mulf %63, %65 : vector<12x16x256xf32>
    %67 = arith.addf %62, %66 : vector<12x16x256xf32>
    %68 = vector.extract_strided_slice %25 {offsets = [0, 0, 0], sizes = [12, 16, 256], strides = [1, 1, 1]} : vector<14x16x256xf32> to vector<12x16x256xf32>
    %69 = vector.shape_cast %45 : vector<1x256xf32> to vector<1x1x256xf32>
    %70 = vector.broadcast %69 : vector<1x1x256xf32> to vector<12x16x256xf32>
    %71 = arith.mulf %68, %70 : vector<12x16x256xf32>
    %72 = arith.addf %67, %71 : vector<12x16x256xf32>
    %73 = vector.extract_strided_slice %41 {offsets = [0, 0, 0], sizes = [12, 16, 256], strides = [1, 1, 1]} : vector<14x16x256xf32> to vector<12x16x256xf32>
    %74 = vector.shape_cast %47 : vector<1x256xf32> to vector<1x1x256xf32>
    %75 = vector.broadcast %74 : vector<1x1x256xf32> to vector<12x16x256xf32>
    %76 = arith.mulf %73, %75 : vector<12x16x256xf32>
    %77 = arith.addf %72, %76 : vector<12x16x256xf32>
    %78 = vector.extract_strided_slice %24 {offsets = [1, 0, 0], sizes = [12, 16, 256], strides = [1, 1, 1]} : vector<14x16x256xf32> to vector<12x16x256xf32>
    %79 = vector.shape_cast %49 : vector<1x256xf32> to vector<1x1x256xf32>
    %80 = vector.broadcast %79 : vector<1x1x256xf32> to vector<12x16x256xf32>
    %81 = arith.mulf %78, %80 : vector<12x16x256xf32>
    %82 = arith.addf %77, %81 : vector<12x16x256xf32>
    %83 = vector.extract_strided_slice %41 {offsets = [1, 0, 0], sizes = [12, 16, 256], strides = [1, 1, 1]} : vector<14x16x256xf32> to vector<12x16x256xf32>
    %84 = vector.shape_cast %53 : vector<1x256xf32> to vector<1x1x256xf32>
    %85 = vector.broadcast %84 : vector<1x1x256xf32> to vector<12x16x256xf32>
    %86 = arith.mulf %83, %85 : vector<12x16x256xf32>
    %87 = arith.addf %82, %86 : vector<12x16x256xf32>
    %88 = vector.extract_strided_slice %24 {offsets = [2, 0, 0], sizes = [12, 16, 256], strides = [1, 1, 1]} : vector<14x16x256xf32> to vector<12x16x256xf32>
    %89 = vector.shape_cast %55 : vector<1x256xf32> to vector<1x1x256xf32>
    %90 = vector.broadcast %89 : vector<1x1x256xf32> to vector<12x16x256xf32>
    %91 = arith.mulf %88, %90 : vector<12x16x256xf32>
    %92 = arith.addf %87, %91 : vector<12x16x256xf32>
    %93 = vector.extract_strided_slice %25 {offsets = [2, 0, 0], sizes = [12, 16, 256], strides = [1, 1, 1]} : vector<14x16x256xf32> to vector<12x16x256xf32>
    %94 = vector.shape_cast %57 : vector<1x256xf32> to vector<1x1x256xf32>
    %95 = vector.broadcast %94 : vector<1x1x256xf32> to vector<12x16x256xf32>
    %96 = arith.mulf %93, %95 : vector<12x16x256xf32>
    %97 = arith.addf %92, %96 : vector<12x16x256xf32>
    %98 = vector.extract_strided_slice %41 {offsets = [2, 0, 0], sizes = [12, 16, 256], strides = [1, 1, 1]} : vector<14x16x256xf32> to vector<12x16x256xf32>
    %99 = vector.shape_cast %59 : vector<1x256xf32> to vector<1x1x256xf32>
    %100 = vector.broadcast %99 : vector<1x1x256xf32> to vector<12x16x256xf32>
    %101 = arith.mulf %98, %100 : vector<12x16x256xf32>
    %102 = arith.addf %97, %101 : vector<12x16x256xf32>
    %c8_i32 = arith.constant 8 : i32
    %103 = arith.muli %arg1, %c8_i32 : i32
    %c2_i32 = arith.constant 2 : i32
    %104 = arith.subi %103, %c2_i32 : i32
    %105 = tpu.iota {dimensions = array<i32: 0>} : vector<12x16x1xi32>
    %106 = vector.broadcast %104 : i32 to vector<12x16x1xi32>
    %107 = arith.addi %106, %105 : vector<12x16x1xi32>
    %c0_i32_33 = arith.constant 0 : i32
    %108 = vector.broadcast %c0_i32_33 : i32 to vector<12x16x1xi32>
    %109 = arith.cmpi sge, %107, %108 : vector<12x16x1xi32>
    %c16_i32_34 = arith.constant 16 : i32
    %110 = vector.broadcast %c16_i32_34 : i32 to vector<12x16x1xi32>
    %111 = arith.cmpi slt, %107, %110 : vector<12x16x1xi32>
    %112 = arith.andi %109, %111 : vector<12x16x1xi1>
    %cst_35 = arith.constant 0.000000e+00 : f32
    %113 = vector.shape_cast %112 : vector<12x16x1xi1> to vector<12x16x1xi1>
    %114 = vector.broadcast %113 : vector<12x16x1xi1> to vector<12x16x256xi1>
    %115 = vector.broadcast %cst_35 : f32 to vector<12x16x256xf32>
    %116 = arith.select %114, %102, %115 : vector<12x16x256xi1>, vector<12x16x256xf32>
    %117 = vector.shape_cast %116 : vector<12x16x256xf32> to vector<192x256xf32>
    %118 = tpu.iota {dimensions = array<i32: 1>} : vector<1x16x1xi32>
    %cst_36 = arith.constant 0.000000e+00 : f32
    %119 = vector.broadcast %cst_36 : f32 to vector<1x16x256xf32>
    %c1_i32_37 = arith.constant 1 : i32
    %120 = tpu.dynamic_rotate %117 by %c1_i32_37 dim 0 : vector<192x256xf32>, i32 -> vector<192x256xf32>
    %121 = vector.shape_cast %120 : vector<192x256xf32> to vector<12x16x256xf32>
    %c-1_i32_38 = arith.constant -1 : i32
    %122 = vector.broadcast %c-1_i32_38 : i32 to vector<1x16x1xi32>
    %123 = arith.addi %118, %122 : vector<1x16x1xi32>
    %c0_i32_39 = arith.constant 0 : i32
    %124 = vector.broadcast %c0_i32_39 : i32 to vector<1x16x1xi32>
    %125 = arith.cmpi sge, %123, %124 : vector<1x16x1xi32>
    %c-1_i32_40 = arith.constant -1 : i32
    %126 = vector.broadcast %c-1_i32_40 : i32 to vector<1x16x1xi32>
    %127 = arith.addi %118, %126 : vector<1x16x1xi32>
    %c16_i32_41 = arith.constant 16 : i32
    %128 = vector.broadcast %c16_i32_41 : i32 to vector<1x16x1xi32>
    %129 = arith.cmpi slt, %127, %128 : vector<1x16x1xi32>
    %130 = arith.andi %125, %129 : vector<1x16x1xi1>
    %cst_42 = arith.constant 0.000000e+00 : f32
    %131 = vector.shape_cast %130 : vector<1x16x1xi1> to vector<1x16x1xi1>
    %132 = vector.broadcast %131 : vector<1x16x1xi1> to vector<12x16x256xi1>
    %133 = vector.broadcast %cst_42 : f32 to vector<12x16x256xf32>
    %134 = arith.select %132, %121, %133 : vector<12x16x256xi1>, vector<12x16x256xf32>
    %135 = tpu.concatenate %119, %134, %119 in 0 : vector<1x16x256xf32>, vector<12x16x256xf32>, vector<1x16x256xf32> -> vector<14x16x256xf32>
    %136 = tpu.concatenate %119, %116, %119 in 0 : vector<1x16x256xf32>, vector<12x16x256xf32>, vector<1x16x256xf32> -> vector<14x16x256xf32>
    %c191_i32_43 = arith.constant 191 : i32
    %137 = tpu.dynamic_rotate %117 by %c191_i32_43 dim 0 : vector<192x256xf32>, i32 -> vector<192x256xf32>
    %138 = vector.shape_cast %137 : vector<192x256xf32> to vector<12x16x256xf32>
    %c1_i32_44 = arith.constant 1 : i32
    %139 = vector.broadcast %c1_i32_44 : i32 to vector<1x16x1xi32>
    %140 = arith.addi %118, %139 : vector<1x16x1xi32>
    %c0_i32_45 = arith.constant 0 : i32
    %141 = vector.broadcast %c0_i32_45 : i32 to vector<1x16x1xi32>
    %142 = arith.cmpi sge, %140, %141 : vector<1x16x1xi32>
    %c1_i32_46 = arith.constant 1 : i32
    %143 = vector.broadcast %c1_i32_46 : i32 to vector<1x16x1xi32>
    %144 = arith.addi %118, %143 : vector<1x16x1xi32>
    %c16_i32_47 = arith.constant 16 : i32
    %145 = vector.broadcast %c16_i32_47 : i32 to vector<1x16x1xi32>
    %146 = arith.cmpi slt, %144, %145 : vector<1x16x1xi32>
    %147 = arith.andi %142, %146 : vector<1x16x1xi1>
    %cst_48 = arith.constant 0.000000e+00 : f32
    %148 = vector.shape_cast %147 : vector<1x16x1xi1> to vector<1x16x1xi1>
    %149 = vector.broadcast %148 : vector<1x16x1xi1> to vector<12x16x256xi1>
    %150 = vector.broadcast %cst_48 : f32 to vector<12x16x256xf32>
    %151 = arith.select %149, %138, %150 : vector<12x16x256xi1>, vector<12x16x256xf32>
    %152 = tpu.concatenate %119, %151, %119 in 0 : vector<1x16x256xf32>, vector<12x16x256xf32>, vector<1x16x256xf32> -> vector<14x16x256xf32>
    %c0_49 = arith.constant 0 : index
    %c0_50 = arith.constant 0 : index
    %c0_51 = arith.constant 0 : index
    %153 = vector.load %arg5[%c0_49, %c0_50, %c0_51] : memref<9x1x256xf32, #tpu.memory_space<vmem>>, vector<1x1x256xf32>
    %154 = vector.shape_cast %153 : vector<1x1x256xf32> to vector<1x256xf32>
    %c1_52 = arith.constant 1 : index
    %c0_53 = arith.constant 0 : index
    %c0_54 = arith.constant 0 : index
    %155 = vector.load %arg5[%c1_52, %c0_53, %c0_54] : memref<9x1x256xf32, #tpu.memory_space<vmem>>, vector<1x1x256xf32>
    %156 = vector.shape_cast %155 : vector<1x1x256xf32> to vector<1x256xf32>
    %c2_55 = arith.constant 2 : index
    %c0_56 = arith.constant 0 : index
    %c0_57 = arith.constant 0 : index
    %157 = vector.load %arg5[%c2_55, %c0_56, %c0_57] : memref<9x1x256xf32, #tpu.memory_space<vmem>>, vector<1x1x256xf32>
    %158 = vector.shape_cast %157 : vector<1x1x256xf32> to vector<1x256xf32>
    %c3_58 = arith.constant 3 : index
    %c0_59 = arith.constant 0 : index
    %c0_60 = arith.constant 0 : index
    %159 = vector.load %arg5[%c3_58, %c0_59, %c0_60] : memref<9x1x256xf32, #tpu.memory_space<vmem>>, vector<1x1x256xf32>
    %160 = vector.shape_cast %159 : vector<1x1x256xf32> to vector<1x256xf32>
    %c4_61 = arith.constant 4 : index
    %c0_62 = arith.constant 0 : index
    %c0_63 = arith.constant 0 : index
    %161 = vector.load %arg5[%c4_61, %c0_62, %c0_63] : memref<9x1x256xf32, #tpu.memory_space<vmem>>, vector<1x1x256xf32>
    %162 = vector.shape_cast %161 : vector<1x1x256xf32> to vector<1x256xf32>
    %c5_64 = arith.constant 5 : index
    %c0_65 = arith.constant 0 : index
    %c0_66 = arith.constant 0 : index
    %163 = vector.load %arg5[%c5_64, %c0_65, %c0_66] : memref<9x1x256xf32, #tpu.memory_space<vmem>>, vector<1x1x256xf32>
    %164 = vector.shape_cast %163 : vector<1x1x256xf32> to vector<1x256xf32>
    %c6_67 = arith.constant 6 : index
    %c0_68 = arith.constant 0 : index
    %c0_69 = arith.constant 0 : index
    %165 = vector.load %arg5[%c6_67, %c0_68, %c0_69] : memref<9x1x256xf32, #tpu.memory_space<vmem>>, vector<1x1x256xf32>
    %166 = vector.shape_cast %165 : vector<1x1x256xf32> to vector<1x256xf32>
    %c7_70 = arith.constant 7 : index
    %c0_71 = arith.constant 0 : index
    %c0_72 = arith.constant 0 : index
    %167 = vector.load %arg5[%c7_70, %c0_71, %c0_72] : memref<9x1x256xf32, #tpu.memory_space<vmem>>, vector<1x1x256xf32>
    %168 = vector.shape_cast %167 : vector<1x1x256xf32> to vector<1x256xf32>
    %c8_73 = arith.constant 8 : index
    %c0_74 = arith.constant 0 : index
    %c0_75 = arith.constant 0 : index
    %169 = vector.load %arg5[%c8_73, %c0_74, %c0_75] : memref<9x1x256xf32, #tpu.memory_space<vmem>>, vector<1x1x256xf32>
    %170 = vector.shape_cast %169 : vector<1x1x256xf32> to vector<1x256xf32>
    %171 = vector.shape_cast %162 : vector<1x256xf32> to vector<1x1x256xf32>
    %172 = vector.broadcast %171 : vector<1x1x256xf32> to vector<12x16x256xf32>
    %173 = arith.mulf %116, %172 : vector<12x16x256xf32>
    %174 = vector.extract_strided_slice %135 {offsets = [0, 0, 0], sizes = [12, 16, 256], strides = [1, 1, 1]} : vector<14x16x256xf32> to vector<12x16x256xf32>
    %175 = vector.shape_cast %154 : vector<1x256xf32> to vector<1x1x256xf32>
    %176 = vector.broadcast %175 : vector<1x1x256xf32> to vector<12x16x256xf32>
    %177 = arith.mulf %174, %176 : vector<12x16x256xf32>
    %178 = arith.addf %173, %177 : vector<12x16x256xf32>
    %179 = vector.extract_strided_slice %136 {offsets = [0, 0, 0], sizes = [12, 16, 256], strides = [1, 1, 1]} : vector<14x16x256xf32> to vector<12x16x256xf32>
    %180 = vector.shape_cast %156 : vector<1x256xf32> to vector<1x1x256xf32>
    %181 = vector.broadcast %180 : vector<1x1x256xf32> to vector<12x16x256xf32>
    %182 = arith.mulf %179, %181 : vector<12x16x256xf32>
    %183 = arith.addf %178, %182 : vector<12x16x256xf32>
    %184 = vector.extract_strided_slice %152 {offsets = [0, 0, 0], sizes = [12, 16, 256], strides = [1, 1, 1]} : vector<14x16x256xf32> to vector<12x16x256xf32>
    %185 = vector.shape_cast %158 : vector<1x256xf32> to vector<1x1x256xf32>
    %186 = vector.broadcast %185 : vector<1x1x256xf32> to vector<12x16x256xf32>
    %187 = arith.mulf %184, %186 : vector<12x16x256xf32>
    %188 = arith.addf %183, %187 : vector<12x16x256xf32>
    %189 = vector.extract_strided_slice %135 {offsets = [1, 0, 0], sizes = [12, 16, 256], strides = [1, 1, 1]} : vector<14x16x256xf32> to vector<12x16x256xf32>
    %190 = vector.shape_cast %160 : vector<1x256xf32> to vector<1x1x256xf32>
    %191 = vector.broadcast %190 : vector<1x1x256xf32> to vector<12x16x256xf32>
    %192 = arith.mulf %189, %191 : vector<12x16x256xf32>
    %193 = arith.addf %188, %192 : vector<12x16x256xf32>
    %194 = vector.extract_strided_slice %152 {offsets = [1, 0, 0], sizes = [12, 16, 256], strides = [1, 1, 1]} : vector<14x16x256xf32> to vector<12x16x256xf32>
    %195 = vector.shape_cast %164 : vector<1x256xf32> to vector<1x1x256xf32>
    %196 = vector.broadcast %195 : vector<1x1x256xf32> to vector<12x16x256xf32>
    %197 = arith.mulf %194, %196 : vector<12x16x256xf32>
    %198 = arith.addf %193, %197 : vector<12x16x256xf32>
    %199 = vector.extract_strided_slice %135 {offsets = [2, 0, 0], sizes = [12, 16, 256], strides = [1, 1, 1]} : vector<14x16x256xf32> to vector<12x16x256xf32>
    %200 = vector.shape_cast %166 : vector<1x256xf32> to vector<1x1x256xf32>
    %201 = vector.broadcast %200 : vector<1x1x256xf32> to vector<12x16x256xf32>
    %202 = arith.mulf %199, %201 : vector<12x16x256xf32>
    %203 = arith.addf %198, %202 : vector<12x16x256xf32>
    %204 = vector.extract_strided_slice %136 {offsets = [2, 0, 0], sizes = [12, 16, 256], strides = [1, 1, 1]} : vector<14x16x256xf32> to vector<12x16x256xf32>
    %205 = vector.shape_cast %168 : vector<1x256xf32> to vector<1x1x256xf32>
    %206 = vector.broadcast %205 : vector<1x1x256xf32> to vector<12x16x256xf32>
    %207 = arith.mulf %204, %206 : vector<12x16x256xf32>
    %208 = arith.addf %203, %207 : vector<12x16x256xf32>
    %209 = vector.extract_strided_slice %152 {offsets = [2, 0, 0], sizes = [12, 16, 256], strides = [1, 1, 1]} : vector<14x16x256xf32> to vector<12x16x256xf32>
    %210 = vector.shape_cast %170 : vector<1x256xf32> to vector<1x1x256xf32>
    %211 = vector.broadcast %210 : vector<1x1x256xf32> to vector<12x16x256xf32>
    %212 = arith.mulf %209, %211 : vector<12x16x256xf32>
    %213 = arith.addf %208, %212 : vector<12x16x256xf32>
    %214 = math.tanh %213 : vector<12x16x256xf32>
    %215 = arith.addf %214, %116 : vector<12x16x256xf32>
    %216 = vector.extract_strided_slice %215 {offsets = [0, 0, 0], sizes = [12, 16, 128], strides = [1, 1, 1]} : vector<12x16x256xf32> to vector<12x16x128xf32>
    %217 = vector.extract_strided_slice %215 {offsets = [0, 0, 128], sizes = [12, 16, 128], strides = [1, 1, 1]} : vector<12x16x256xf32> to vector<12x16x128xf32>
    %218 = arith.mulf %216, %217 : vector<12x16x128xf32>
    %219 = vector.extract_strided_slice %218 {offsets = [2, 0, 0], sizes = [8, 16, 128], strides = [1, 1, 1]} : vector<12x16x128xf32> to vector<8x16x128xf32>
    %220 = vector.shape_cast %219 : vector<8x16x128xf32> to vector<128x128xf32>
    %c0_76 = arith.constant 0 : index
    %c0_77 = arith.constant 0 : index
    %221 = vector.load %arg6[%c0_76, %c0_77] : memref<128x128xf32, #tpu.memory_space<vmem>>, vector<128x128xf32>
    %cst_78 = arith.constant dense<0.000000e+00> : vector<128x128xf32>
    %222 = tpu.matmul %220, %221, %cst_78 {dimension_numbers = #tpu.dot_dimension_numbers<[1], [0], [0], [1], [0, 0, 1, 1], [], []>} : vector<128x128xf32>, vector<128x128xf32>, vector<128x128xf32> -> vector<128x128xf32>
    %223 = vector.shape_cast %222 : vector<128x128xf32> to vector<8x16x128xf32>
    %c0_79 = arith.constant 0 : index
    %c0_80 = arith.constant 0 : index
    %c0_81 = arith.constant 0 : index
    %c0_82 = arith.constant 0 : index
    %224 = vector.load %arg7[%c0_79, %c0_80, %c0_81, %c0_82] : memref<1x8x16x128xf32, #tpu.memory_space<vmem>>, vector<1x8x16x128xf32>
    %225 = vector.shape_cast %224 : vector<1x8x16x128xf32> to vector<8x16x128xf32>
    %226 = vector.shape_cast %223 : vector<8x16x128xf32> to vector<1x8x16x128xf32>
    tpu.vector_store %arg7[%c0_79, %c0_80, %c0_81, %c0_82], %226 {strides = array<i32>} : memref<1x8x16x128xf32, #tpu.memory_space<vmem>>, vector<1x8x16x128xf32>,
    return
  }
  func.func @transform_0(%arg0: i32, %arg1: i32) -> (i32, i32, i32, i32, i32) {
    %c0_i32 = arith.constant 0 : i32
    %c0_i32_0 = arith.constant 0 : i32
    %c0_i32_1 = arith.constant 0 : i32
    %c0_i32_2 = arith.constant 0 : i32
    return %arg0, %arg1, %c0_i32, %c0_i32_0, %c0_i32_1 : i32, i32, i32, i32, i32
  }
  func.func @transform_1(%arg0: i32, %arg1: i32) -> (i32, i32) {
    %c0_i32 = arith.constant 0 : i32
    %c0_i32_0 = arith.constant 0 : i32
    %c0_i32_1 = arith.constant 0 : i32
    return %c0_i32, %c0_i32_0 : i32, i32
  }
  func.func @transform_2(%arg0: i32, %arg1: i32) -> (i32, i32, i32) {
    %c0_i32 = arith.constant 0 : i32
    %c0_i32_0 = arith.constant 0 : i32
    %c0_i32_1 = arith.constant 0 : i32
    %c0_i32_2 = arith.constant 0 : i32
    return %c0_i32, %c0_i32_0, %c0_i32_1 : i32, i32, i32
  }
  func.func @transform_3(%arg0: i32, %arg1: i32) -> (i32, i32, i32) {
    %c0_i32 = arith.constant 0 : i32
    %c0_i32_0 = arith.constant 0 : i32
    %c0_i32_1 = arith.constant 0 : i32
    %c0_i32_2 = arith.constant 0 : i32
    return %c0_i32, %c0_i32_0, %c0_i32_1 : i32, i32, i32
  }
  func.func @transform_4(%arg0: i32, %arg1: i32) -> (i32, i32) {
    %c0_i32 = arith.constant 0 : i32
    %c0_i32_0 = arith.constant 0 : i32
    %c0_i32_1 = arith.constant 0 : i32
    return %c0_i32, %c0_i32_0 : i32, i32
  }
  func.func @transform_5(%arg0: i32, %arg1: i32) -> (i32, i32, i32, i32) {
    %c0_i32 = arith.constant 0 : i32
    %c0_i32_0 = arith.constant 0 : i32
    %c0_i32_1 = arith.constant 0 : i32
    return %arg0, %arg1, %c0_i32, %c0_i32_0 : i32, i32, i32, i32
  }
}

</mosaic_0001>

<bundles_post_ra>
// kernel: tpu_custom_call.1
= control target key start
LH: loop header
LB: loop body
LE: loop exit
PB: predicated region body
PF: predicated region fallthrough
CT: control target
= control target key end

     0   :  { %s8070_s0 = inlined_call_operand.hbm [shape: f32[2,2,12,16,128], index: 0, kind: input, shape index: {}]   ;;  %s8071_s1 = inlined_call_operand.hbm [shape: f32[128,256], index: 1, kind: input, shape index: {}]   ;;  %s8072_s2 = inlined_call_operand.hbm [shape: f32[9,1,256], index: 2, kind: input, shape index: {}]   ;;  %s8073_s3 = inlined_call_operand.hbm [shape: f32[9,1,256], index: 3, kind: input, shape index: {}]   ;;  %s8074_s4 = inlined_call_operand.hbm [shape: f32[128,128], index: 4, kind: input, shape index: {}]   ;;  %s8075_s5 = inlined_call_operand.hbm [shape: f32[2,16,16,128], index: 5, kind: output, shape index: {}]  }
   0x1   :  { %8305 = sst [smem:[#allocation166_spill]] %s8071_s1 }
   0x2   :  { %8306 = sst [smem:[#allocation167_spill]] %s8072_s2 }
   0x3   :  { %8307 = sst [smem:[#allocation168_spill]] %s8073_s3 }
   0x4   :  { %8308 = sst [smem:[#allocation169_spill]] %s8074_s4 }
   0x5   :  { %10 = vsyncpa [#allocation3], 0 }
   0x6   :  { %12 = vsyncpa [#allocation3 + $0x1], 0 }
   0x7   :  { %13 = vsyncpa [#allocation6], 0 }
   0x8   :  { %14 = vsyncpa [#allocation9], 0 }
   0x9   :  { %15 = vsyncpa [#allocation4], 0 }
   0xa   :  { %17 = vsyncpa [#allocation4 + $0x1], 0  ;;  %s3816_s18 = smov 0   ;;  %s3818_s19 = smov 0  }
   0xb   :  { %s3820_s20 = smov 0   ;;  %s3822_s21 = smov 0  }
   0xc   :  { %s3824_s22 = smov 0   ;;  %s3826_s23 = smov 0  }
   0xd   :  { %s3828_s24 = smov 0   ;;  %s3830_s25 = smov 0  }
   0xe LB: > { %8309 = sst [smem:[#allocation16_spill]] %s3741_s18  ;;  %s3190_s26 = sadd.s32 4294967295, %s3769_s25   ;;  %s3769_s25 = sphi %s3830_s25, %s23_s25   ;;  %s3765_s24 = sphi %s3828_s24, %s9128_s24   ;;  %s3761_s23 = sphi %s3826_s23, %s9127_s23   ;;  %s3757_s22 = sphi %s3824_s22, %s9126_s22   ;;  %s3753_s21 = sphi %s3822_s21, %s9125_s21   ;;  %s3749_s20 = sphi %s3820_s20, %s9124_s20   ;;  %s3745_s19 = sphi %s3818_s19, %s9123_s19   ;;  %s3741_s18 = sphi %s3816_s18, %s9122_s18  }
   0xf   : > { %s3191_s27 = sadd.s32 4294967294, %s3769_s25   ;;  %p57_p0 = scmp.ne.s32.totalorder %s3745_s19, %s3741_s18 }
  0x10   : > { %p3860_p1 = scmp.eq.s32.totalorder %s3190_s26, 0  ;;  %p3864_p2 = scmp.eq.s32.totalorder %s3190_s26, 3 }
  0x11   : > { %p173_p3 = scmp.eq.s32.totalorder %s3191_s27, 3  ;;  %p3192_p5 = scmp.ge.s32.totalorder %s3769_s25, 1 }
  0x12   : > { %s8310_s28 = scalar_select %p3860_p1, 1, 0 }
  0x13   : > { %p3870_p4 = por %p3860_p1, %p57_p0  ;;  %p3875_p6 = por %p173_p3, %p57_p0 }
  0x14   : > { %p180_p7 = scmp.lt.s32.totalorder %s3769_s25, 5  ;;  %s3771_s8 = smov [#allocation5]  }
  0x15   : > { %s8313_s6 = scalar_select %p3875_p6, 1, 0 }
  0x16   : > { %p3880_p8 = pnand %p3192_p5, %p180_p7  ;;  %s192_s9 = sshll.u32 %s3771_s8, 4  ;;  %s193_s9 = int_to_ptr.vmem [resolvable:$true] %s192_s9 }
  0x17   : > { %8314 = sst [smem:[#allocation17_spill]] %s8313_s6  ;;  %s3772_s11 = smov [#allocation8]  }
  0x18   : > { %p3359_p9 = pneg %p3880_p8  ;;  %s218_s12 = sshll.u32 %s3772_s11, 4  ;;  %s219_s12 = int_to_ptr.vmem [resolvable:$true] %s218_s12 }
  0x19   : > { %s3544_s13 = scalar_lea.vmem %s193_s9, 4096  ;;  %p3552_p3 = scmp.lt.s32.totalorder %s193_s9, %s193_s9 }
  0x1a   : > { %p3888_p10 = pnand %p3359_p9, %p3860_p1  ;;  %p3545_p12 = scmp.ne.s32.totalorder %s193_s9, %s3544_s13 }
  0x1b   : > { %p3553_p5 = scmp.lt.s32.totalorder %s3544_s13, %s3544_s13 }
  0x1c   : > { %p3535_p11 = pneg %p3888_p10 }
  0x1d   : > { %p3554_p7 = por %p3553_p5, %p3552_p3 }
  0x1e   : > { %p3547_p13 = pnand %p3545_p12, %p3535_p11 }
  0x20   : > { %p3548_p0 = pneg %p3547_p13 }
  0x22   : > { %p3555_p6 = pnand %p3554_p7, %p3548_p0 }
  0x24   : > { %3558 = shalt.err (!%p3555_p6)
}
  0x25   : > { %s3773_s14 = smov 256   ;;  %s3774_s15 = smov 16  }
  0x26   : > { %s8317_s1 = sld [smem:[#allocation166_spill]]  ;;  %s3775_s26 = smov [#allocation7]  }
  0x27   : > { %s205_s27 = sshll.u32 %s3775_s26, 4  ;;  %s3570_s8 = scalar_lea.vmem %s219_s12, 288  ;;  %s206_s27 = int_to_ptr.vmem [resolvable:$true] %s205_s27 }
  0x28   : > { %p3571_p9 = scmp.ne.s32.totalorder %s219_s12, %s3570_s8  ;;  %p3578_p0 = scmp.lt.s32.totalorder %s219_s12, %s219_s12 }
  0x29   : > { %p3579_p6 = scmp.lt.s32.totalorder %s3570_s8, %s3570_s8 }
  0x2a   : > { %p3573_p12 = pnand %p3571_p9, %p3535_p11 }
  0x2b   : > { %p3580_p3 = por %p3579_p6, %p3578_p0 }
  0x2c   : > { %3362 = dma.hbm_to_vmem [thread:$0]  (!%p3888_p10), %s8317_s1, 4096, %s193_s9, [#allocation6], %s3773_s14, %s3773_s14, %s3774_s15  }
  0x2d   : > { %p3574_p13 = pneg %p3573_p12 }
  0x2f   : > { %p3581_p5 = pnand %p3580_p3, %p3574_p13 }
  0x31   : > { %3584 = shalt.err (!%p3581_p5)
}
  0x32   : > { %s3776_s11 = smov 32   ;;  %s3777_s13 = smov 2  }
  0x33   : > { %s8318_s3 = sld [smem:[#allocation168_spill]]  ;;  %s3596_s15 = scalar_lea.vmem %s206_s27, 288 }
  0x34   : > { %p3597_p7 = scmp.ne.s32.totalorder %s206_s27, %s3596_s15  ;;  %p3604_p1 = scmp.lt.s32.totalorder %s206_s27, %s206_s27 }
  0x35   : > { %p3605_p0 = scmp.lt.s32.totalorder %s3596_s15, %s3596_s15 }
  0x36   : > { %p3599_p9 = pnand %p3597_p7, %p3535_p11 }
  0x37   : > { %p3606_p13 = por %p3605_p0, %p3604_p1 }
  0x38   : > { %p3600_p12 = pneg %p3599_p9 }
  0x39   : > { %3368 = dma.hbm_to_vmem [thread:$0]  (!%p3888_p10), %s8318_s3, 288, %s219_s12, [#allocation9], %s3776_s11, %s3776_s11, %s3777_s13  }
  0x3a   : > { %p3607_p6 = pnand %p3606_p13, %p3600_p12 }
  0x3c   : > { %3610 = shalt.err (!%p3607_p6)
}
  0x3d   : > { %s8319_s2 = sld [smem:[#allocation167_spill]]  ;;  %s3778_s12 = smov [#allocation10]  }
  0x3e   : > { %s231_s26 = sshll.u32 %s3778_s12, 4  ;;  %s232_s26 = int_to_ptr.vmem [resolvable:$true] %s231_s26 }
  0x3f   : > { %s3622_s8 = scalar_lea.vmem %s232_s26, 2048  ;;  %p3630_p9 = scmp.lt.s32.totalorder %s232_s26, %s232_s26 }
  0x40   : > { %p3623_p3 = scmp.ne.s32.totalorder %s232_s26, %s3622_s8  ;;  %p3631_p1 = scmp.lt.s32.totalorder %s3622_s8, %s3622_s8 }
  0x42   : > { %p3625_p5 = pnand %p3623_p3, %p3535_p11  ;;  %p3632_p12 = por %p3631_p1, %p3630_p9 }
  0x43   : > { %3365 = dma.hbm_to_vmem [thread:$0]  (!%p3888_p10), %s8319_s2, 288, %s206_s27, [#allocation6], %s3776_s11, %s3776_s11, %s3777_s13  }
  0x44   : > { %p3626_p7 = pneg %p3625_p5 }
  0x46   : > { %p3633_p0 = pnand %p3632_p12, %p3626_p7 }
  0x48   : > { %3636 = shalt.err (!%p3633_p0)
}
  0x49   : > { %s8078_s9 = smov 128   ;;  %s8079_s27 = smov 8  }
  0x4a   : > { %s8320_s4 = sld [smem:[#allocation169_spill]]  ;;  %s32_s14 = sadd.s32 1, %s3761_s23 }
  0x4b   : > { %s35_s15 = sadd.s32 1, %s3765_s24  ;;  %p33_p11 = scmp.ge.s32.totalorder %s32_s14, 2 }
  0x4c   : > { %s44_s16 = sadd.s32 1, %s3749_s20  ;;  %p51_p13 = scmp.ne.s32.totalorder %s3749_s20, %s3745_s19 }
  0x4d   : > { %p52_p6 = scmp.eq.s32.totalorder %s3769_s25, 0  ;;  %s9130_s14 = smov (%p33_p11, %s32_s14), 0 }
  0x4e   : > { %8321 = sst [smem:[#allocation18_spill]] %s9130_s14  ;;  %s9132_s15 = smov (!%p33_p11, %s35_s15), %s3765_s24 }
  0x4f   : > { %s40_s10 = ssub.s32 %s3761_s23, %s9130_s14  ;;  %p3940_p3 = por %p52_p6, %p51_p13 }
  0x50   : > { %3371 = dma.hbm_to_vmem [thread:$0]  (!%p3888_p10), %s8320_s4, 2048, %s232_s26, [#allocation9], %s8078_s9, %s8078_s9, %s8079_s27  }
  0x51   : > { %p37_p10 = scmp.ge.s32.totalorder %s9132_s15, 2  ;;  %p3946_p5 = por %p3864_p2, %p51_p13 }
  0x52   : > { %p3384_p7 = scmp.lt.s32.totalorder %s3769_s25, 4  ;;  %s245_s26 = sand.u32 1, %s3749_s20  }
  0x53   : > { %s9134_s15 = smov (%p37_p10, %s9132_s15), 0  ;;  %s3335_s8 = smul.u32 192, %s245_s26 }
  0x54   : > { %8324 = sst [smem:[#allocation19_spill]] %s9134_s15  ;;  %s39_s11 = ssub.s32 %s3765_s24, %s9134_s15 }
  0x55   : > { %s3336_s13 = smul.u32 24, %s3761_s23  ;;  %s41_s9 = sor.u32 %s40_s10, %s39_s11 }
  0x56   : > { %p42_p9 = scmp.eq.s32.totalorder %s41_s9, 0  ;;  %s3337_s27 = smul.u32 48, %s3765_s24 }
  0x57   : > { %s249_s1 = scalar_lea.vmem [#allocation2], %s3335_s8  ;;  %p3960_p1 = pnand %p3384_p7, %p3940_p3 }
  0x58   : > { %s258_s2 = sshll.u32 %s249_s1, 4  ;;  %s255_s4 = sadd.s32 %s3337_s27, %s3336_s13  ;;  %s259_s2 = int_to_ptr.vmem [resolvable:$true] %s258_s2 }
  0x59   : > { %s3965_s3 = scalar_select %p42_p9, %s3749_s20, %s44_s16  }
  0x5a   : > { %s3198_s14 = sshll.u32 %s255_s4, 7  ;;  %s246_s10 = scalar_lea.sflag [#allocation3], %s245_s26 }
  0x5b   : > { %s257_s15 = scalar_lea.hbm %s8070_s0, %s3198_s14  ;;  %p3639_p2 = pneg %p3960_p1 }
  0x5c   : > { %s3650_s9 = scalar_lea.vmem %s259_s2, 3072  ;;  %s3781_s1 = smov [#allocation2]  }
  0x5d   : > { %p3651_p12 = scmp.ne.s32.totalorder %s259_s2, %s3650_s9  ;;  %s3655_s17 = sshll.u32 %s3781_s1, 4  ;;  %s3656_s17 = int_to_ptr.vmem [resolvable:$false] %s3655_s17 }
  0x5e   : > { %s3657_s8 = scalar_lea.vmem %s3656_s17, 6144  ;;  %p3658_p13 = scmp.lt.s32.totalorder %s259_s2, %s3656_s17 }
  0x5f   : > { %p3653_p0 = pnand %p3651_p12, %p3639_p2  ;;  %p3659_p6 = scmp.lt.s32.totalorder %s3657_s8, %s3650_s9 }
  0x61   : > { %p3654_p11 = pneg %p3653_p0  ;;  %p3660_p3 = por %p3659_p6, %p3658_p13 }
  0x63   : > { %p3661_p10 = pnand %p3660_p3, %p3654_p11 }
  0x65   : > { %3664 = shalt.err (!%p3661_p10)
}
  0x66   : > { %s8326_s4 = smov 8   ;;  %s8327_s18 = smov 128  }
  0x67   : > { %3375 = dma.hbm_to_vmem [thread:$0]  (!%p3960_p1), %s257_s15, 3072, %s259_s2, %s246_s10, %s8327_s18, %s8327_s18, %s8326_s4  }
  0x68   : > { %270 = sbr.rel (%p3880_p8) target bundleno = 1082 (0x43a), region = 40 }
  0x6d   : > { %s3980_s6 = sand.u32 1, %s3745_s19  }
  0x6e   : > { %s3338_s27 = smul.u32 192, %s3980_s6  ;;  %s273_s14 = scalar_lea.sflag [#allocation3], %s3980_s6 }
  0x70   : > { %s3984_s16 = scalar_lea.vmem [#allocation2], %s3338_s27 }
  0x71   : > { %3724 = dma.done.wait (%p3870_p4), %s273_s14, 3072  }
  0x72   : > { %3726 = vsyncadd (%p3870_p4), %s273_s14, 4294964224  ;;  %p8328_p7 = scmp.ne.s32.totalorder %s8310_s28, 0 }
  0x74   : > { %3728 = dma.done.wait (%p8328_p7), [#allocation6], 4384  }
  0x75   : > { %3730 = vsyncadd (%p8328_p7), [#allocation6], 4294962912 }
  0x76   : > { %3732 = dma.done.wait (%p8328_p7), [#allocation9], 2336  }
  0x77   : > { %3734 = vsyncadd (%p8328_p7), [#allocation9], 4294964960  ;;  %v3782_v0 = vmov 0.0   ;;  %v375_v1 = vld [vmem:[#allocation5 + $0xf8] sm:$0xff]  ;;  %v374_v2 = vld [vmem:[#allocation5 + $0xf0] sm:$0xff]  ;;  %v585_v57 = vlaneseq  ;;  %s3205_s2 = sshll.u32 %s3753_s21, 3 }
  0x78   : > { %440 = vmatprep.mubr.f32.mxu0 %v3782_v0  ;;  %536 = vmatprep.mubr.f32.mxu1 %v3782_v0  ;;  %v373_v3 = vld [vmem:[#allocation5 + $0xe8] sm:$0xff]  ;;  %v372_v4 = vld [vmem:[#allocation5 + $0xe0] sm:$0xff]  ;;  %v371_v5 = vld [vmem:[#allocation5 + $0xd8] sm:$0xff]  ;;  %s3206_s28 = sadd.s32 4294967294, %s3205_s2  ;;  %s3204_s30 = sshll.u32 %s3980_s6, 7 }
  0x79   : > { %376 = vmatprep.subr.mxu0 %v375_v1  ;;  %3303 = vmatprep.subr.mxu1 %v375_v1  ;;  %v370_v6 = vld [vmem:[#allocation5 + $0xd0] sm:$0xff]  ;;  %v369_v7 = vld [vmem:[#allocation5 + $0xc8] sm:$0xff]  ;;  %v368_v8 = vld [vmem:[#allocation5 + $0xc0] sm:$0xff]  ;;  %v4046_v58 = vshrl.u32 %v585_v57, 7  ;;  %s7991_s7 = scalar_lea.vmem [#allocation11], %s3204_s30  ;;  %s3214_s15 = sshll.u32 %s3753_s21, 4 }
  0x7a   : > { %377 = vmatpush1.msra.mxu0 %v374_v2  ;;  %3319 = vmatpush1.msra.mxu1 %v374_v2  ;;  %v367_v9 = vld [vmem:[#allocation5 + $0xb8] sm:$0xff]  ;;  %v366_v10 = vld [vmem:[#allocation5 + $0xb0] sm:$0xff]  ;;  %v365_v11 = vld [vmem:[#allocation5 + $0xa8] sm:$0xff]  ;;  %s3210_s26 = sshll.u32 %s3757_s22, 5  ;;  %s3062_s13 = sshll.u32 %s7991_s7, 4  ;;  %s8010_s13 = int_to_ptr.vmem [resolvable:$true] %s3062_s13 }
  0x7b   : > { %378 = vmatprep.subr.mxu0 %v373_v3  ;;  %3304 = vmatprep.subr.mxu1 %v373_v3  ;;  %v364_v12 = vld [vmem:[#allocation5 + $0xa0] sm:$0xff]  ;;  %v363_v13 = vld [vmem:[#allocation5 + $0x98] sm:$0xff]  ;;  %v362_v14 = vld [vmem:[#allocation5 + $0x90] sm:$0xff]  ;;  %8329 = vst [vmem:[#allocation20_spill] sm:$0xff] %v4046_v58  ;;  %v4049_v60 = vsub.s32 0, %v4046_v58  ;;  %v4052_v61 = vsub.s32 1, %v4046_v58  ;;  %s3059_s11 = sadd.s32 %s3214_s15, %s3210_s26 }
  0x7c   : > { %379 = vmatpush1.msra.mxu0 %v372_v4  ;;  %3320 = vmatpush1.msra.mxu1 %v372_v4  ;;  %v361_v15 = vld [vmem:[#allocation5 + $0x88] sm:$0xff]  ;;  %v360_v16 = vld [vmem:[#allocation5 + $0x80] sm:$0xff]  ;;  %v359_v17 = vld [vmem:[#allocation5 + $0x78] sm:$0xff]  ;;  %v587_v63 = vadd.s32 8, %v4046_v58  ;;  %vm636_vm0 = vcmp.lt.s32.totalorder %v4046_v58, 1  ;;  %vm793_vm1 = vcmp.lt.s32.totalorder %v4046_v58, 7 }
  0x7d   : > { %380 = vmatprep.subr.mxu0 %v371_v5  ;;  %3305 = vmatprep.subr.mxu1 %v371_v5  ;;  %v358_v18 = vld [vmem:[#allocation5 + $0x70] sm:$0xff]  ;;  %v357_v19 = vld [vmem:[#allocation5 + $0x68] sm:$0xff]  ;;  %v356_v20 = vld [vmem:[#allocation5 + $0x60] sm:$0xff]  ;;  %8330 = vst [vmem:[#allocation21_spill] sm:$0xff] %v4049_v60  ;;  %s3211_s29 = sshll.u32 %s3059_s11, 7  ;;  %s3046_s22 = scalar_lea.sflag [#allocation4], %s3980_s6 }
  0x7e   : > { %381 = vmatpush1.msra.mxu0 %v370_v6  ;;  %3321 = vmatpush1.msra.mxu1 %v370_v6  ;;  %v355_v21 = vld [vmem:[#allocation5 + $0x58] sm:$0xff]  ;;  %v354_v22 = vld [vmem:[#allocation5 + $0x50] sm:$0xff]  ;;  %v353_v23 = vld [vmem:[#allocation5 + $0x48] sm:$0xff]  ;;  %8331 = vst [vmem:[#allocation22_spill] sm:$0xff] %v4052_v61  ;;  %v4063_v6 = vadd.s32 4294967295, %v4046_v58  ;;  %s8016_s21 = scalar_lea.hbm %s8075_s5, %s3211_s29  ;;  %s3665_s1 = scalar_lea.vmem %s8010_s13, 2048 }
  0x7f   : > { %382 = vmatprep.subr.mxu0 %v369_v7  ;;  %3306 = vmatprep.subr.mxu1 %v369_v7  ;;  %v352_v24 = vld [vmem:[#allocation5 + $0x40] sm:$0xff]  ;;  %v351_v25 = vld [vmem:[#allocation5 + $0x38] sm:$0xff]  ;;  %v350_v26 = vld [vmem:[#allocation5 + $0x30] sm:$0xff]  ;;  %p3666_p4 = scmp.ne.s32.totalorder %s8010_s13, %s3665_s1  ;;  %s3783_s17 = smov [#allocation11]  }
  0x80   : > { %383 = vmatpush1.msra.mxu0 %v368_v8  ;;  %3322 = vmatpush1.msra.mxu1 %v368_v8  ;;  %v349_v27 = vld [vmem:[#allocation5 + $0x28] sm:$0xff]  ;;  %v348_v28 = vld [vmem:[#allocation5 + $0x20] sm:$0xff]  ;;  %v347_v29 = vld [vmem:[#allocation5 + $0x18] sm:$0xff]  ;;  %8332 = vst [vmem:[#allocation23_spill] sm:$0xff] %v4063_v6  ;;  %vm687_vm2 = vcmp.ge.s32.totalorder %v4063_v6, 0  ;;  %s3669_s8 = sshll.u32 %s3783_s17, 4  ;;  %s3670_s8 = int_to_ptr.vmem [resolvable:$false] %s3669_s8 }
  0x81   : > { %384 = vmatprep.subr.mxu0 %v367_v9  ;;  %3307 = vmatprep.subr.mxu1 %v367_v9  ;;  %v346_v30 = vld [vmem:[#allocation5 + $0x10] sm:$0xff]  ;;  %v345_v31 = vld [vmem:[#allocation5 + $0x8] sm:$0xff]  ;;  %v344_v32 = vld [vmem:[#allocation5] sm:$0xff]  ;;  %p3667_p8 = pnand %p3666_p4, %p3946_p5  ;;  %s3671_s4 = scalar_lea.vmem %s3670_s8, 4096 }
  0x82   : > { %385 = vmatpush1.msra.mxu0 %v366_v10  ;;  %3323 = vmatpush1.msra.mxu1 %v366_v10  ;;  %v320_v33 = vld [vmem:[%s3984_s16] sm:$0xff]  ;;  %v321_v35 = vld [vmem:[%s3984_s16 + $0x8] sm:$0xff]  ;;  %v322_v37 = vld [vmem:[%s3984_s16 + $0x10] sm:$0xff]  ;;  %p3672_p1 = scmp.lt.s32.totalorder %s8010_s13, %s3670_s8  ;;  %p3673_p2 = scmp.lt.s32.totalorder %s3671_s4, %s3665_s1 }
  0x83   : > { %386 = vmatprep.subr.mxu0 %v365_v11  ;;  %3308 = vmatprep.subr.mxu1 %v365_v11  ;;  %v336_v34 = vld [vmem:[%s3984_s16 + $0x80] sm:$0xff]  ;;  %v337_v36 = vld [vmem:[%s3984_s16 + $0x88] sm:$0xff]  ;;  %v338_v38 = vld [vmem:[%s3984_s16 + $0x90] sm:$0xff]  ;;  %p3668_p9 = pneg %p3667_p8 }
  0x84   : > { %387 = vmatpush1.msra.mxu0 %v364_v12  ;;  %3324 = vmatpush1.msra.mxu1 %v364_v12  ;;  %v323_v39 = vld [vmem:[%s3984_s16 + $0x18] sm:$0xff]  ;;  %v324_v41 = vld [vmem:[%s3984_s16 + $0x20] sm:$0xff]  ;;  %v325_v43 = vld [vmem:[%s3984_s16 + $0x28] sm:$0xff]  ;;  %v4074_v12 = vadd.s32 1, %v587_v63  ;;  %p3674_p12 = por %p3673_p2, %p3672_p1 }
  0x85   : > { %388 = vmatprep.subr.mxu0 %v363_v13  ;;  %3309 = vmatprep.subr.mxu1 %v363_v13  ;;  %v339_v40 = vld [vmem:[%s3984_s16 + $0x98] sm:$0xff]  ;;  %v340_v42 = vld [vmem:[%s3984_s16 + $0xa0] sm:$0xff]  ;;  %v341_v44 = vld [vmem:[%s3984_s16 + $0xa8] sm:$0xff] }
  0x86   : > { %389 = vmatpush1.msra.mxu0 %v362_v14  ;;  %3325 = vmatpush1.msra.mxu1 %v362_v14  ;;  %v326_v45 = vld [vmem:[%s3984_s16 + $0x30] sm:$0xff]  ;;  %v327_v47 = vld [vmem:[%s3984_s16 + $0x38] sm:$0xff]  ;;  %v328_v49 = vld [vmem:[%s3984_s16 + $0x40] sm:$0xff]  ;;  %8333 = vst [vmem:[#allocation24_spill] sm:$0xff] %v4074_v12  ;;  %vm847_vm3 = vcmp.lt.s32.totalorder %v4074_v12, 16  ;;  %p3675_p0 = pnand %p3674_p12, %p3668_p9 }
  0x87   : > { %390 = vmatprep.subr.mxu0 %v361_v15  ;;  %3310 = vmatprep.subr.mxu1 %v361_v15  ;;  %v342_v46 = vld [vmem:[%s3984_s16 + $0xb0] sm:$0xff]  ;;  %v343_v48 = vld [vmem:[%s3984_s16 + $0xb8] sm:$0xff]  ;;  %v329_v50 = vld [vmem:[%s3984_s16 + $0x48] sm:$0xff] }
  0x88   : > { %391 = vmatpush1.msra.mxu0 %v360_v16  ;;  %3326 = vmatpush1.msra.mxu1 %v360_v16  ;;  %v330_v51 = vld [vmem:[%s3984_s16 + $0x50] sm:$0xff]  ;;  %v331_v52 = vld [vmem:[%s3984_s16 + $0x58] sm:$0xff]  ;;  %v332_v53 = vld [vmem:[%s3984_s16 + $0x60] sm:$0xff] }
  0x89   : > { %392 = vmatprep.subr.mxu0 %v359_v17  ;;  %3311 = vmatprep.subr.mxu1 %v359_v17  ;;  %v333_v54 = vld [vmem:[%s3984_s16 + $0x68] sm:$0xff]  ;;  %v334_v55 = vld [vmem:[%s3984_s16 + $0x70] sm:$0xff]  ;;  %v335_v56 = vld [vmem:[%s3984_s16 + $0x78] sm:$0xff] }
  0x8a   : > { %393 = vmatpush1.msra.mxu0 %v358_v18  ;;  %3327 = vmatpush1.msra.mxu1 %v358_v18  ;;  %v902_v59 = vld [vmem:[#allocation7] sm:$0x3]  ;;  %v906_v62 = vld [vmem:[#allocation7 + $0x4] sm:$0x3]  ;;  %v904_v1 = vld [vmem:[#allocation7 + $0x2] sm:$0x3] }
  0x8b   : > { %394 = vmatprep.subr.mxu0 %v357_v19  ;;  %3312 = vmatprep.subr.mxu1 %v357_v19  ;;  %v910_v2 = vld [vmem:[#allocation7 + $0x8] sm:$0x3]  ;;  %v916_v3 = vld [vmem:[#allocation7 + $0xe] sm:$0x3]  ;;  %v908_v4 = vld [vmem:[#allocation7 + $0x6] sm:$0x3]  ;;  %v4059_v5 = vrot.slane %v906_v62, %v4049_v60  ;;  %v4066_v7 = vrot.slane %v904_v1, %v4049_v60  ;;  %v4069_v8 = vrot.slane %v904_v1, %v4052_v61 }
  0x8c   : > { %395 = vmatpush1.msra.mxu0 %v356_v20  ;;  %3328 = vmatpush1.msra.mxu1 %v356_v20  ;;  %v912_v9 = vld [vmem:[#allocation7 + $0xa] sm:$0x3]  ;;  %v914_v10 = vld [vmem:[#allocation7 + $0xc] sm:$0x3]  ;;  %v4072_v11 = vrot.slane %v902_v59, %v4052_v61  ;;  %v4077_v13 = vrot.slane %v910_v2, %v4049_v60  ;;  %v4080_v14 = vrot.slane %v910_v2, %v4052_v61  ;;  %v918_v15 = vld [vmem:[#allocation7 + $0x10] sm:$0x3] }
  0x8d   : > { %396 = vmatprep.subr.mxu0 %v355_v21  ;;  %3313 = vmatprep.subr.mxu1 %v355_v21  ;;  %v4083_v16 = vrot.slane %v906_v62, %v4052_v61  ;;  %v4086_v17 = vrot.slane %v916_v3, %v4049_v60  ;;  %v4089_v18 = vrot.slane %v916_v3, %v4052_v61  ;;  %v4098_v21 = vmul.f32 0.0, %v4066_v7 }
  0x8e   : > { %397 = vmatpush1.msra.mxu0 %v354_v22  ;;  %3329 = vmatpush1.msra.mxu1 %v354_v22  ;;  %v4095_v20 = vrot.slane %v908_v4, %v4049_v60  ;;  %v4101_v22 = vmul.f32 0.0, %v4059_v5 }
  0x8f   : > { %398 = vmatprep.subr.mxu0 %v353_v23  ;;  %3314 = vmatprep.subr.mxu1 %v353_v23  ;;  %8334 = vst [vmem:[#allocation25_spill] sm:$0xff] %v4083_v16  ;;  %8335 = vst [vmem:[#allocation26_spill] sm:$0xff] %v4089_v18  ;;  %v4104_v23 = vrot.slane %v912_v9, %v4049_v60 }
  0x90   : > { %399 = vmatpush1.msra.mxu0 %v352_v24  ;;  %3330 = vmatpush1.msra.mxu1 %v352_v24  ;;  %v4107_v24 = vrot.slane %v914_v10, %v4049_v60 }
  0x91   : > { %400 = vmatprep.subr.mxu0 %v351_v25  ;;  %3315 = vmatprep.subr.mxu1 %v351_v25  ;;  %v2130_v25 = vld [vmem:[#allocation8 + $0x2] sm:$0x3] }
  0x92   : > { %401 = vmatpush1.msra.mxu0 %v350_v26  ;;  %3331 = vmatpush1.msra.mxu1 %v350_v26  ;;  %v4112_v26 = vrot.slane %v918_v15, %v4049_v60 }
  0x93   : > { %402 = vmatprep.subr.mxu0 %v349_v27  ;;  %3316 = vmatprep.subr.mxu1 %v349_v27  ;;  %v4115_v27 = vmul.f32 0.0, %v4072_v11 }
  0x94   : > { %403 = vmatpush1.msra.mxu0 %v348_v28  ;;  %3332 = vmatpush1.msra.mxu1 %v348_v28  ;;  %v4118_v28 = vmul.f32 0.0, %v4069_v8 }
  0x95   : > { %404 = vmatprep.subr.mxu0 %v347_v29  ;;  %3317 = vmatprep.subr.mxu1 %v347_v29  ;;  %v4121_v29 = vrot.slane %v908_v4, %v4052_v61 }
  0x96   : > { %405 = vmatpush1.msra.mxu0 %v346_v30  ;;  %3333 = vmatpush1.msra.mxu1 %v346_v30  ;;  %v2136_v30 = vld [vmem:[#allocation8 + $0x8] sm:$0x3] }
  0x97   : > { %406 = vmatprep.subr.mxu0 %v345_v31  ;;  %3318 = vmatprep.subr.mxu1 %v345_v31  ;;  %v2142_v31 = vld [vmem:[#allocation8 + $0xe] sm:$0x3] }
  0x98   : > { %407 = vmatpush1.msra.mxu0 %v344_v32  ;;  %3334 = vmatpush1.msra.mxu1 %v344_v32  ;;  %v4124_v32 = vmul.f32 0.0, %v4083_v16 }
  0x99   : > { %441 = vmatmul.mubr.f32.vlgmr.msra.gmra.mxu0 %v320_v33  ;;  %537 = vmatmul.mubr.f32.vlgmr.msra.gmra.mxu1 %v336_v34  ;;  %v4127_v33 = vrot.slane %v912_v9, %v4052_v61  ;;  %v4130_v34 = vrot.slane %v914_v10, %v4052_v61 }
  0x9a   : > { %446 = vmatprep.mubr.f32.mxu0 %v3782_v0  ;;  %542 = vmatprep.mubr.f32.mxu1 %v3782_v0 }
  0x9b   : > { %8336 = vst [vmem:[#allocation27_spill] sm:$0xff] %v4127_v33 }
  0x9d   : > { %447 = vmatmul.mubr.f32.gmra.mxu0 %v321_v35  ;;  %543 = vmatmul.mubr.f32.gmra.mxu1 %v337_v36  ;;  %v4132_v35 = vstv %s3206_s28  ;;  %v4135_v36 = vrot.slane %v918_v15, %v4052_v61 }
  0x9e   : > { %452 = vmatprep.mubr.f32.mxu0 %v3782_v0  ;;  %548 = vmatprep.mubr.f32.mxu1 %v3782_v0  ;;  %8337 = vst [vmem:[#allocation28_spill] sm:$0xff] %v4132_v35  ;;  %vm1780_vm4 = vcmp.ge.s32.totalorder %v4132_v35, 0  ;;  %vm1792_vm5 = vcmp.lt.s32.totalorder %v4132_v35, 16 }
  0x9f   : > { %8338 = vst [vmem:[#allocation29_spill] sm:$0xff] %v4135_v36  ;;  %vm4758_vm6 = vmand %vm1780_vm4, %vm1792_vm5 }
  0xa1   : > { %453 = vmatmul.mubr.f32.gmra.mxu0 %v322_v37  ;;  %549 = vmatmul.mubr.f32.gmra.mxu1 %v338_v38  ;;  %v4138_v37 = vadd.s32 1, %v4132_v35  ;;  %v4141_v38 = vrot.slane %v2130_v25, %v4049_v60 }
  0xa2   : > { %458 = vmatprep.mubr.f32.mxu0 %v3782_v0  ;;  %554 = vmatprep.mubr.f32.mxu1 %v3782_v0 }
  0xa3   : > { %8339 = vst [vmem:[#allocation30_spill] sm:$0xff] %v4138_v37  ;;  %8340 = vst [vmem:[#allocation31_spill] sm:$0xff] %v4141_v38 }
  0xa5   : > { %459 = vmatmul.mubr.f32.gmra.mxu0 %v323_v39  ;;  %555 = vmatmul.mubr.f32.gmra.mxu1 %v339_v40  ;;  %v4144_v39 = vadd.s32 9, %v4132_v35  ;;  %v4147_v40 = vrot.slane %v2136_v30, %v4049_v60 }
  0xa6   : > { %464 = vmatprep.mubr.f32.mxu0 %v3782_v0  ;;  %560 = vmatprep.mubr.f32.mxu1 %v3782_v0 }
  0xa7   : > { %8341 = vst [vmem:[#allocation32_spill] sm:$0xff] %v4144_v39  ;;  %8342 = vst [vmem:[#allocation33_spill] sm:$0xff] %v4147_v40 }
  0xa9   : > { %465 = vmatmul.mubr.f32.gmra.mxu0 %v324_v41  ;;  %561 = vmatmul.mubr.f32.gmra.mxu1 %v340_v42  ;;  %v4150_v41 = vrot.slane %v2142_v31, %v4049_v60  ;;  %v4153_v42 = vrot.slane %v2130_v25, %v4052_v61 }
  0xaa   : > { %470 = vmatprep.mubr.f32.mxu0 %v3782_v0  ;;  %566 = vmatprep.mubr.f32.mxu1 %v3782_v0 }
  0xab   : > { %8343 = vst [vmem:[#allocation34_spill] sm:$0xff] %v4150_v41  ;;  %8344 = vst [vmem:[#allocation35_spill] sm:$0xff] %v4153_v42 }
  0xad   : > { %471 = vmatmul.mubr.f32.gmra.mxu0 %v325_v43  ;;  %567 = vmatmul.mubr.f32.gmra.mxu1 %v341_v44  ;;  %v4156_v43 = vrot.slane %v2136_v30, %v4052_v61  ;;  %v2138_v44 = vld [vmem:[#allocation8 + $0xa] sm:$0x3] }
  0xae   : > { %476 = vmatprep.mubr.f32.mxu0 %v3782_v0  ;;  %572 = vmatprep.mubr.f32.mxu1 %v3782_v0 }
  0xaf   : > { %8345 = vst [vmem:[#allocation36_spill] sm:$0xff] %v4156_v43 }
  0xb1   : > { %477 = vmatmul.mubr.f32.gmra.mxu0 %v326_v45  ;;  %573 = vmatmul.mubr.f32.gmra.mxu1 %v342_v46  ;;  %v2140_v45 = vld [vmem:[#allocation8 + $0xc] sm:$0x3] }
  0xb2   : > { %482 = vmatprep.mubr.f32.mxu0 %v3782_v0  ;;  %578 = vmatprep.mubr.f32.mxu1 %v3782_v0 }
  0xb5   : > { %483 = vmatmul.mubr.f32.gmra.mxu0 %v327_v47  ;;  %579 = vmatmul.mubr.f32.gmra.mxu1 %v343_v48  ;;  %v4163_v48 = vrot.slane %v2142_v31, %v4052_v61 }
  0xb6   : > { %488 = vmatprep.mubr.f32.mxu0 %v3782_v0 }
  0xb7   : > { %8348 = vst [vmem:[#allocation39_spill] sm:$0xff] %v4163_v48 }
  0xb9   : > { %489 = vmatmul.mubr.f32.gmra.mxu0 %v328_v49  ;;  %v4166_v49 = vmul.f32 0.0, %v4107_v24 }
  0xba   : > { %494 = vmatprep.mubr.f32.mxu0 %v3782_v0 }
  0xbb   : > { %8349 = vst [vmem:[#allocation40_spill] sm:$0xff] %v4166_v49 }
  0xbd   : > { %495 = vmatmul.mubr.f32.gmra.mxu0 %v329_v50  ;;  %v4169_v50 = vmul.f32 0.0, %v4086_v17 }
  0xbe   : > { %500 = vmatprep.mubr.f32.mxu0 %v3782_v0 }
  0xbf   : > { %8350 = vst [vmem:[#allocation41_spill] sm:$0xff] %v4169_v50 }
  0xc1   : > { %501 = vmatmul.mubr.f32.gmra.mxu0 %v330_v51  ;;  %v4172_v51 = vadd.s32 10, %v4132_v35 }
  0xc2   : > { %506 = vmatprep.mubr.f32.mxu0 %v3782_v0 }
  0xc3   : > { %8351 = vst [vmem:[#allocation42_spill] sm:$0xff] %v4172_v51 }
  0xc5   : > { %507 = vmatmul.mubr.f32.gmra.mxu0 %v331_v52  ;;  %v4175_v52 = vmul.f32 0.0, %v4112_v26 }
  0xc6   : > { %512 = vmatprep.mubr.f32.mxu0 %v3782_v0 }
  0xc7   : > { %8352 = vst [vmem:[#allocation43_spill] sm:$0xff] %v4175_v52 }
  0xc9   : > { %513 = vmatmul.mubr.f32.gmra.mxu0 %v332_v53  ;;  %v4178_v53 = vadd.s32 11, %v4132_v35 }
  0xca   : > { %518 = vmatprep.mubr.f32.mxu0 %v3782_v0 }
  0xcb   : > { %8353 = vst [vmem:[#allocation44_spill] sm:$0xff] %v4178_v53 }
  0xcd   : > { %519 = vmatmul.mubr.f32.gmra.mxu0 %v333_v54  ;;  %v4181_v54 = vrot.slane %v2138_v44, %v4049_v60 }
  0xce   : > { %524 = vmatprep.mubr.f32.mxu0 %v3782_v0 }
  0xcf   : > { %8354 = vst [vmem:[#allocation45_spill] sm:$0xff] %v4181_v54 }
  0xd1   : > { %525 = vmatmul.mubr.f32.gmra.mxu0 %v334_v55  ;;  %v4184_v55 = vrot.slane %v2140_v45, %v4049_v60 }
  0xd2   : > { %530 = vmatprep.mubr.f32.mxu0 %v3782_v0  ;;  %v4056_v0 = vrot.slane %v902_v59, %v4049_v60 }
  0xd3   : > { %8355 = vst [vmem:[#allocation46_spill] sm:$0xff] %v4184_v55 }
  0xd4   : > { %v4092_v19 = vmul.f32 0.0, %v4056_v0 }
  0xd5   : > { %531 = vmatmul.mubr.f32.gmra.mxu0 %v335_v56 }
 0x159   : > { %v4158_v46 = vpop.f32.mrf.mxu0  ;;  %v4160_v47 = vpop.f32.mrf.mxu1 }
 0x15a   : > { %8346 = vst [vmem:[#allocation37_spill] sm:$0xff] %v4158_v46  ;;  %8347 = vst [vmem:[#allocation38_spill] sm:$0xff] %v4160_v47  ;;  %v4190_v59 = vmul.f32 %v4066_v7, %v4158_v46  ;;  %v4200_v3 = vmul.f32 %v4077_v13, %v4160_v47  ;;  %v4204_v4 = vmul.f32 %v4066_v7, %v4160_v47  ;;  %v8366_v62 = vrot.slane %v4158_v46, 7 }
 0x15b   : > { %v4193_v63 = vpop.f32.mrf.mxu0  ;;  %v4195_v1 = vpop.f32.mrf.mxu1  ;;  %v4208_v9 = vmul.f32 %v4086_v17, %v4160_v47 }
 0x15c   : > { %8356 = vst [vmem:[#allocation47_spill] sm:$0xff] %v4190_v59  ;;  %8357 = vst [vmem:[#allocation48_spill] sm:$0xff] %v4193_v63  ;;  %v4214_v25 = vmul.f32 %v4069_v8, %v4193_v63  ;;  %v4228_v15 = vmul.f32 %v4080_v14, %v4195_v1  ;;  %v4232_v30 = vmul.f32 %v4069_v8, %v4195_v1 }
 0x15d   : > { %8358 = vst [vmem:[#allocation49_spill] sm:$0xff] %v4195_v1  ;;  %8359 = vst [vmem:[#allocation50_spill] sm:$0xff] %v4200_v3  ;;  %v4217_v31 = vpop.f32.mrf.mxu0  ;;  %v4219_v44 = vpop.f32.mrf.mxu1  ;;  %v4238_v45 = vmul.f32 %v4089_v18, %v4195_v1 }
 0x15e   : > { %8360 = vst [vmem:[#allocation51_spill] sm:$0xff] %v4204_v4  ;;  %8361 = vst [vmem:[#allocation52_spill] sm:$0xff] %v4208_v9  ;;  %v590_v2 = vrot.slane %v4217_v31, 7  ;;  %v930_v10 = vmul.f32 %v4077_v13, %v4217_v31  ;;  %v8367_v4 = vrot.slane %v4217_v31, 1  ;;  %v4256_v56 = vmul.f32 %v4066_v7, %v4217_v31 }
 0x15f   : > { %8362 = vst [vmem:[#allocation53_spill] sm:$0xff] %v4214_v25  ;;  %8363 = vst [vmem:[#allocation54_spill] sm:$0xff] %v4228_v15  ;;  %v8368_v15 = vrot.slane %v4158_v46, 1  ;;  %v4251_v3 = vpop.f32.mrf.mxu0  ;;  %v8372_v25 = vrot.slane %v4219_v44, 1  ;;  %v4289_v54 = vpop.f32.mrf.mxu1  ;;  %v8400_v53 = vrot.slane %v4219_v44, 1 }
 0x160   : > { %8364 = vst [vmem:[#allocation55_spill] sm:$0xff] %v4232_v30  ;;  %8365 = vst [vmem:[#allocation56_spill] sm:$0xff] %v4238_v45  ;;  %v681_v9 = vsel %vm636_vm0, %v8366_v62, %v590_v2  ;;  %v1029_v57 = vadd.f32 %v4092_v19, %v930_v10  ;;  %v8369_v45 = vrot.slane %v4219_v44, 7  ;;  %v8370_v62 = vrot.slane %v4160_v47, 7 }
 0x161   : > { %v838_v30 = vsel %vm793_vm1, %v8368_v15, %v8367_v4  ;;  %v4268_v4 = vmul.f32 %v4077_v13, %v4219_v44  ;;  %v4272_v19 = vmul.f32 %v4066_v7, %v4219_v44  ;;  %v4276_v10 = vmul.f32 %v4056_v0, %v681_v9 }
 0x162   : > { %v4264_v61 = vsel %vm636_vm0, %v8370_v62, %v8369_v45  ;;  %v1128_v15 = vadd.f32 %v4098_v21, %v1029_v57  ;;  %v8373_v45 = vrot.slane %v4160_v47, 1  ;;  %v4292_v55 = vmul.f32 %v4059_v5, %v838_v30 }
 0x163   : > { %8371 = vst [vmem:[#allocation57_spill] sm:$0xff] %v4268_v4  ;;  %v4287_v4 = vmul.f32 %v4086_v17, %v4219_v44  ;;  %v1282_v60 = vmul.f32 %v4095_v20, %v681_v9  ;;  %v4297_v21 = vmul.f32 %v4095_v20, %v4264_v61  ;;  %v8092_v57 = vrot.slane %v4251_v3, 7 }
 0x164   : > { %v806_v62 = vsel %vm793_vm1, %v8373_v45, %v8372_v25  ;;  %8375 = vst [vmem:[#allocation59_spill] sm:$0xff] %v4292_v55  ;;  %v1227_v47 = vadd.f32 %v4101_v22, %v1128_v15  ;;  %v4303_v25 = vmul.f32 %v4107_v24, %v4264_v61  ;;  %v931_v30 = vmul.f32 %v4080_v14, %v4251_v3 }
 0x165   : > { %8374 = vst [vmem:[#allocation58_spill] sm:$0xff] %v4287_v4  ;;  %8376 = vst [vmem:[#allocation60_spill] sm:$0xff] %v4297_v21  ;;  %v4309_v4 = vmul.f32 %v4059_v5, %v806_v62  ;;  %v8379_v9 = vrot.slane %v4193_v63, 7  ;;  %v8095_v22 = vrot.slane %v4289_v54, 7  ;;  %v4323_v45 = vmul.f32 %v4112_v26, %v806_v62 }
 0x166   : > { %8377 = vst [vmem:[#allocation61_spill] sm:$0xff] %v4303_v25  ;;  %v4320_v25 = vmul.f32 %v4104_v23, %v806_v62  ;;  %v8382_v52 = vrot.slane %v4251_v3, 1  ;;  %v1030_v50 = vadd.f32 %v4115_v27, %v931_v30  ;;  %v8384_v62 = vrot.slane %v4195_v1, 7 }
 0x167   : > { %8378 = vst [vmem:[#allocation62_spill] sm:$0xff] %v4309_v4  ;;  %v682_v21 = vsel %vm636_vm0, %v8379_v9, %v8092_v57  ;;  %8381 = vst [vmem:[#allocation64_spill] sm:$0xff] %v4323_v45  ;;  %v8383_v4 = vrot.slane %v4193_v63, 1  ;;  %v4332_v9 = vpop.f32.mrf.mxu0  ;;  %v4336_v57 = vmul.f32 %v4069_v8, %v4251_v3  ;;  %v8386_v45 = vrot.slane %v4289_v54, 1 }
 0x168   : > { %8380 = vst [vmem:[#allocation63_spill] sm:$0xff] %v4320_v25  ;;  %v4344_v15 = vsel %vm636_vm0, %v8384_v62, %v8095_v22  ;;  %v1326_v30 = vadd.f32 %v1282_v60, %v1227_v47  ;;  %v4357_v25 = vmul.f32 %v4072_v11, %v682_v21  ;;  %v1129_v63 = vadd.f32 %v4118_v28, %v1030_v50  ;;  %v4363_v22 = vpop.f32.mrf.mxu1 }
 0x169   : > { %v839_v55 = vsel %vm793_vm1, %v8383_v4, %v8382_v52  ;;  %8385 = vst [vmem:[#allocation65_spill] sm:$0xff] %v4344_v15  ;;  %v8387_v52 = vrot.slane %v4195_v1, 1  ;;  %v4354_v4 = vmul.f32 %v4080_v14, %v4289_v54  ;;  %v1283_v1 = vmul.f32 %v4121_v29, %v682_v21 }
 0x16a   : > { %v4361_v62 = vmul.f32 %v4083_v16, %v839_v55  ;;  %v592_v60 = vrot.slane %v4332_v9, 7  ;;  %v1228_v47 = vadd.f32 %v4124_v32, %v1129_v63  ;;  %v4380_v50 = vmul.f32 %v4130_v34, %v4344_v15 }
 0x16b   : > { %v807_v27 = vsel %vm793_vm1, %v8387_v52, %v8386_v45  ;;  %8388 = vst [vmem:[#allocation66_spill] sm:$0xff] %v4354_v4  ;;  %v4368_v45 = vmul.f32 %v4069_v8, %v4289_v54  ;;  %v749_v55 = vrot.slane %v4332_v9, 1  ;;  %v4385_v21 = vmul.f32 %v4089_v18, %v4289_v54 }
 0x16c   : > { %8389 = vst [vmem:[#allocation67_spill] sm:$0xff] %v4361_v62  ;;  %v4371_v52 = vmul.f32 %v4083_v16, %v807_v27  ;;  %v4376_v28 = vmul.f32 %v4127_v33, %v807_v27  ;;  %8392 = vst [vmem:[#allocation70_spill] sm:$0xff] %v4380_v50  ;;  %v8099_v4 = vrot.slane %v4363_v22, 7  ;;  %v4392_v63 = vmul.f32 %v4135_v36, %v807_v27 }
 0x16d   : > { %8393 = vst [vmem:[#allocation71_spill] sm:$0xff] %v4385_v21  ;;  %v8395_v50 = vrot.slane %v4217_v31, 1  ;;  %v4402_v21 = vmul.f32 %v4077_v13, %v4332_v9  ;;  %v4410_v27 = vmul.f32 %v4066_v7, %v4332_v9  ;;  %v8397_v31 = vrot.slane %v4219_v44, 7 }
 0x16e   : > { %8390 = vst [vmem:[#allocation68_spill] sm:$0xff] %v4371_v52  ;;  %8391 = vst [vmem:[#allocation69_spill] sm:$0xff] %v4376_v28  ;;  %v679_v52 = vsel %vm636_vm0, %v590_v2, %v592_v60  ;;  %v4404_v2 = vpop.f32.mrf.mxu0  ;;  %v8399_v9 = vrot.slane %v4363_v22, 1  ;;  %v8408_v46 = vrot.slane %v4251_v3, 7  ;;  %v8426_v37 = vrot.slane %v4363_v22, 1 }
 0x16f   : > { %8394 = vst [vmem:[#allocation72_spill] sm:$0xff] %v4392_v63  ;;  %v701_v28 = vsel %vm687_vm2, %v679_v52, 0.0  ;;  %v836_v62 = vsel %vm793_vm1, %v8395_v50, %v749_v55  ;;  %8396 = vst [vmem:[#allocation73_spill] sm:$0xff] %v4402_v21  ;;  %v647_v52 = vsel %vm636_vm0, %v8397_v31, %v8099_v4  ;;  %v4420_v50 = vmul.f32 %v4077_v13, %v4363_v22 }
 0x170   : > { %v856_v32 = vsel %vm847_vm3, %v836_v62, 0.0  ;;  %v1327_v63 = vadd.f32 %v1283_v1, %v1228_v47  ;;  %v4425_v62 = vsel %vm687_vm2, %v647_v52, 0.0  ;;  %v804_v49 = vsel %vm793_vm1, %v8400_v53, %v8399_v9  ;;  %v4445_v52 = vpop.f32.mrf.mxu1  ;;  %v4462_v9 = vpop.f32.mrf.mxu0 }
 0x171   : > { %8398 = vst [vmem:[#allocation74_spill] sm:$0xff] %v4420_v50  ;;  %v1381_v59 = vmul.f32 %v4104_v23, %v856_v32  ;;  %v4434_v31 = vmul.f32 %v4056_v0, %v701_v28  ;;  %v4437_v4 = vmul.f32 %v4095_v20, %v701_v28  ;;  %v888_v1 = vsel %vm847_vm3, %v804_v49, 0.0  ;;  %8402 = vst [vmem:[#allocation76_spill] sm:$0xff] %v4445_v52 }
 0x172   : > { %v4443_v47 = vmul.f32 %v4066_v7, %v4363_v22  ;;  %v4448_v44 = vmul.f32 %v4059_v5, %v856_v32  ;;  %v4452_v53 = vmul.f32 %v4095_v20, %v4425_v62  ;;  %v4456_v28 = vmul.f32 %v4107_v24, %v4425_v62  ;;  %v4549_v41 = vpop.f32.mrf.mxu1 }
 0x173   : > { %8401 = vst [vmem:[#allocation75_spill] sm:$0xff] %v4437_v4  ;;  %v4460_v49 = vmul.f32 %v4086_v17, %v4363_v22  ;;  %v1425_v50 = vadd.f32 %v1381_v59, %v1326_v30  ;;  %v4465_v4 = vmul.f32 %v4059_v5, %v888_v1  ;;  %v593_v32 = vrot.slane %v4404_v2, 7 }
 0x174   : > { %8403 = vst [vmem:[#allocation77_spill] sm:$0xff] %v4452_v53  ;;  %8404 = vst [vmem:[#allocation78_spill] sm:$0xff] %v4456_v28  ;;  %v8104_v21 = vrot.slane %v4404_v2, 1  ;;  %v4470_v53 = vmul.f32 %v4104_v23, %v888_v1  ;;  %v4473_v48 = vmul.f32 %v4112_v26, %v888_v1  ;;  %v8409_v30 = vrot.slane %v4251_v3, 1 }
 0x175   : > { %8405 = vst [vmem:[#allocation79_spill] sm:$0xff] %v4460_v49  ;;  %v680_v59 = vsel %vm636_vm0, %v8408_v46, %v593_v32  ;;  %v4489_v1 = vmul.f32 %v4080_v14, %v4404_v2  ;;  %v8411_v46 = vrot.slane %v4445_v52, 7  ;;  %v966_v38 = vmul.f32 %v4077_v13, %v4549_v41 }
 0x176   : > { %8406 = vst [vmem:[#allocation80_spill] sm:$0xff] %v4470_v53  ;;  %8407 = vst [vmem:[#allocation81_spill] sm:$0xff] %v4473_v48  ;;  %v837_v43 = vsel %vm793_vm1, %v8409_v30, %v8104_v21  ;;  %v702_v49 = vsel %vm687_vm2, %v680_v59, 0.0  ;;  %v8412_v53 = vrot.slane %v4289_v54, 7  ;;  %v8413_v30 = vrot.slane %v4445_v52, 1 }
 0x177   : > { %8410 = vst [vmem:[#allocation82_spill] sm:$0xff] %v4489_v1  ;;  %v857_v48 = vsel %vm847_vm3, %v837_v43, 0.0  ;;  %v8414_v21 = vrot.slane %v4289_v54, 1  ;;  %v4510_v59 = vmul.f32 %v4069_v8, %v4404_v2  ;;  %v4515_v1 = vmul.f32 %v4080_v14, %v4445_v52 }
 0x178   : > { %v648_v3 = vsel %vm636_vm0, %v8412_v53, %v8411_v46  ;;  %v1382_v43 = vmul.f32 %v4127_v33, %v857_v48  ;;  %v4519_v53 = vmul.f32 %v4069_v8, %v4445_v52  ;;  %v8418_v46 = vrot.slane %v4462_v9, 7 }
 0x179   : > { %v805_v28 = vsel %vm793_vm1, %v8414_v21, %v8413_v30  ;;  %8415 = vst [vmem:[#allocation83_spill] sm:$0xff] %v4515_v1  ;;  %v4523_v54 = vsel %vm687_vm2, %v648_v3, 0.0  ;;  %v8109_v1 = vrot.slane %v4462_v9, 1  ;;  %v4537_v42 = vmul.f32 %v4072_v11, %v702_v49 }
 0x17a   : > { %8416 = vst [vmem:[#allocation84_spill] sm:$0xff] %v4519_v53  ;;  %v4527_v21 = vsel %vm847_vm3, %v805_v28, 0.0  ;;  %v4533_v30 = vsel %vm636_vm0, %v592_v60, %v8418_v46  ;;  %v4540_v51 = vmul.f32 %v4083_v16, %v857_v48  ;;  %v4543_v3 = vmul.f32 %v4121_v29, %v702_v49 }
 0x17b   : > { %8417 = vst [vmem:[#allocation85_spill] sm:$0xff] %v4527_v21  ;;  %v4547_v28 = vmul.f32 %v4089_v18, %v4445_v52  ;;  %v1426_v40 = vadd.f32 %v1382_v43, %v1327_v63  ;;  %v4553_v60 = vmul.f32 %v4083_v16, %v4527_v21  ;;  %v834_v48 = vsel %vm793_vm1, %v749_v55, %v8109_v1 }
 0x17c   : > { %8419 = vst [vmem:[#allocation86_spill] sm:$0xff] %v4543_v3  ;;  %v934_v49 = vmul.f32 %v4077_v13, %v4462_v9  ;;  %v4563_v46 = vmul.f32 %v4121_v29, %v4523_v54  ;;  %v4571_v63 = vmul.f32 %v4135_v36, %v4527_v21  ;;  %v1480_v43 = vmul.f32 %v4107_v24, %v4533_v30  ;;  %v4575_v3 = vpop.f32.mrf.mxu0 }
 0x17d   : > { %8420 = vst [vmem:[#allocation87_spill] sm:$0xff] %v4547_v28  ;;  %v4567_v28 = vmul.f32 %v4130_v34, %v4523_v54  ;;  %v4580_v1 = vmul.f32 %v4066_v7, %v4462_v9  ;;  %v4588_v21 = vmul.f32 %v4095_v20, %v4533_v30  ;;  %v1579_v39 = vmul.f32 %v4086_v17, %v4462_v9 }
 0x17e   : > { %8421 = vst [vmem:[#allocation88_spill] sm:$0xff] %v4563_v46  ;;  %8423 = vst [vmem:[#allocation90_spill] sm:$0xff] %v4571_v63  ;;  %v1033_v55 = vadd.f32 %v4276_v10, %v934_v49  ;;  %v4583_v46 = vmul.f32 %v4059_v5, %v834_v48  ;;  %v1524_v63 = vadd.f32 %v1480_v43, %v1425_v50  ;;  %v8114_v50 = vrot.slane %v4575_v3, 7 }
 0x17f   : > { %8422 = vst [vmem:[#allocation89_spill] sm:$0xff] %v4567_v28  ;;  %8424 = vst [vmem:[#allocation91_spill] sm:$0xff] %v4580_v1  ;;  %v8115_v28 = vrot.slane %v4549_v41, 1  ;;  %v1021_v10 = vmul.f32 %v4056_v0, %v4264_v61  ;;  %v4605_v43 = vmul.f32 %v4104_v23, %v834_v48  ;;  %v4614_v53 = vmul.f32 %v4086_v17, %v4549_v41 }
 0x180   : > { %8425 = vst [vmem:[#allocation92_spill] sm:$0xff] %v4588_v21  ;;  %v1132_v49 = vadd.f32 %v4256_v56, %v1033_v55  ;;  %v4610_v56 = vmul.f32 %v4066_v7, %v4549_v41  ;;  %v1623_v55 = vadd.f32 %v1579_v39, %v1524_v63  ;;  %v935_v39 = vmul.f32 %v4080_v14, %v4575_v3  ;;  %v4632_v63 = vpop.f32.mrf.mxu1 }
 0x181   : > { %v802_v1 = vsel %vm793_vm1, %v8426_v37, %v8115_v28  ;;  %8427 = vst [vmem:[#allocation93_spill] sm:$0xff] %v4605_v43  ;;  %v1065_v61 = vadd.f32 %v1021_v10, %v966_v38  ;;  %8428 = vst [vmem:[#allocation94_spill] sm:$0xff] %v4614_v53  ;;  %v4620_v37 = vsel %vm636_vm0, %v593_v32, %v8114_v50  ;;  %v4648_v28 = vpop.f32.mrf.mxu0  ;;  %v8433_v53 = vrot.slane %v4575_v3, 1 }
 0x182   : > { %v4625_v38 = vmul.f32 %v4059_v5, %v802_v1  ;;  %v4628_v10 = vmul.f32 %v4104_v23, %v802_v1  ;;  %8430 = vst [vmem:[#allocation96_spill] sm:$0xff] %v4632_v63  ;;  %v4637_v32 = vadd.f32 %v4448_v44, %v1132_v49  ;;  %v1481_v50 = vmul.f32 %v4130_v34, %v4620_v37 }
 0x183   : > { %v1164_v21 = vadd.f32 %v4272_v19, %v1065_v61  ;;  %v4640_v19 = vmul.f32 %v4112_v26, %v802_v1  ;;  %v4644_v61 = vmul.f32 %v4069_v8, %v4575_v3  ;;  %v8434_v44 = vrot.slane %v4404_v2, 1 }
 0x184   : > { %8429 = vst [vmem:[#allocation95_spill] sm:$0xff] %v4628_v10  ;;  %v1034_v49 = vadd.f32 %v4357_v25, %v935_v39  ;;  %v1525_v10 = vadd.f32 %v1481_v50, %v1426_v40  ;;  %v8118_v43 = vrot.slane %v4632_v63, 1  ;;  %v8435_v40 = vrot.slane %v4445_v52, 1 }
 0x185   : > { %8431 = vst [vmem:[#allocation97_spill] sm:$0xff] %v4640_v19  ;;  %8432 = vst [vmem:[#allocation98_spill] sm:$0xff] %v4644_v61  ;;  %v4651_v48 = vadd.f32 %v4465_v4, %v1164_v21  ;;  %v835_v1 = vsel %vm793_vm1, %v8434_v44, %v8433_v53  ;;  %v4662_v19 = vmul.f32 %v4121_v29, %v4620_v37 }
 0x186   : > { %v967_v4 = vmul.f32 %v4080_v14, %v4632_v63  ;;  %v1022_v21 = vmul.f32 %v4072_v11, %v4344_v15  ;;  %v1133_v2 = vadd.f32 %v4336_v57, %v1034_v49  ;;  %v1580_v53 = vmul.f32 %v4089_v18, %v4575_v3 }
 0x187   : > { %v4675_v44 = vmul.f32 %v4083_v16, %v835_v1  ;;  %v803_v50 = vsel %vm793_vm1, %v8435_v40, %v8118_v43  ;;  %v8119_v57 = vrot.slane %v4648_v28, 1  ;;  %v4685_v49 = vmul.f32 %v4127_v33, %v835_v1 }
 0x188   : > { %v1066_v15 = vadd.f32 %v1022_v21, %v967_v4  ;;  %v4687_v61 = vadd.f32 %v1580_v53, %v1525_v10  ;;  %v4691_v25 = vmul.f32 %v4069_v8, %v4632_v63  ;;  %v4695_v39 = vmul.f32 %v4089_v18, %v4632_v63 }
 0x189   : > { %8436 = vst [vmem:[#allocation99_spill] sm:$0xff] %v4685_v49  ;;  %v8439_v40 = vrot.slane %v4648_v28, 7  ;;  %v8440_v4 = vrot.slane %v4462_v9, 7  ;;  %v8441_v10 = vrot.slane %v4462_v9, 1  ;;  %v936_v53 = vmul.f32 %v4077_v13, %v4648_v28  ;;  %v4724_v9 = vpop.f32.mrf.mxu1 }
 0x18a   : > { %8437 = vst [vmem:[#allocation100_spill] sm:$0xff] %v4691_v25  ;;  %8438 = vst [vmem:[#allocation101_spill] sm:$0xff] %v4695_v39  ;;  %v1165_v52 = vadd.f32 %v4368_v45, %v1066_v15  ;;  %v4713_v43 = vadd.f32 %v4540_v51, %v1133_v2  ;;  %v4716_v15 = vmul.f32 %v4083_v16, %v803_v50 }
 0x18b   : > { %v675_v1 = vsel %vm636_vm0, %v8440_v4, %v8439_v40  ;;  %v832_v21 = vsel %vm793_vm1, %v8441_v10, %v8119_v57  ;;  %v4730_v10 = vmul.f32 %v4127_v33, %v803_v50  ;;  %v4733_v51 = vmul.f32 %v4135_v36, %v803_v50  ;;  %v4736_v57 = vpop.f32.mrf.mxu0 }
 0x18c   : > { %v4720_v45 = vsel %vm687_vm2, %v675_v1, 0.0  ;;  %v860_v40 = vsel %vm847_vm3, %v832_v21, 0.0  ;;  %v4727_v4 = vadd.f32 %v4553_v60, %v1165_v52  ;;  %v1035_v2 = vadd.f32 %v4434_v31, %v936_v53 }
 0x18d   : > { %8443 = vst [vmem:[#allocation103_spill] sm:$0xff] %v4730_v10  ;;  %8444 = vst [vmem:[#allocation104_spill] sm:$0xff] %v4733_v51  ;;  %v4740_v1 = vmul.f32 %v4066_v7, %v4648_v28  ;;  %v4743_v21 = vmul.f32 %v4059_v5, %v860_v40  ;;  %v4747_v52 = vmul.f32 %v4086_v17, %v4648_v28  ;;  %v8123_v53 = vrot.slane %v4724_v9, 1 }
 0x18e   : > { %8442 = vst [vmem:[#allocation102_spill] sm:$0xff] %v4727_v4  ;;  %v1678_v60 = vmul.f32 %v4112_v26, %v860_v40  ;;  %v4752_v50 = vmul.f32 %v4095_v20, %v4720_v45  ;;  %v968_v39 = vmul.f32 %v4077_v13, %v4724_v9  ;;  %v1023_v51 = vmul.f32 %v4056_v0, %v4425_v62 }
 0x18f   : > { %8445 = vst [vmem:[#allocation105_spill] sm:$0xff] %v4740_v1  ;;  %8446 = vst [vmem:[#allocation106_spill] sm:$0xff] %v4747_v52  ;;  %v1134_v10 = vadd.f32 %v4410_v27, %v1035_v2  ;;  %v1385_v49 = vmul.f32 %v4104_v23, %v860_v40  ;;  %v8122_v1 = vrot.slane %v4736_v57, 7  ;;  %v4772_v35 = vmul.f32 %v4107_v24, %v4720_v45 }
 0x190   : > { %8447 = vst [vmem:[#allocation107_spill] sm:$0xff] %v4752_v50  ;;  %v1722_v52 = vadd.f32 %v1678_v60, %v1623_v55  ;;  %v8451_v50 = vrot.slane %v4549_v41, 1  ;;  %v1067_v4 = vadd.f32 %v1023_v51, %v968_v39  ;;  %v8124_v62 = vrot.slane %v4736_v57, 1 }
 0x191   : > { %8450 = vst [vmem:[#allocation108_spill] sm:$0xff] %v4772_v35  ;;  %v8452_v40 = vrot.slane %v4575_v3, 7  ;;  %v937_v60 = vmul.f32 %v4080_v14, %v4736_v57  ;;  %v4798_v51 = vmul.f32 %v4066_v7, %v4724_v9  ;;  %v8464_v31 = vrot.slane %v4648_v28, 7 }
 0x192   : > { %v800_v25 = vsel %vm793_vm1, %v8451_v50, %v8123_v53  ;;  %v1840_v27 = vsel %vm4758_vm6, %v1722_v52, 0.0  ;;  %v1166_v52 = vadd.f32 %v4443_v47, %v1067_v4  ;;  %v4806_v50 = vadd.f32 %v4583_v46, %v1134_v10  ;;  %v4819_v4 = vpop.f32.mrf.mxu1 }
 0x193   : > { %v4785_v55 = vsel %vm847_vm3, %v800_v25, 0.0  ;;  %v676_v2 = vsel %vm636_vm0, %v8452_v40, %v8122_v1  ;;  %v4810_v40 = vmul.f32 %v4086_v17, %v4724_v9  ;;  %v8454_v1 = vrot.slane %v4575_v3, 1 }
 0x194   : > { %v4803_v25 = vsel %vm687_vm2, %v676_v2, 0.0  ;;  %v1036_v47 = vadd.f32 %v4537_v42, %v937_v60  ;;  %v4821_v2 = vrot.slane %v1840_v27, 7  ;;  %v4824_v46 = vadd.f32 %v4625_v38, %v1166_v52  ;;  %v4845_v27 = vpop.f32.mrf.mxu0 }
 0x195   : > { %8453 = vst [vmem:[#allocation109_spill] sm:$0xff] %v4810_v40  ;;  %v833_v53 = vsel %vm793_vm1, %v8454_v1, %v8124_v62  ;;  %v4828_v10 = vmul.f32 %v4112_v26, %v4785_v55  ;;  %v4834_v3 = vmul.f32 %v4069_v8, %v4736_v57  ;;  %v4838_v42 = vmul.f32 %v4121_v29, %v4803_v25 }
 0x196   : > { %8455 = vst [vmem:[#allocation110_spill] sm:$0xff] %v4821_v2  ;;  %v861_v39 = vsel %vm847_vm3, %v833_v53, 0.0  ;;  %v4842_v1 = vmul.f32 %v4130_v34, %v4803_v25  ;;  %v1135_v60 = vadd.f32 %v4510_v59, %v1036_v47  ;;  %v8125_v53 = vrot.slane %v4819_v4, 1 }
 0x197   : > { %8456 = vst [vmem:[#allocation111_spill] sm:$0xff] %v4828_v10  ;;  %8457 = vst [vmem:[#allocation112_spill] sm:$0xff] %v4834_v3  ;;  %v1679_v38 = vmul.f32 %v4135_v36, %v861_v39  ;;  %v969_v52 = vmul.f32 %v4080_v14, %v4819_v4  ;;  %v1024_v62 = vmul.f32 %v4072_v11, %v4523_v54  ;;  %v8461_v47 = vrot.slane %v4632_v63, 1 }
 0x198   : > { %8458 = vst [vmem:[#allocation113_spill] sm:$0xff] %v4838_v42  ;;  %8459 = vst [vmem:[#allocation114_spill] sm:$0xff] %v4842_v1  ;;  %v4854_v2 = vmul.f32 %v4083_v16, %v861_v39  ;;  %v4857_v10 = vmul.f32 %v4127_v33, %v861_v39  ;;  %v4861_v40 = vmul.f32 %v4089_v18, %v4736_v57  ;;  %v8126_v35 = vrot.slane %v4845_v27, 7 }
 0x199   : > { %v1723_v59 = vadd.f32 %v1679_v38, %v4687_v61  ;;  %v801_v1 = vsel %vm793_vm1, %v8461_v47, %v8125_v53  ;;  %v1068_v54 = vadd.f32 %v1024_v62, %v969_v52  ;;  %v8127_v3 = vrot.slane %v4845_v27, 1  ;;  %v8463_v52 = vld [vmem:[#allocation84_spill] sm:$0xff] }
 0x19a   : > { %8460 = vst [vmem:[#allocation115_spill] sm:$0xff] %v4861_v40  ;;  %v4876_v40 = vsel %vm847_vm3, %v801_v1, 0.0  ;;  %v938_v61 = vmul.f32 %v4077_v13, %v4845_v27  ;;  %v993_v38 = vmul.f32 %v4056_v0, %v4533_v30  ;;  %v4883_v47 = vadd.f32 %v4675_v44, %v1135_v60  ;;  %v8472_v62 = vld [vmem:[#allocation92_spill] sm:$0xff] }
 0x19b   : > { %v1841_v39 = vsel %vm4758_vm6, %v1723_v59, 0.0  ;;  %v1167_v53 = vadd.f32 %v8463_v52, %v1068_v54  ;;  %v4893_v1 = vsel %vm636_vm0, %v8464_v31, %v8126_v35  ;;  %v4899_v30 = vmul.f32 %v4069_v8, %v4819_v4  ;;  %v4905_v54 = vpop.f32.mrf.mxu1 }
 0x19c   : > { %8462 = vst [vmem:[#allocation116_spill] sm:$0xff] %v4883_v47  ;;  %8465 = vst [vmem:[#allocation84_spill] sm:$0xff] %v4893_v1  ;;  %v4895_v59 = vrot.slane %v1841_v39, 7  ;;  %v4903_v44 = vmul.f32 %v4089_v18, %v4819_v4  ;;  %v1037_v60 = vadd.f32 %v993_v38, %v938_v61  ;;  %v4912_v31 = vmul.f32 %v4135_v36, %v4876_v40 }
 0x19d   : > { %8467 = vst [vmem:[#allocation118_spill] sm:$0xff] %v4899_v30  ;;  %v4908_v52 = vadd.f32 %v4716_v15, %v1167_v53  ;;  %v8471_v39 = vrot.slane %v4648_v28, 1  ;;  %v4924_v61 = vmul.f32 %v4066_v7, %v4845_v27  ;;  %v8474_v15 = vld [vmem:[#allocation91_spill] sm:$0xff]  ;;  %v4929_v38 = vmul.f32 %v4095_v20, %v4893_v1 }
 0x19e   : > { %8466 = vst [vmem:[#allocation117_spill] sm:$0xff] %v4895_v59  ;;  %8468 = vst [vmem:[#allocation119_spill] sm:$0xff] %v4903_v44  ;;  %v1330_v59 = vadd.f32 %v8472_v62, %v4637_v32  ;;  %v1136_v53 = vadd.f32 %v8474_v15, %v1037_v60  ;;  %v8477_v32 = vrot.slane %v4363_v22, 7  ;;  %v8479_v22 = vrot.slane %v4724_v9, 7 }
 0x19f   : > { %8469 = vst [vmem:[#allocation120_spill] sm:$0xff] %v4908_v52  ;;  %8470 = vst [vmem:[#allocation121_spill] sm:$0xff] %v4912_v31  ;;  %v830_v35 = vsel %vm793_vm1, %v8471_v39, %v8127_v3  ;;  %v1484_v31 = vmul.f32 %v4107_v24, %v4893_v1  ;;  %v8476_v39 = vrot.slane %v4549_v41, 7  ;;  %v8129_v3 = vrot.slane %v4905_v54, 1 }
 0x1a0   : > { %8473 = vst [vmem:[#allocation92_spill] sm:$0xff] %v4924_v61  ;;  %8475 = vst [vmem:[#allocation91_spill] sm:$0xff] %v4929_v38  ;;  %v1429_v28 = vadd.f32 %v1385_v49, %v1330_v59  ;;  %v4942_v60 = vmul.f32 %v4059_v5, %v830_v35  ;;  %v4945_v15 = vmul.f32 %v4104_v23, %v830_v35  ;;  %v8478_v61 = vrot.slane %v4905_v54, 7 }
 0x1a1   : > { %v645_v62 = vsel %vm636_vm0, %v8477_v32, %v8476_v39  ;;  %v970_v49 = vmul.f32 %v4077_v13, %v4905_v54  ;;  %v8480_v32 = vrot.slane %v4724_v9, 1  ;;  %v1583_v30 = vmul.f32 %v4086_v17, %v4845_v27 }
 0x1a2   : > { %v1025_v59 = vmul.f32 %v4056_v0, %v645_v62  ;;  %v1528_v44 = vadd.f32 %v1484_v31, %v1429_v28  ;;  %v641_v39 = vsel %vm636_vm0, %v8479_v22, %v8478_v61  ;;  %v1318_v1 = vmul.f32 %v4095_v20, %v645_v62  ;;  %v4970_v61 = vpop.f32.mrf.mxu0 }
 0x1a3   : > { %v798_v38 = vsel %vm793_vm1, %v8480_v32, %v8129_v3  ;;  %v4966_v31 = vmul.f32 %v4112_v26, %v830_v35  ;;  %v1417_v52 = vmul.f32 %v4104_v23, %v4785_v55  ;;  %v4973_v22 = vadd.f32 %v4743_v21, %v1136_v53 }
 0x1a4   : > { %v1069_v28 = vadd.f32 %v1025_v59, %v970_v49  ;;  %v1223_v32 = vmul.f32 %v4059_v5, %v4785_v55  ;;  %v4978_v3 = vmul.f32 %v4059_v5, %v798_v38  ;;  %v1362_v42 = vadd.f32 %v1318_v1, %v4651_v48 }
 0x1a5   : > { %8481 = vst [vmem:[#allocation122_spill] sm:$0xff] %v4966_v31  ;;  %8482 = vst [vmem:[#allocation123_spill] sm:$0xff] %v4973_v22  ;;  %v4981_v47 = vadd.f32 %v1583_v30, %v1528_v44  ;;  %v4985_v49 = vmul.f32 %v4095_v20, %v641_v39  ;;  %v1516_v59 = vmul.f32 %v4107_v24, %v641_v39  ;;  %v8130_v21 = vrot.slane %v4970_v61, 7 }
 0x1a6   : > { %v1168_v35 = vadd.f32 %v4610_v56, %v1069_v28  ;;  %v1461_v31 = vadd.f32 %v1417_v52, %v1362_v42  ;;  %v8131_v53 = vrot.slane %v4970_v61, 1  ;;  %v939_v55 = vmul.f32 %v4080_v14, %v4970_v61  ;;  %v5014_v28 = vpop.f32.mrf.mxu1 }
 0x1a7   : > { %8483 = vst [vmem:[#allocation124_spill] sm:$0xff] %v4985_v49  ;;  %v4995_v48 = vmul.f32 %v4104_v23, %v798_v38  ;;  %v994_v56 = vmul.f32 %v4072_v11, %v4620_v37  ;;  %v1331_v1 = vadd.f32 %v4662_v19, %v4713_v43  ;;  %v5002_v42 = vmul.f32 %v4107_v24, %v645_v62 }
 0x1a8   : > { %v4992_v22 = vadd.f32 %v1223_v32, %v1168_v35  ;;  %v1560_v30 = vadd.f32 %v1516_v59, %v1461_v31  ;;  %v1615_v44 = vmul.f32 %v4086_v17, %v4905_v54  ;;  %v8486_v52 = vrot.slane %v4736_v57, 7 }
 0x1a9   : > { %8485 = vst [vmem:[#allocation126_spill] sm:$0xff] %v5002_v42  ;;  %v5017_v37 = vmul.f32 %v4112_v26, %v798_v38  ;;  %v8489_v43 = vrot.slane %v4736_v57, 1  ;;  %v1038_v62 = vadd.f32 %v994_v56, %v939_v55  ;;  %v5027_v31 = vmul.f32 %v4069_v8, %v4970_v61  ;;  %v8493_v56 = vld [vmem:[#allocation76_spill] sm:$0xff] }
 0x1aa   : > { %8484 = vst [vmem:[#allocation125_spill] sm:$0xff] %v4992_v22  ;;  %v5012_v39 = vsel %vm636_vm0, %v8486_v52, %v8130_v21  ;;  %v5029_v32 = vadd.f32 %v1615_v44, %v1560_v30  ;;  %v1430_v35 = vadd.f32 %v4857_v10, %v1331_v1  ;;  %v1584_v59 = vmul.f32 %v4089_v18, %v4970_v61  ;;  %v8491_v52 = vld [vmem:[#allocation98_spill] sm:$0xff] }
 0x1ab   : > { %8487 = vst [vmem:[#allocation127_spill] sm:$0xff] %v5012_v39  ;;  %8488 = vst [vmem:[#allocation128_spill] sm:$0xff] %v5017_v37  ;;  %v831_v19 = vsel %vm793_vm1, %v8489_v43, %v8131_v53  ;;  %v1485_v38 = vmul.f32 %v4130_v34, %v5012_v39  ;;  %v1137_v57 = vadd.f32 %v8491_v52, %v1038_v62  ;;  %v8133_v21 = vrot.slane %v5014_v28, 7  ;;  %v8496_v52 = vld [vmem:[#allocation30_spill] sm:$0xff] }
 0x1ac   : > { %8490 = vst [vmem:[#allocation129_spill] sm:$0xff] %v5027_v31  ;;  %v8492_v55 = vrot.slane %v4632_v63, 7  ;;  %v8494_v43 = vrot.slane %v8493_v56, 7  ;;  %v8134_v44 = vrot.slane %v5014_v28, 1  ;;  %v5046_v10 = vmul.f32 %v4083_v16, %v831_v19 }
 0x1ad   : > { %v1529_v1 = vadd.f32 %v1485_v38, %v1430_v35  ;;  %v971_v53 = vmul.f32 %v4080_v14, %v5014_v28  ;;  %vm1781_vm7 = vcmp.ge.s32.totalorder %v8496_v52, 0  ;;  %vm1793_vm8 = vcmp.lt.s32.totalorder %v8496_v52, 16 }
 0x1ae   : > { %v646_v30 = vsel %vm636_vm0, %v8494_v43, %v8492_v55  ;;  %8495 = vst [vmem:[#allocation98_spill] sm:$0xff] %v5046_v10  ;;  %v5055_v56 = vmul.f32 %v4121_v29, %v5012_v39  ;;  %v8498_v55 = vrot.slane %v4819_v4, 7  ;;  %v8499_v38 = vrot.slane %v4819_v4, 1  ;;  %v8502_v10 = vld [vmem:[#allocation100_spill] sm:$0xff]  ;;  %vm5162_vm11 = vmand %vm1781_vm7, %vm1793_vm8 }
 0x1af   : > { %v1026_v62 = vmul.f32 %v4072_v11, %v646_v30  ;;  %v1319_v37 = vmul.f32 %v4121_v29, %v646_v30  ;;  %v5071_v42 = vmul.f32 %v4127_v33, %v831_v19  ;;  %v1224_v39 = vmul.f32 %v4083_v16, %v4876_v40 }
 0x1b0   : > { %8497 = vst [vmem:[#allocation76_spill] sm:$0xff] %v5055_v56  ;;  %v642_v35 = vsel %vm636_vm0, %v8498_v55, %v8133_v21  ;;  %v799_v43 = vsel %vm793_vm1, %v8499_v38, %v8134_v44  ;;  %v5074_v56 = vmul.f32 %v4135_v36, %v831_v19  ;;  %v5078_v55 = vpop.f32.mrf.mxu0  ;;  %v5081_v21 = vadd.f32 %v4854_v2, %v1137_v57  ;;  %v8501_v38 = vld [vmem:[#allocation102_spill] sm:$0xff] }
 0x1b1   : > { %v1070_v31 = vadd.f32 %v1026_v62, %v971_v53  ;;  %v5083_v49 = vadd.f32 %v1584_v59, %v1529_v1  ;;  %v1363_v44 = vadd.f32 %v1319_v37, %v8501_v38  ;;  %v1418_v22 = vmul.f32 %v4127_v33, %v4876_v40  ;;  %v5123_v38 = vpop.f32.mrf.mxu1 }
 0x1b2   : > { %8500 = vst [vmem:[#allocation30_spill] sm:$0xff] %v5074_v56  ;;  %v5090_v19 = vmul.f32 %v4083_v16, %v799_v43  ;;  %v5093_v53 = vmul.f32 %v4121_v29, %v642_v35  ;;  %v1517_v62 = vmul.f32 %v4130_v34, %v642_v35  ;;  %v8137_v2 = vrot.slane %v5078_v55, 7 }
 0x1b3   : > { %v1169_v63 = vadd.f32 %v8502_v10, %v1070_v31  ;;  %v1462_v56 = vadd.f32 %v1418_v22, %v1363_v44  ;;  %v8136_v59 = vrot.slane %v5078_v55, 1  ;;  %v940_v37 = vmul.f32 %v4077_v13, %v5078_v55  ;;  %v8504_v10 = vld [vmem:[#allocation107_spill] sm:$0xff] }
 0x1b4   : > { %8503 = vst [vmem:[#allocation102_spill] sm:$0xff] %v5093_v53  ;;  %v5103_v40 = vmul.f32 %v4127_v33, %v799_v43  ;;  %v995_v31 = vmul.f32 %v4056_v0, %v4720_v45  ;;  %v1332_v1 = vadd.f32 %v8504_v10, %v4806_v50  ;;  %v1616_v22 = vmul.f32 %v4089_v18, %v5014_v28  ;;  %v8507_v50 = vld [vmem:[#allocation32_spill] sm:$0xff] }
 0x1b5   : > { %v5100_v57 = vadd.f32 %v1224_v39, %v1169_v63  ;;  %v1561_v35 = vadd.f32 %v1517_v62, %v1462_v56  ;;  %v8505_v44 = vrot.slane %v4845_v27, 7  ;;  %v8506_v39 = vrot.slane %v4845_v27, 1 }
 0x1b6   : > { %vm1789_vm9 = vcmp.ge.s32.totalorder %v8507_v50, 0  ;;  %vm1801_vm10 = vcmp.lt.s32.totalorder %v8507_v50, 16  ;;  %v5128_v56 = vmul.f32 %v4130_v34, %v646_v30  ;;  %v1039_v27 = vadd.f32 %v995_v31, %v940_v37  ;;  %v5152_v31 = vpop.f32.mrf.mxu0 }
 0x1b7   : > { %v671_v63 = vsel %vm636_vm0, %v8505_v44, %v8137_v2  ;;  %v828_v45 = vsel %vm793_vm1, %v8506_v39, %v8136_v59  ;;  %v5136_v44 = vadd.f32 %v1616_v22, %v1561_v35  ;;  %v5139_v39 = vmul.f32 %v4135_v36, %v799_v43  ;;  %v8512_v43 = vld [vmem:[#allocation105_spill] sm:$0xff]  ;;  %vm5235_vm12 = vmand %vm1789_vm9, %vm1801_vm10 }
 0x1b8   : > { %8508 = vst [vmem:[#allocation100_spill] sm:$0xff] %v5128_v56  ;;  %v5132_v62 = vsel %vm687_vm2, %v671_v63, 0.0  ;;  %v864_v10 = vsel %vm847_vm3, %v828_v45, 0.0  ;;  %v5143_v59 = vmul.f32 %v4066_v7, %v5078_v55  ;;  %v1585_v30 = vmul.f32 %v4086_v17, %v5078_v55 }
 0x1b9   : > { %8509 = vst [vmem:[#allocation107_spill] sm:$0xff] %v5132_v62  ;;  %8510 = vst [vmem:[#allocation32_spill] sm:$0xff] %v5139_v39  ;;  %v1431_v2 = vadd.f32 %v4945_v15, %v1332_v1  ;;  %v1486_v63 = vmul.f32 %v4107_v24, %v5132_v62  ;;  %v1682_v45 = vmul.f32 %v4112_v26, %v864_v10  ;;  %v8513_v15 = vmov 0 }
 0x1ba   : > { %8511 = vst [vmem:[#allocation130_spill] sm:$0xff] %v5143_v59  ;;  %v1138_v35 = vadd.f32 %v8512_v43, %v1039_v27  ;;  %v5156_v22 = vmul.f32 %v4059_v5, %v864_v10  ;;  %v8514_v15 = vsel %vm5162_vm11, 4294967295, %v8513_v15  ;;  %v8516_v1 = vrot.slane %v4724_v9, 7 }
 0x1bb   : > { %8515 = vst [vmem:[#allocation105_spill] sm:$0xff] %v8514_v15  ;;  %v8517_v39 = vrot.slane %v4549_v41, 7  ;;  %v8138_v27 = vrot.slane %v5123_v38, 1  ;;  %v1530_v43 = vadd.f32 %v1486_v63, %v1431_v2  ;;  %v1726_v56 = vadd.f32 %v1682_v45, %v4981_v47 }
 0x1bc   : > { %v8518_v59 = vrot.slane %v5123_v38, 7  ;;  %v8519_v52 = vrot.slane %v4905_v54, 7  ;;  %v972_v9 = vmul.f32 %v4077_v13, %v5123_v38  ;;  %v8520_v47 = vrot.slane %v4905_v54, 1 }
 0x1bd   : > { %v643_v37 = vsel %vm636_vm0, %v8517_v39, %v8516_v1  ;;  %v5199_v45 = vsel %vm5162_vm11, %v1726_v56, 0.0  ;;  %v5207_v54 = vadd.f32 %v4942_v60, %v1138_v35  ;;  %v5210_v1 = vmul.f32 %v4104_v23, %v864_v10 }
 0x1be   : > { %v639_v53 = vsel %vm636_vm0, %v8519_v52, %v8518_v59  ;;  %v737_v41 = vsel %vm687_vm2, %v643_v37, 0.0  ;;  %v796_v2 = vsel %vm793_vm1, %v8520_v47, %v8138_v27  ;;  %v5195_v59 = vmul.f32 %v4095_v20, %v5132_v62  ;;  %8522 = vst [vmem:[#allocation132_spill] sm:$0xff] %v5199_v45 }
 0x1bf   : > { %v741_v39 = vsel %vm687_vm2, %v639_v53, 0.0  ;;  %v5203_v53 = vsel %vm847_vm3, %v796_v2, 0.0  ;;  %v1027_v37 = vmul.f32 %v4056_v0, %v737_v41  ;;  %8523 = vst [vmem:[#allocation133_spill] sm:$0xff] %v5207_v54  ;;  %v1320_v52 = vmul.f32 %v4095_v20, %v737_v41 }
 0x1c0   : > { %8521 = vst [vmem:[#allocation131_spill] sm:$0xff] %v5195_v59  ;;  %v1617_v47 = vmul.f32 %v4086_v17, %v5123_v38  ;;  %v5215_v27 = vadd.f32 %v1585_v30, %v1530_v43  ;;  %v1518_v2 = vmul.f32 %v4107_v24, %v741_v39  ;;  %v1714_v60 = vmul.f32 %v4112_v26, %v5203_v53 }
 0x1c1   : > { %v1071_v63 = vadd.f32 %v1027_v37, %v972_v9  ;;  %v1364_v59 = vadd.f32 %v1320_v52, %v4824_v46  ;;  %v8525_v10 = vrot.slane %v5152_v31, 7  ;;  %v8526_v35 = vrot.slane %v4970_v61, 7 }
 0x1c2   : > { %8524 = vst [vmem:[#allocation134_spill] sm:$0xff] %v5215_v27  ;;  %v8139_v30 = vrot.slane %v5152_v31, 1  ;;  %v8527_v46 = vmov 0  ;;  %v941_v52 = vmul.f32 %v4080_v14, %v5152_v31  ;;  %v8542_v27 = vld [vmem:[#allocation112_spill] sm:$0xff] }
 0x1c3   : > { %v672_v54 = vsel %vm636_vm0, %v8526_v35, %v8525_v10  ;;  %v1170_v9 = vadd.f32 %v4798_v51, %v1071_v63  ;;  %v8528_v46 = vsel %vm5235_vm12, 4294967295, %v8527_v46  ;;  %v1463_v10 = vadd.f32 %v4995_v48, %v1364_v59 }
 0x1c4   : > { %8529 = vst [vmem:[#allocation135_spill] sm:$0xff] %v8528_v46  ;;  %v5241_v37 = vsel %vm687_vm2, %v672_v54, 0.0  ;;  %v1758_v35 = vadd.f32 %v1714_v60, %v5029_v32  ;;  %v8531_v51 = vrot.slane %v4970_v61, 1  ;;  %v996_v63 = vmul.f32 %v4072_v11, %v4803_v25  ;;  %v8532_v54 = vld [vmem:[#allocation31_spill] sm:$0xff]  ;;  %v8535_v25 = vld [vmem:[#allocation116_spill] sm:$0xff] }
 0x1c5   : > { %8530 = vst [vmem:[#allocation136_spill] sm:$0xff] %v5241_v37  ;;  %v5257_v43 = vmul.f32 %v8532_v54, %v5199_v45  ;;  %v5260_v56 = vadd.f32 %v4978_v3, %v1170_v9  ;;  %v5263_v48 = vmul.f32 %v4095_v20, %v741_v39  ;;  %v1562_v61 = vadd.f32 %v1518_v2, %v1463_v10  ;;  %v5273_v45 = vpop.f32.mrf.mxu1  ;;  %v8544_v10 = vld [vmem:[#allocation96_spill] sm:$0xff] }
 0x1c6   : > { %v829_v50 = vsel %vm793_vm1, %v8531_v51, %v8139_v30  ;;  %v5269_v59 = vsel %vm5235_vm12, %v1758_v35, 0.0  ;;  %v1040_v60 = vadd.f32 %v996_v63, %v941_v52  ;;  %v8536_v51 = vld [vmem:[#allocation113_spill] sm:$0xff]  ;;  %v5276_v3 = vmul.f32 %v4107_v24, %v737_v41 }
 0x1c7   : > { %8533 = vst [vmem:[#allocation137_spill] sm:$0xff] %v5257_v43  ;;  %v865_v32 = vsel %vm847_vm3, %v829_v50, 0.0  ;;  %8534 = vst [vmem:[#allocation138_spill] sm:$0xff] %v5269_v59  ;;  %v1333_v30 = vadd.f32 %v8536_v51, %v8535_v25  ;;  %v5280_v39 = vmul.f32 %v4069_v8, %v5152_v31  ;;  %v5287_v2 = vmul.f32 %v4121_v29, %v5241_v37  ;;  %v8540_v41 = vld [vmem:[#allocation33_spill] sm:$0xff] }
 0x1c8   : > { %8537 = vst [vmem:[#allocation116_spill] sm:$0xff] %v5276_v3  ;;  %v5283_v9 = vmul.f32 %v4083_v16, %v865_v32  ;;  %v5289_v52 = vadd.f32 %v1617_v47, %v1562_v61  ;;  %v5295_v50 = vmul.f32 %v8540_v41, %v5269_v59  ;;  %v1487_v25 = vmul.f32 %v4130_v34, %v5241_v37  ;;  %v8555_v37 = vld [vmem:[#allocation118_spill] sm:$0xff] }
 0x1c9   : > { %8538 = vst [vmem:[#allocation113_spill] sm:$0xff] %v5280_v39  ;;  %8539 = vst [vmem:[#allocation139_spill] sm:$0xff] %v5287_v2  ;;  %v1432_v63 = vadd.f32 %v5071_v42, %v1333_v30  ;;  %v1683_v51 = vmul.f32 %v4135_v36, %v865_v32  ;;  %v8143_v43 = vrot.slane %v5273_v45, 7  ;;  %v1139_v47 = vadd.f32 %v8542_v27, %v1040_v60 }
 0x1ca   : > { %8541 = vst [vmem:[#allocation140_spill] sm:$0xff] %v5295_v50  ;;  %v8543_v61 = vrot.slane %v4819_v4, 7  ;;  %v8545_v3 = vrot.slane %v8544_v10, 7  ;;  %v8142_v50 = vrot.slane %v5273_v45, 1  ;;  %v973_v42 = vmul.f32 %v4080_v14, %v5273_v45 }
 0x1cb   : > { %v1531_v30 = vadd.f32 %v1487_v25, %v1432_v63  ;;  %v1727_v41 = vadd.f32 %v1683_v51, %v5083_v49  ;;  %v8546_v54 = vrot.slane %v5014_v28, 7  ;;  %v1586_v60 = vmul.f32 %v4089_v18, %v5152_v31 }
 0x1cc   : > { %v644_v35 = vsel %vm636_vm0, %v8545_v3, %v8543_v61  ;;  %v8547_v49 = vrot.slane %v5014_v28, 1  ;;  %v5345_v28 = vpop.f32.mrf.mxu0 }
 0x1cd   : > { %v640_v4 = vsel %vm636_vm0, %v8546_v54, %v8143_v43  ;;  %v738_v27 = vsel %vm687_vm2, %v644_v35, 0.0  ;;  %v8548_v54 = vld [vmem:[#allocation34_spill] sm:$0xff]  ;;  %v5338_v35 = vsel %vm5162_vm11, %v1727_v41, 0.0  ;;  %v5353_v43 = vadd.f32 %v1586_v60, %v1531_v30  ;;  %v8566_v41 = vld [vmem:[#allocation91_spill] sm:$0xff] }
 0x1ce   : > { %v742_v3 = vsel %vm687_vm2, %v640_v4, 0.0  ;;  %v797_v10 = vsel %vm793_vm1, %v8547_v49, %v8142_v50  ;;  %v1028_v63 = vmul.f32 %v4072_v11, %v738_v27  ;;  %v5334_v25 = vmul.f32 %v8548_v54, %v5269_v59  ;;  %8550 = vst [vmem:[#allocation96_spill] sm:$0xff] %v5338_v35  ;;  %v8551_v4 = vld [vmem:[#allocation98_spill] sm:$0xff] }
 0x1cf   : > { %v5342_v51 = vsel %vm847_vm3, %v797_v10, 0.0  ;;  %v1321_v61 = vmul.f32 %v4121_v29, %v738_v27  ;;  %v5348_v49 = vadd.f32 %v8551_v4, %v1139_v47  ;;  %v5351_v50 = vmul.f32 %v4127_v33, %v865_v32  ;;  %8553 = vst [vmem:[#allocation141_spill] sm:$0xff] %v5353_v43  ;;  %v8554_v10 = vld [vmem:[#allocation120_spill] sm:$0xff] }
 0x1d0   : > { %8549 = vst [vmem:[#allocation112_spill] sm:$0xff] %v5334_v25  ;;  %v1072_v25 = vadd.f32 %v1028_v63, %v973_v42  ;;  %v5357_v15 = vmul.f32 %v4121_v29, %v742_v3  ;;  %v1519_v2 = vmul.f32 %v4130_v34, %v742_v3  ;;  %v1715_v47 = vmul.f32 %v4135_v36, %v5342_v51  ;;  %v8556_v4 = vld [vmem:[#allocation84_spill] sm:$0xff]  ;;  %v8565_v42 = vld [vmem:[#allocation123_spill] sm:$0xff] }
 0x1d1   : > { %8552 = vst [vmem:[#allocation98_spill] sm:$0xff] %v5348_v49  ;;  %v1365_v39 = vadd.f32 %v1321_v61, %v8554_v10  ;;  %v8149_v32 = vrot.slane %v5345_v28, 7  ;;  %v8148_v30 = vrot.slane %v5345_v28, 1  ;;  %v942_v63 = vmul.f32 %v4077_v13, %v5345_v28 }
 0x1d2   : > { %v1171_v62 = vadd.f32 %v8555_v37, %v1072_v25  ;;  %v997_v61 = vmul.f32 %v4056_v0, %v8556_v4  ;;  %v1759_v37 = vadd.f32 %v1715_v47, %v5136_v44  ;;  %v8557_v25 = vrot.slane %v5078_v55, 7  ;;  %v8560_v4 = vld [vmem:[#allocation42_spill] sm:$0xff] }
 0x1d3   : > { %v1464_v60 = vadd.f32 %v5103_v40, %v1365_v39  ;;  %v8559_v40 = vrot.slane %v5078_v55, 1  ;;  %vm1790_vm13 = vcmp.ge.s32.totalorder %v8560_v4, 0  ;;  %vm1802_vm14 = vcmp.lt.s32.totalorder %v8560_v4, 16 }
 0x1d4   : > { %v5373_v3 = vadd.f32 %v5090_v19, %v1171_v62  ;;  %v5382_v10 = vsel %vm636_vm0, %v8557_v25, %v8149_v32  ;;  %v8561_v19 = vld [vmem:[#allocation35_spill] sm:$0xff]  ;;  %v5397_v44 = vmul.f32 %v4130_v34, %v738_v27  ;;  %v1618_v25 = vmul.f32 %v4089_v18, %v5273_v45  ;;  %vm5485_vm15 = vmand %vm1790_vm13, %vm1802_vm14 }
 0x1d5   : > { %8558 = vst [vmem:[#allocation120_spill] sm:$0xff] %v5382_v10  ;;  %v826_v39 = vsel %vm793_vm1, %v8559_v40, %v8148_v30  ;;  %v5394_v62 = vmul.f32 %v8561_v19, %v5338_v35  ;;  %v1563_v47 = vadd.f32 %v1519_v2, %v1464_v60  ;;  %v5403_v55 = vsel %vm5235_vm12, %v1759_v37, 0.0  ;;  %v580_v35 = vpop.f32.mrf.mxu1  ;;  %v8572_v19 = vld [vmem:[#allocation125_spill] sm:$0xff] }
 0x1d6   : > { %8563 = vst [vmem:[#allocation84_spill] sm:$0xff] %v5397_v44  ;;  %8564 = vst [vmem:[#allocation42_spill] sm:$0xff] %v5403_v55  ;;  %v1041_v40 = vadd.f32 %v997_v61, %v942_v63  ;;  %v1334_v30 = vadd.f32 %v8566_v41, %v8565_v42  ;;  %v1488_v32 = vmul.f32 %v4107_v24, %v5382_v10  ;;  %v634_v44 = vrot.slane %v580_v35, 7  ;;  %v8576_v42 = vld [vmem:[#allocation37_spill] sm:$0xff] }
 0x1d7   : > { %8562 = vst [vmem:[#allocation118_spill] sm:$0xff] %v5394_v62  ;;  %v5411_v27 = vmul.f32 %v4066_v7, %v5345_v28  ;;  %v5414_v2 = vmul.f32 %v4059_v5, %v826_v39  ;;  %v5418_v60 = vmul.f32 %v4095_v20, %v5382_v10  ;;  %v5421_v63 = vmul.f32 %v4104_v23, %v826_v39  ;;  %v8570_v62 = vld [vmem:[#allocation36_spill] sm:$0xff] }
 0x1d8   : > { %v5423_v61 = vadd.f32 %v1618_v25, %v1563_v47  ;;  %v1433_v37 = vadd.f32 %v5210_v1, %v1334_v30  ;;  %v5430_v43 = vmul.f32 %v8570_v62, %v5403_v55  ;;  %v791_v46 = vrot.slane %v580_v35, 1  ;;  %v8574_v10 = vld [vmem:[#allocation92_spill] sm:$0xff] }
 0x1d9   : > { %8567 = vst [vmem:[#allocation123_spill] sm:$0xff] %v5411_v27  ;;  %8568 = vst [vmem:[#allocation91_spill] sm:$0xff] %v5414_v2  ;;  %v8573_v27 = vld [vmem:[#allocation124_spill] sm:$0xff]  ;;  %v1140_v49 = vadd.f32 %v8574_v10, %v1041_v40  ;;  %v1368_v47 = vadd.f32 %v5263_v48, %v5260_v56  ;;  %v1421_v25 = vmul.f32 %v4104_v23, %v5203_v53  ;;  %v8575_v1 = vrot.slane %v5123_v38, 7  ;;  %v8580_v48 = vld [vmem:[#allocation39_spill] sm:$0xff] }
 0x1da   : > { %8569 = vst [vmem:[#allocation142_spill] sm:$0xff] %v5418_v60  ;;  %8571 = vst [vmem:[#allocation143_spill] sm:$0xff] %v5430_v43  ;;  %v1366_v60 = vadd.f32 %v8573_v27, %v8572_v19  ;;  %v1532_v2 = vadd.f32 %v1488_v32, %v1433_v37  ;;  %v8577_v41 = vrot.slane %v8576_v42, 7  ;;  %v8578_v19 = vrot.slane %v5123_v38, 1 }
 0x1db   : > { %v637_v30 = vsel %vm636_vm0, %v8575_v1, %v634_v44  ;;  %v8579_v56 = vrot.slane %v8576_v42, 1  ;;  %v5457_v10 = vmul.f32 %v8580_v48, %v5403_v55  ;;  %v1587_v40 = vmul.f32 %v4086_v17, %v5345_v28 }
 0x1dc   : > { %v683_v43 = vsel %vm636_vm0, %v634_v44, %v8577_v41  ;;  %v794_v32 = vsel %vm793_vm1, %v8578_v19, %v791_v46  ;;  %v5465_v27 = vmul.f32 %v4112_v26, %v826_v39  ;;  %v1465_v42 = vadd.f32 %v1421_v25, %v1366_v60  ;;  %v8584_v39 = vld [vmem:[#allocation73_spill] sm:$0xff] }
 0x1dd   : > { %v840_v53 = vsel %vm793_vm1, %v791_v46, %v8579_v56  ;;  %8581 = vst [vmem:[#allocation125_spill] sm:$0xff] %v5457_v10  ;;  %v697_v44 = vsel %vm687_vm2, %v683_v43, 0.0  ;;  %v1423_v38 = vmul.f32 %v4104_v23, %v794_v32  ;;  %v1520_v46 = vmul.f32 %v4107_v24, %v637_v30  ;;  %v5475_v43 = vpop.f32.mrf.mxu0  ;;  %v8588_v30 = vld [vmem:[#allocation44_spill] sm:$0xff] }
 0x1de   : > { %8582 = vst [vmem:[#allocation124_spill] sm:$0xff] %v5465_v27  ;;  %v987_v41 = vmul.f32 %v4056_v0, %v697_v44  ;;  %v5470_v37 = vadd.f32 %v5156_v22, %v1140_v49  ;;  %v900_v1 = vsel %vm847_vm3, %v840_v53, 0.0  ;;  %v1716_v56 = vmul.f32 %v4112_v26, %v794_v32  ;;  %v8587_v49 = vld [vmem:[#allocation40_spill] sm:$0xff]  ;;  %v8590_v44 = vld [vmem:[#allocation41_spill] sm:$0xff] }
 0x1df   : > { %v1467_v19 = vadd.f32 %v1423_v38, %v1368_v47  ;;  %v5477_v10 = vadd.f32 %v1587_v40, %v1532_v2  ;;  %v1564_v62 = vadd.f32 %v1520_v46, %v1465_v42  ;;  %v1619_v60 = vmul.f32 %v4086_v17, %v580_v35  ;;  %v8589_v2 = vld [vmem:[#allocation47_spill] sm:$0xff] }
 0x1e0   : > { %8583 = vst [vmem:[#allocation92_spill] sm:$0xff] %v5470_v37  ;;  %v1031_v27 = vadd.f32 %v987_v41, %v8584_v39  ;;  %v1760_v25 = vadd.f32 %v1716_v56, %v5289_v52  ;;  %vm1791_vm4 = vcmp.ge.s32.totalorder %v8588_v30, 0  ;;  %vm1803_vm5 = vcmp.lt.s32.totalorder %v8588_v30, 16  ;;  %v5495_v40 = vld [vmem:[#allocation8 + $0x10] sm:$0x3] }
 0x1e1   : > { %v1566_v47 = vadd.f32 %v8587_v49, %v1467_v19  ;;  %v1663_v53 = vadd.f32 %v1619_v60, %v1564_v62  ;;  %v1718_v35 = vmul.f32 %v4112_v26, %v900_v1  ;;  %v943_v4 = vmul.f32 %v4080_v14, %v5475_v43  ;;  %v8591_v42 = vld [vmem:[#allocation127_spill] sm:$0xff]  ;;  %vm5506_vm6 = vmand %vm1791_vm4, %vm1803_vm5 }
 0x1e2   : > { %v1130_v32 = vadd.f32 %v8589_v2, %v1031_v27  ;;  %v1878_v41 = vsel %vm5485_vm15, %v1760_v25, 0.0  ;;  %v998_v46 = vmul.f32 %v4072_v11, %v8591_v42  ;;  %v8592_v19 = vld [vmem:[#allocation59_spill] sm:$0xff] }
 0x1e3   : > { %v1665_v38 = vadd.f32 %v8590_v44, %v1566_v47  ;;  %v1762_v62 = vadd.f32 %v1718_v35, %v1663_v53  ;;  %v1922_v56 = vrot.slane %v1878_v41, 7  ;;  %v2042_v39 = vrot.slane %v1878_v41, 1  ;;  %v8595_v60 = vld [vmem:[#allocation43_spill] sm:$0xff]  ;;  %v8596_v47 = vld [vmem:[#allocation21_spill] sm:$0xff] }
 0x1e4   : > { %v1229_v27 = vadd.f32 %v8592_v19, %v1130_v32  ;;  %v5513_v30 = vrot.slane %v5495_v40, %v8596_v47  ;;  %v1042_v2 = vadd.f32 %v998_v46, %v943_v4  ;;  %v8598_v44 = vld [vmem:[#allocation75_spill] sm:$0xff]  ;;  %v8599_v53 = vrot.slane %v5269_v59, 7  ;;  %v8607_v47 = vld [vmem:[#allocation108_spill] sm:$0xff] }
 0x1e5   : > { %v1764_v49 = vadd.f32 %v8595_v60, %v1665_v38  ;;  %v1880_v32 = vsel %vm5485_vm15, %v1762_v62, 0.0  ;;  %v8600_v19 = vrot.slane %v5269_v59, 1  ;;  %v8603_v59 = vrot.slane %v5152_v31, 7 }
 0x1e6   : > { %8597 = vst [vmem:[#allocation37_spill] sm:$0xff] %v5513_v30  ;;  %v1328_v42 = vadd.f32 %v8598_v44, %v1229_v27  ;;  %v1928_v35 = vsel %vm636_vm0, %v8599_v53, %v1922_v56  ;;  %v1924_v25 = vrot.slane %v1880_v32, 7  ;;  %v2044_v46 = vrot.slane %v1880_v32, 1  ;;  %v8601_v27 = vld [vmem:[#allocation93_spill] sm:$0xff] }
 0x1e7   : > { %v2052_v38 = vsel %vm793_vm1, %v8600_v19, %v2042_v39  ;;  %v1882_v60 = vsel %vm5506_vm6, %v1764_v49, 0.0  ;;  %v2002_v4 = vsel %vm687_vm2, %v1928_v35, 0.0  ;;  %v8602_v53 = vrot.slane %v5475_v43, 7 }
 0x1e8   : > { %v1427_v62 = vadd.f32 %v8601_v27, %v1328_v42  ;;  %v2046_v44 = vrot.slane %v1882_v60, 1  ;;  %v2122_v52 = vsel %vm847_vm3, %v2052_v38, 0.0  ;;  %v1926_v49 = vsel %vm636_vm0, %v1922_v56, %v1924_v25  ;;  %v8610_v25 = vld [vmem:[#allocation45_spill] sm:$0xff] }
 0x1e9   : > { %v5540_v19 = vsel %vm636_vm0, %v8603_v59, %v8602_v53  ;;  %v2050_v35 = vsel %vm793_vm1, %v2042_v39, %v2044_v46  ;;  %v5547_v42 = vmul.f32 %v8548_v54, %v1878_v41  ;;  %v8605_v60 = vrot.slane %v5475_v43, 1  ;;  %v8608_v53 = vld [vmem:[#allocation46_spill] sm:$0xff] }
 0x1ea   : > { %v8606_v38 = vrot.slane %v5152_v31, 1  ;;  %v1526_v37 = vadd.f32 %v8607_v47, %v1427_v62  ;;  %v2048_v59 = vsel %vm793_vm1, %v2044_v46, %v2046_v44  ;;  %v5559_v56 = vmul.f32 %v8608_v53, %v2002_v4  ;;  %v8613_v47 = vld [vmem:[#allocation129_spill] sm:$0xff] }
 0x1eb   : > { %8604 = vst [vmem:[#allocation73_spill] sm:$0xff] %v5547_v42  ;;  %v5563_v39 = vmul.f32 %v4069_v8, %v5475_v43  ;;  %v2126_v41 = vsel %vm847_vm3, %v2048_v59, 0.0  ;;  %v5568_v31 = vmul.f32 %v8610_v25, %v2122_v52  ;;  %v1141_v62 = vadd.f32 %v8613_v47, %v1042_v2  ;;  %v8617_v59 = vld [vmem:[#allocation76_spill] sm:$0xff] }
 0x1ec   : > { %v827_v27 = vsel %vm793_vm1, %v8606_v38, %v8605_v60  ;;  %8609 = vst [vmem:[#allocation40_spill] sm:$0xff] %v5559_v56  ;;  %v5571_v60 = vmul.f32 %v8548_v54, %v1880_v32  ;;  %v582_v38 = vpop.f32.mrf.mxu1  ;;  %v5575_v46 = vmul.f32 %v8608_v53, %v1926_v49  ;;  %v5578_v4 = vmul.f32 %v5513_v30, %v2122_v52  ;;  %v8618_v56 = vld [vmem:[#allocation106_spill] sm:$0xff] }
 0x1ed   : > { %8611 = vst [vmem:[#allocation44_spill] sm:$0xff] %v5568_v31  ;;  %v5581_v44 = vmul.f32 %v5513_v30, %v2050_v35  ;;  %v1335_v42 = vadd.f32 %v8617_v59, %v5081_v21  ;;  %v1625_v31 = vadd.f32 %v8618_v56, %v1526_v37  ;;  %v5587_v32 = vmul.f32 %v5513_v30, %v2126_v41  ;;  %v8620_v41 = vld [vmem:[#allocation102_spill] sm:$0xff] }
 0x1ee   : > { %8612 = vst [vmem:[#allocation47_spill] sm:$0xff] %v5571_v60  ;;  %8614 = vst [vmem:[#allocation41_spill] sm:$0xff] %v5575_v46  ;;  %v5590_v2 = vmul.f32 %v4083_v16, %v827_v27  ;;  %v5594_v49 = vmul.f32 %v4121_v29, %v5540_v19  ;;  %v5597_v52 = vadd.f32 %v5283_v9, %v1141_v62  ;;  %v635_v37 = vrot.slane %v582_v38, 7 }
 0x1ef   : > { %8615 = vst [vmem:[#allocation127_spill] sm:$0xff] %v5578_v4  ;;  %8616 = vst [vmem:[#allocation59_spill] sm:$0xff] %v5581_v44  ;;  %v5600_v35 = vmul.f32 %v4127_v33, %v827_v27  ;;  %v1489_v21 = vmul.f32 %v4130_v34, %v5540_v19  ;;  %v792_v56 = vrot.slane %v582_v38, 1  ;;  %v1367_v47 = vadd.f32 %v8620_v41, %v5100_v57  ;;  %v8622_v4 = vld [vmem:[#allocation48_spill] sm:$0xff] }
 0x1f0   : > { %8619 = vst [vmem:[#allocation43_spill] sm:$0xff] %v5587_v32  ;;  %v1369_v59 = vadd.f32 %v5357_v15, %v5373_v3  ;;  %v1422_v32 = vmul.f32 %v4127_v33, %v5342_v51  ;;  %v1434_v9 = vadd.f32 %v5351_v50, %v1335_v42  ;;  %v1588_v62 = vmul.f32 %v4089_v18, %v5475_v43 }
 0x1f1   : > { %v8621_v60 = vrot.slane %v5273_v45, 7  ;;  %v8623_v46 = vrot.slane %v8622_v4, 7  ;;  %v8624_v51 = vrot.slane %v5273_v45, 1  ;;  %v8625_v3 = vrot.slane %v8622_v4, 1 }
 0x1f2   : > { %v1466_v41 = vadd.f32 %v1422_v32, %v1367_v47  ;;  %v5644_v32 = vpop.f32.mrf.mxu0  ;;  %v1533_v47 = vadd.f32 %v1489_v21, %v1434_v9  ;;  %v1622_v53 = vmul.f32 0.0, %v4089_v18  ;;  %v1620_v54 = vmul.f32 %v4089_v18, %v582_v38  ;;  %v8631_v9 = vld [vmem:[#allocation22_spill] sm:$0xff] }
 0x1f3   : > { %v638_v44 = vsel %vm636_vm0, %v8621_v60, %v635_v37  ;;  %v684_v57 = vsel %vm636_vm0, %v635_v37, %v8623_v46  ;;  %v795_v50 = vsel %vm793_vm1, %v8624_v51, %v792_v56  ;;  %v841_v42 = vsel %vm793_vm1, %v792_v56, %v8625_v3  ;;  %v8629_v3 = vld [vmem:[#allocation82_spill] sm:$0xff] }
 0x1f4   : > { %v698_v15 = vsel %vm687_vm2, %v684_v57, 0.0  ;;  %v901_v60 = vsel %vm847_vm3, %v841_v42, 0.0  ;;  %v1424_v46 = vmul.f32 %v4127_v33, %v795_v50  ;;  %v1523_v37 = vmul.f32 0.0, %v4130_v34  ;;  %v8626_v57 = vld [vmem:[#allocation122_spill] sm:$0xff] }
 0x1f5   : > { %v988_v30 = vmul.f32 %v4072_v11, %v698_v15  ;;  %v5637_v45 = vadd.f32 %v8626_v57, %v1625_v31  ;;  %v5640_v51 = vmul.f32 %v4135_v36, %v827_v27  ;;  %v1521_v4 = vmul.f32 %v4130_v34, %v638_v44  ;;  %v8630_v57 = vld [vmem:[#allocation53_spill] sm:$0xff] }
 0x1f6   : > { %v1717_v56 = vmul.f32 %v4135_v36, %v795_v50  ;;  %v1468_v15 = vadd.f32 %v1424_v46, %v1369_v59  ;;  %v1719_v31 = vmul.f32 %v4135_v36, %v901_v60  ;;  %v1721_v50 = vmul.f32 0.0, %v4135_v36  ;;  %v3531_v59 = vld [vmem:[#allocation8 + $0xa] sm:$0x3] }
 0x1f7   : > { %8627 = vst [vmem:[#allocation75_spill] sm:$0xff] %v5637_v45  ;;  %8628 = vst [vmem:[#allocation93_spill] sm:$0xff] %v5640_v51  ;;  %v1032_v42 = vadd.f32 %v988_v30, %v8629_v3  ;;  %v1565_v25 = vadd.f32 %v1521_v4, %v1466_v41  ;;  %v8162_v51 = vrot.slane %v5644_v32, 7  ;;  %v5657_v41 = vrot.slane %v3531_v59, %v8631_v9  ;;  %v8633_v60 = vld [vmem:[#allocation67_spill] sm:$0xff] }
 0x1f8   : > { %v1761_v27 = vadd.f32 %v1717_v56, %v5423_v61  ;;  %v1567_v44 = vadd.f32 %v1523_v37, %v1468_v15  ;;  %v8161_v38 = vrot.slane %v5644_v32, 1  ;;  %v3532_v3 = vld [vmem:[#allocation8 + $0xc] sm:$0x3] }
 0x1f9   : > { %v1131_v45 = vadd.f32 %v8630_v57, %v1032_v42  ;;  %v1664_v21 = vadd.f32 %v1620_v54, %v1565_v25  ;;  %8632 = vst [vmem:[#allocation108_spill] sm:$0xff] %v5657_v41  ;;  %v5662_v42 = vrot.slane %v3532_v3, %v8631_v9  ;;  %v5666_v54 = vrot.slane %v5495_v40, %v8631_v9 }
 0x1fa   : > { %v1879_v30 = vsel %vm5485_vm15, %v1761_v27, 0.0  ;;  %v1666_v61 = vadd.f32 %v1622_v53, %v1567_v44  ;;  %v8636_v25 = vrot.slane %v5345_v28, 7  ;;  %v8639_v44 = vrot.slane %v5403_v55, 1 }
 0x1fb   : > { %v1230_v46 = vadd.f32 %v8633_v60, %v1131_v45  ;;  %v1923_v4 = vrot.slane %v1879_v30, 7  ;;  %v2043_v56 = vrot.slane %v1879_v30, 1  ;;  %v1763_v37 = vadd.f32 %v1719_v31, %v1664_v21  ;;  %8634 = vst [vmem:[#allocation129_spill] sm:$0xff] %v5662_v42  ;;  %8635 = vst [vmem:[#allocation76_spill] sm:$0xff] %v5666_v54  ;;  %v8637_v45 = vld [vmem:[#allocation86_spill] sm:$0xff] }
 0x1fc   : > { %v667_v15 = vsel %vm636_vm0, %v8636_v25, %v8162_v51  ;;  %v1765_v27 = vadd.f32 %v1721_v50, %v1666_v61  ;;  %v8638_v31 = vrot.slane %v5403_v55, 7  ;;  %v8640_v50 = vrot.slane %v5345_v28, 1  ;;  %v8641_v61 = vld [vmem:[#allocation99_spill] sm:$0xff] }
 0x1fd   : > { %v1329_v53 = vadd.f32 %v8637_v45, %v1230_v46  ;;  %v2053_v40 = vsel %vm793_vm1, %v8639_v44, %v2043_v56  ;;  %v1881_v21 = vsel %vm5485_vm15, %v1763_v37, 0.0  ;;  %v1632_v45 = vadd.f32 %v1588_v62, %v1533_v47 }
 0x1fe   : > { %v1929_v57 = vsel %vm636_vm0, %v8638_v31, %v1923_v4  ;;  %v2123_v60 = vsel %vm847_vm3, %v2053_v40, 0.0  ;;  %v824_v46 = vsel %vm793_vm1, %v8640_v50, %v8161_v38  ;;  %v1883_v25 = vsel %vm5506_vm6, %v1765_v27, 0.0  ;;  %v8643_v40 = vld [vmem:[#allocation114_spill] sm:$0xff]  ;;  %v8649_v27 = vld [vmem:[#allocation115_spill] sm:$0xff] }
 0x1ff   : > { %v2003_v59 = vsel %vm687_vm2, %v1929_v57, 0.0  ;;  %v1428_v3 = vadd.f32 %v8641_v61, %v1329_v53  ;;  %v1925_v22 = vrot.slane %v1881_v21, 7  ;;  %v2045_v37 = vrot.slane %v1881_v21, 1 }
 0x200   : > { %v2047_v31 = vrot.slane %v1883_v25, 1  ;;  %v5699_v57 = vmul.f32 %v8580_v48, %v1879_v30  ;;  %v944_v44 = vmul.f32 %v4077_v13, %v5644_v32  ;;  %v5714_v62 = vsel %vm687_vm2, %v667_v15, 0.0 }
 0x201   : > { %v1527_v28 = vadd.f32 %v8643_v40, %v1428_v3  ;;  %v5706_v50 = vsel %vm636_vm0, %v1923_v4, %v1925_v22  ;;  %v5710_v1 = vsel %vm793_vm1, %v2043_v56, %v2045_v37  ;;  %v5721_v30 = vmul.f32 %v5657_v41, %v2123_v60  ;;  %v8652_v3 = vld [vmem:[#allocation107_spill] sm:$0xff]  ;;  %v5737_v22 = vpop.f32.mrf.mxu0 }
 0x202   : > { %8642 = vst [vmem:[#allocation106_spill] sm:$0xff] %v5699_v57  ;;  %8644 = vst [vmem:[#allocation102_spill] sm:$0xff] %v5706_v50  ;;  %v5718_v47 = vsel %vm793_vm1, %v2045_v37, %v2047_v31  ;;  %v5724_v53 = vmul.f32 %v5662_v42, %v2003_v59  ;;  %v868_v4 = vsel %vm847_vm3, %v824_v46, 0.0  ;;  %v5730_v61 = vmul.f32 %v8580_v48, %v1881_v21  ;;  %v8653_v21 = vld [vmem:[#allocation133_spill] sm:$0xff]  ;;  %v8654_v31 = vld [vmem:[#allocation131_spill] sm:$0xff] }
 0x203   : > { %8645 = vst [vmem:[#allocation48_spill] sm:$0xff] %v5710_v1  ;;  %8646 = vst [vmem:[#allocation122_spill] sm:$0xff] %v5718_v47  ;;  %v1626_v56 = vadd.f32 %v8649_v27, %v1527_v28  ;;  %v5733_v15 = vmul.f32 %v5666_v54, %v2123_v60  ;;  %v999_v25 = vmul.f32 %v4056_v0, %v8652_v3  ;;  %v8655_v60 = vld [vmem:[#allocation30_spill] sm:$0xff]  ;;  %v605_v57 = vrot.slane %v5737_v22, 7  ;;  %v8664_v50 = vld [vmem:[#allocation139_spill] sm:$0xff] }
 0x204   : > { %8647 = vst [vmem:[#allocation82_spill] sm:$0xff] %v5721_v30  ;;  %8648 = vst [vmem:[#allocation53_spill] sm:$0xff] %v5724_v53  ;;  %v5741_v59 = vmul.f32 %v4066_v7, %v5644_v32  ;;  %v1199_v37 = vmul.f32 %v4059_v5, %v868_v4  ;;  %v5746_v46 = vmul.f32 %v4095_v20, %v5714_v62  ;;  %v8657_v1 = vld [vmem:[#allocation130_spill] sm:$0xff]  ;;  %v8665_v47 = vld [vmem:[#allocation113_spill] sm:$0xff] }
 0x205   : > { %8650 = vst [vmem:[#allocation67_spill] sm:$0xff] %v5730_v61  ;;  %8651 = vst [vmem:[#allocation86_spill] sm:$0xff] %v5733_v15  ;;  %v1336_v40 = vadd.f32 %v8654_v31, %v8653_v21  ;;  %v5751_v28 = vadd.f32 %v8655_v60, %v1626_v56  ;;  %v1043_v27 = vadd.f32 %v999_v25, %v944_v44  ;;  %v762_v56 = vrot.slane %v5737_v22, 1  ;;  %v8658_v25 = vld [vmem:[#allocation136_spill] sm:$0xff] }
 0x206   : > { %v1393_v3 = vmul.f32 %v4104_v23, %v868_v4  ;;  %v1490_v38 = vmul.f32 %v4107_v24, %v5714_v62  ;;  %v1589_v61 = vmul.f32 %v4086_v17, %v5644_v32  ;;  %v1686_v15 = vmul.f32 %v4112_v26, %v868_v4 }
 0x207   : > { %8656 = vst [vmem:[#allocation99_spill] sm:$0xff] %v5751_v28  ;;  %v1435_v51 = vadd.f32 %v5421_v63, %v1336_v40  ;;  %v1142_v21 = vadd.f32 %v8657_v1, %v1043_v27  ;;  %v945_v44 = vmul.f32 %v4080_v14, %v5737_v22  ;;  %v1000_v31 = vmul.f32 %v4072_v11, %v8658_v25  ;;  %v8661_v27 = vld [vmem:[#allocation91_spill] sm:$0xff] }
 0x208   : > { %v5768_v63 = vadd.f32 %v1686_v15, %v5477_v10  ;;  %v8660_v40 = vrot.slane %v5475_v43, 7  ;;  %v5776_v1 = vmul.f32 %v4069_v8, %v5737_v22  ;;  %v5789_v15 = vpop.f32.mrf.mxu0 }
 0x209   : > { %v1534_v60 = vadd.f32 %v1490_v38, %v1435_v51  ;;  %v5779_v30 = vadd.f32 %v8661_v27, %v1142_v21  ;;  %v8662_v51 = vrot.slane %v5475_v43, 1  ;;  %v1044_v38 = vadd.f32 %v1000_v31, %v945_v44  ;;  %v8663_v27 = vld [vmem:[#allocation98_spill] sm:$0xff] }
 0x20a   : > { %8659 = vst [vmem:[#allocation114_spill] sm:$0xff] %v5768_v63  ;;  %v668_v4 = vsel %vm636_vm0, %v8660_v40, %v605_v57  ;;  %v1590_v31 = vmul.f32 %v4089_v18, %v5737_v22  ;;  %v8668_v22 = vrot.slane %v5644_v32, 7  ;;  %v1591_v28 = vmul.f32 %v4086_v17, %v5789_v15 }
 0x20b   : > { %v5783_v53 = vsel %vm687_vm2, %v668_v4, 0.0  ;;  %v825_v10 = vsel %vm793_vm1, %v8662_v51, %v762_v56  ;;  %v1633_v25 = vadd.f32 %v1589_v61, %v1534_v60  ;;  %v1337_v4 = vadd.f32 %v8664_v50, %v8663_v27  ;;  %v8666_v27 = vld [vmem:[#allocation120_spill] sm:$0xff] }
 0x20c   : > { %v869_v40 = vsel %vm847_vm3, %v825_v10, 0.0  ;;  %v5795_v21 = vmul.f32 %v4121_v29, %v5783_v53  ;;  %v1143_v55 = vadd.f32 %v8665_v47, %v1044_v38  ;;  %v1491_v44 = vmul.f32 %v4130_v34, %v5783_v53 }
 0x20d   : > { %v1200_v43 = vmul.f32 %v4083_v16, %v869_v40  ;;  %v1394_v51 = vmul.f32 %v4127_v33, %v869_v40  ;;  %v1436_v61 = vadd.f32 %v5600_v35, %v1337_v4  ;;  %v1687_v60 = vmul.f32 %v4135_v36, %v869_v40 }
 0x20e   : > { %v606_v10 = vrot.slane %v5789_v15, 7  ;;  %v5810_v50 = vadd.f32 %v5590_v2, %v1143_v55  ;;  %v763_v47 = vrot.slane %v5789_v15, 1  ;;  %v946_v38 = vmul.f32 %v4077_v13, %v5789_v15 }
 0x20f   : > { %v1001_v54 = vmul.f32 %v4056_v0, %v8666_v27  ;;  %v1535_v42 = vadd.f32 %v1491_v44, %v1436_v61  ;;  %v5817_v35 = vadd.f32 %v1687_v60, %v1632_v45  ;;  %v5827_v55 = vmul.f32 %v4066_v7, %v5789_v15  ;;  %v8673_v44 = vld [vmem:[#allocation92_spill] sm:$0xff]  ;;  %v8674_v61 = vld [vmem:[#allocation142_spill] sm:$0xff]  ;;  %v5839_v27 = vpop.f32.mrf.mxu0 }
 0x210   : > { %v5823_v40 = vsel %vm636_vm0, %v8668_v22, %v606_v10  ;;  %v8671_v2 = vrot.slane %v5644_v32, 1  ;;  %v1338_v60 = vadd.f32 %v8674_v61, %v8673_v44  ;;  %v8676_v44 = vld [vmem:[#allocation28_spill] sm:$0xff] }
 0x211   : > { %8667 = vst [vmem:[#allocation115_spill] sm:$0xff] %v5817_v35  ;;  %8669 = vst [vmem:[#allocation107_spill] sm:$0xff] %v5823_v40  ;;  %v1045_v41 = vadd.f32 %v1001_v54, %v946_v38  ;;  %v5835_v45 = vmul.f32 %v4095_v20, %v5823_v40  ;;  %v1634_v22 = vadd.f32 %v1590_v31, %v1535_v42  ;;  %v1771_v61 = vadd.s32 3, %v8676_v44 }
 0x212   : > { %8670 = vst [vmem:[#allocation133_spill] sm:$0xff] %v5827_v55  ;;  %v822_v4 = vsel %vm793_vm1, %v8671_v2, %v763_v47  ;;  %v1492_v32 = vmul.f32 %v4107_v24, %v5823_v40  ;;  %v8675_v2 = vld [vmem:[#allocation123_spill] sm:$0xff]  ;;  %v1437_v38 = vadd.f32 %v1393_v3, %v1338_v60  ;;  %v8175_v42 = vrot.slane %v5839_v27, 7 }
 0x213   : > { %8672 = vst [vmem:[#allocation131_spill] sm:$0xff] %v5835_v45  ;;  %v5842_v35 = vmul.f32 %v4059_v5, %v822_v4  ;;  %v1395_v63 = vmul.f32 %v4104_v23, %v822_v4  ;;  %v1144_v54 = vadd.f32 %v8675_v2, %v1045_v41  ;;  %v1688_v9 = vmul.f32 %v4112_v26, %v822_v4  ;;  %v8680_v2 = vld [vmem:[#allocation31_spill] sm:$0xff] }
 0x214   : > { %v8174_v31 = vrot.slane %v5839_v27, 1  ;;  %v947_v55 = vmul.f32 %v4080_v14, %v5839_v27  ;;  %v1536_v45 = vadd.f32 %v1492_v32, %v1437_v38  ;;  %v1002_v41 = vmul.f32 %v4072_v11, %v5540_v19  ;;  %v8706_v4 = vld [vmem:[#allocation39_spill] sm:$0xff] }
 0x215   : > { %v5856_v48 = vadd.f32 %v1199_v37, %v1144_v54  ;;  %v1732_v40 = vadd.f32 %v1688_v9, %v1633_v25  ;;  %vm1783_vm7 = vcmp.ge.s32.totalorder %v1771_v61, 0  ;;  %vm1795_vm8 = vcmp.lt.s32.totalorder %v1771_v61, 16 }
 0x216   : > { %v5864_v3 = vsel %vm636_vm0, %v605_v57, %v8175_v42  ;;  %v823_v15 = vsel %vm793_vm1, %v762_v56, %v8174_v31  ;;  %v1635_v37 = vadd.f32 %v1591_v28, %v1536_v45  ;;  %vm5870_vm9 = vmand %vm1783_vm7, %vm1795_vm8  ;;  %v1046_v9 = vadd.f32 %v1002_v41, %v947_v55  ;;  %v5894_v45 = vpop.f32.mrf.mxu0 }
 0x217   : > { %v5876_v19 = vmul.f32 %v4069_v8, %v5839_v27  ;;  %v5879_v25 = vmul.f32 %v4083_v16, %v823_v15  ;;  %v5883_v57 = vsel %vm5870_vm9, %v1732_v40, 0.0  ;;  %v5887_v56 = vmul.f32 %v4121_v29, %v5864_v3 }
 0x218   : > { %8679 = vst [vmem:[#allocation30_spill] sm:$0xff] %v5883_v57  ;;  %v1339_v28 = vadd.f32 %v5594_v49, %v5597_v52  ;;  %v5892_v55 = vmul.f32 %v4127_v33, %v823_v15  ;;  %v5900_v40 = vmul.f32 %v8680_v2, %v5883_v57  ;;  %v1145_v54 = vadd.f32 %v5563_v39, %v1046_v9 }
 0x219   : > { %v1493_v61 = vmul.f32 %v4130_v34, %v5864_v3  ;;  %v1592_v49 = vmul.f32 %v4089_v18, %v5839_v27  ;;  %v1689_v52 = vmul.f32 %v4135_v36, %v823_v15  ;;  %v8177_v60 = vrot.slane %v5894_v45, 7 }
 0x21a   : > { %8681 = vst [vmem:[#allocation130_spill] sm:$0xff] %v5900_v40  ;;  %v1438_v38 = vadd.f32 %v1394_v51, %v1339_v28  ;;  %v5908_v41 = vadd.f32 %v1200_v43, %v1145_v54  ;;  %v8176_v32 = vrot.slane %v5894_v45, 1  ;;  %v948_v31 = vmul.f32 %v4077_v13, %v5894_v45 }
 0x21b   : > { %v1733_v39 = vadd.f32 %v1689_v52, %v1634_v22  ;;  %v1003_v51 = vmul.f32 %v4056_v0, %v5714_v62  ;;  %v5918_v9 = vmul.f32 %v4066_v7, %v5894_v45  ;;  %v663_v43 = vsel %vm636_vm0, %v606_v10, %v8177_v60 }
 0x21c   : > { %v1537_v42 = vadd.f32 %v1493_v61, %v1438_v38  ;;  %v820_v15 = vsel %vm793_vm1, %v763_v47, %v8176_v32  ;;  %v1340_v22 = vadd.f32 %v5746_v46, %v5779_v30  ;;  %v1593_v62 = vmul.f32 %v4086_v17, %v5894_v45  ;;  %v5942_v61 = vpop.f32.mrf.mxu0  ;;  %v8684_v46 = vld [vmem:[#allocation35_spill] sm:$0xff] }
 0x21d   : > { %8682 = vst [vmem:[#allocation136_spill] sm:$0xff] %v5918_v9  ;;  %v5934_v54 = vsel %vm5870_vm9, %v1733_v39, 0.0  ;;  %v5938_v38 = vsel %vm687_vm2, %v663_v43, 0.0  ;;  %v872_v10 = vsel %vm847_vm3, %v820_v15, 0.0  ;;  %v949_v60 = vmul.f32 %v4080_v14, %v5942_v61 }
 0x21e   : > { %v1636_v28 = vadd.f32 %v1592_v49, %v1537_v42  ;;  %8683 = vst [vmem:[#allocation91_spill] sm:$0xff] %v5934_v54  ;;  %v5948_v42 = vmul.f32 %v8684_v46, %v5934_v54  ;;  %v1047_v49 = vadd.f32 %v1003_v51, %v948_v31  ;;  %v5951_v52 = vmul.f32 %v4059_v5, %v872_v10 }
 0x21f   : > { %v5955_v39 = vmul.f32 %v4095_v20, %v5938_v38  ;;  %v5958_v43 = vmul.f32 %v4104_v23, %v872_v10  ;;  %v1439_v15 = vadd.f32 %v1395_v63, %v1340_v22  ;;  %v1494_v30 = vmul.f32 %v4107_v24, %v5938_v38  ;;  %v2882_v22 = vld [vmem:[#allocation10 + $0x70] sm:$0xff] }
 0x220   : > { %8685 = vst [vmem:[#allocation98_spill] sm:$0xff] %v5948_v42  ;;  %v1146_v47 = vadd.f32 %v5741_v59, %v1047_v49  ;;  %v1690_v32 = vmul.f32 %v4112_v26, %v872_v10  ;;  %v8178_v31 = vrot.slane %v5942_v61, 7  ;;  %v1004_v42 = vmul.f32 %v4072_v11, %v5783_v53  ;;  %v2883_v59 = vld [vmem:[#allocation10 + $0x78] sm:$0xff] }
 0x221   : > { %8686 = vst [vmem:[#allocation139_spill] sm:$0xff] %v5955_v39  ;;  %v5972_v63 = vmul.f32 %v4069_v8, %v5942_v61  ;;  %v1538_v10 = vadd.f32 %v1494_v30, %v1439_v15  ;;  %v8688_v51 = vrot.slane %v5839_v27, 7  ;;  %3247 = vmatprep.subr.mxu1 %v2883_v59  ;;  %v8690_v39 = vrot.slane %v5839_v27, 1 }
 0x222   : > { %v5975_v49 = vadd.f32 %v5842_v35, %v1146_v47  ;;  %v1734_v40 = vadd.f32 %v1690_v32, %v1635_v37  ;;  %v1048_v37 = vadd.f32 %v1004_v42, %v949_v60  ;;  %v1341_v32 = vadd.f32 %v5795_v21, %v5810_v50  ;;  %3248 = vmatpush3.msra.mxu1 %v2883_v59  ;;  %v2881_v47 = vld [vmem:[#allocation10 + $0x68] sm:$0xff]  ;;  %v8693_v50 = vld [vmem:[#allocation34_spill] sm:$0xff]  ;;  %v6017_v42 = vpop.f32.mrf.mxu0 }
 0x223   : > { %8687 = vst [vmem:[#allocation113_spill] sm:$0xff] %v5972_v63  ;;  %v664_v9 = vsel %vm636_vm0, %v8688_v51, %v8178_v31  ;;  %v8689_v63 = vrot.slane %v5942_v61, 1  ;;  %v5995_v30 = vadd.f32 %v1593_v62, %v1538_v10  ;;  %3249 = vmatprep.subr.mxu1 %v2882_v22 }
 0x224   : > { %v5985_v53 = vsel %vm687_vm2, %v664_v9, 0.0  ;;  %v5999_v15 = vsel %vm5870_vm9, %v1734_v40, 0.0  ;;  %v1147_v40 = vadd.f32 %v5776_v1, %v1048_v37  ;;  %3250 = vmatpush3.msra.mxu1 %v2882_v22  ;;  %v1440_v59 = vadd.f32 %v5892_v55, %v1341_v32  ;;  %v2879_v32 = vld [vmem:[#allocation10 + $0x58] sm:$0xff] }
 0x225   : > { %v821_v35 = vsel %vm793_vm1, %v8690_v39, %v8689_v63  ;;  %8691 = vst [vmem:[#allocation120_spill] sm:$0xff] %v5999_v15  ;;  %v6005_v27 = vmul.f32 %v4121_v29, %v5985_v53  ;;  %v8181_v60 = vrot.slane %v5999_v15, 7  ;;  %v6010_v21 = vmul.f32 %v8680_v2, %v5999_v15  ;;  %v2880_v39 = vld [vmem:[#allocation10 + $0x60] sm:$0xff]  ;;  %3251 = vmatprep.subr.mxu1 %v2881_v47 }
 0x226   : > { %v873_v9 = vsel %vm847_vm3, %v821_v35, 0.0  ;;  %v6014_v62 = vmul.f32 %v8693_v50, %v5999_v15  ;;  %v1495_v10 = vmul.f32 %v4130_v34, %v5985_v53  ;;  %v8695_v1 = vrot.slane %v5883_v57, 7  ;;  %3252 = vmatpush3.msra.mxu1 %v2881_v47  ;;  %v8699_v47 = vld [vmem:[#allocation131_spill] sm:$0xff] }
 0x227   : > { %8692 = vst [vmem:[#allocation92_spill] sm:$0xff] %v6010_v21  ;;  %v6020_v51 = vmul.f32 %v4083_v16, %v873_v9  ;;  %v6023_v63 = vmul.f32 %v4127_v33, %v873_v9  ;;  %v6037_v35 = vadd.f32 %v5879_v25, %v1147_v40  ;;  %v1594_v37 = vmul.f32 %v4089_v18, %v5942_v61 }
 0x228   : > { %8694 = vst [vmem:[#allocation142_spill] sm:$0xff] %v6014_v62  ;;  %v6034_v22 = vsel %vm636_vm0, %v8695_v1, %v8181_v60  ;;  %v1691_v55 = vmul.f32 %v4135_v36, %v873_v9  ;;  %v1539_v31 = vadd.f32 %v1495_v10, %v1440_v59  ;;  %v8184_v21 = vrot.slane %v6017_v42, 7  ;;  %3253 = vmatprep.subr.mxu1 %v2880_v39  ;;  %v8697_v60 = vld [vmem:[#allocation107_spill] sm:$0xff]  ;;  %v2878_v59 = vld [vmem:[#allocation10 + $0x50] sm:$0xff] }
 0x229   : > { %8696 = vst [vmem:[#allocation123_spill] sm:$0xff] %v6034_v22  ;;  %v950_v57 = vmul.f32 %v4077_v13, %v6017_v42  ;;  %v1005_v25 = vmul.f32 %v4056_v0, %v8697_v60  ;;  %v6050_v40 = vmul.f32 %v4066_v7, %v6017_v42  ;;  %v1342_v9 = vadd.f32 %v8699_v47, %v5856_v48  ;;  %v2877_v47 = vld [vmem:[#allocation10 + $0x48] sm:$0xff] }
 0x22a   : > { %v1735_v1 = vadd.f32 %v1691_v55, %v1636_v28  ;;  %3254 = vmatpush3.msra.mxu1 %v2880_v39  ;;  %v6054_v10 = vadd.f32 %v1594_v37, %v1539_v31  ;;  %v8700_v62 = vrot.slane %v5894_v45, 7  ;;  %v8701_v60 = vrot.slane %v6017_v42, 1 }
 0x22b   : > { %8698 = vst [vmem:[#allocation28_spill] sm:$0xff] %v6050_v40  ;;  %v8702_v55 = vrot.slane %v5894_v45, 1  ;;  %v1595_v48 = vmul.f32 %v4086_v17, %v6017_v42  ;;  %3255 = vmatprep.subr.mxu1 %v2879_v32  ;;  %v1049_v39 = vadd.f32 %v1005_v25, %v950_v57  ;;  %v6083_v45 = vpop.f32.mrf.mxu0  ;;  %v8708_v25 = vld [vmem:[#allocation133_spill] sm:$0xff]  ;;  %v1441_v50 = vadd.f32 %v5958_v43, %v1342_v9 }
 0x22c   : > { %v6062_v28 = vsel %vm636_vm0, %v8700_v62, %v8184_v21  ;;  %v6074_v31 = vsel %vm5870_vm9, %v1735_v1, 0.0  ;;  %3256 = vmatpush3.msra.mxu1 %v2879_v32  ;;  %v1772_v40 = vadd.s32 4, %v8676_v44  ;;  %v8187_v43 = vrot.slane %v6083_v45, 1 }
 0x22d   : > { %v818_v15 = vsel %vm793_vm1, %v8702_v55, %v8701_v60  ;;  %8703 = vst [vmem:[#allocation107_spill] sm:$0xff] %v6074_v31  ;;  %v6081_v62 = vmul.f32 %v4095_v20, %v6062_v28  ;;  %v6088_v55 = vmul.f32 %v8684_v46, %v6074_v31  ;;  %v6092_v57 = vmul.f32 %v8706_v4, %v6074_v31 }
 0x22e   : > { %v6077_v37 = vmul.f32 %v4059_v5, %v818_v15  ;;  %v6095_v1 = vmul.f32 %v4104_v23, %v818_v15  ;;  %3257 = vmatprep.subr.mxu1 %v2878_v59  ;;  %v1148_v21 = vadd.f32 %v8708_v25, %v1049_v39  ;;  %v1496_v32 = vmul.f32 %v4107_v24, %v6062_v28 }
 0x22f   : > { %8704 = vst [vmem:[#allocation131_spill] sm:$0xff] %v6081_v62  ;;  %8705 = vst [vmem:[#allocation144_spill] sm:$0xff] %v6088_v55  ;;  %v1692_v60 = vmul.f32 %v4112_v26, %v818_v15  ;;  %3258 = vmatpush3.msra.mxu1 %v2878_v59  ;;  %v2876_v62 = vld [vmem:[#allocation10 + $0x40] sm:$0xff]  ;;  %v8709_v55 = vrot.slane %v6074_v31, 7  ;;  %v8710_v4 = vrot.slane %v5934_v54, 7  ;;  %v8188_v39 = vrot.slane %v6083_v45, 7 }
 0x230   : > { %8707 = vst [vmem:[#allocation145_spill] sm:$0xff] %v6092_v57  ;;  %3259 = vmatprep.subr.mxu1 %v2877_v47  ;;  %v6114_v9 = vadd.f32 %v5951_v52, %v1148_v21  ;;  %v1540_v15 = vadd.f32 %v1496_v32, %v1441_v50  ;;  %v951_v25 = vmul.f32 %v4080_v14, %v6083_v45  ;;  %v2875_v31 = vld [vmem:[#allocation10 + $0x38] sm:$0xff]  ;;  %vm1784_vm10 = vcmp.ge.s32.totalorder %v1772_v40, 0 }
 0x231   : > { %v6108_v57 = vsel %vm636_vm0, %v8710_v4, %v8709_v55  ;;  %v1736_v59 = vadd.f32 %v1692_v60, %v5995_v30  ;;  %3260 = vmatpush3.msra.mxu1 %v2877_v47  ;;  %vm1796_vm13 = vcmp.lt.s32.totalorder %v1772_v40, 16  ;;  %v8712_v55 = vrot.slane %v5942_v61, 7 }
 0x232   : > { %8711 = vst [vmem:[#allocation133_spill] sm:$0xff] %v6108_v57  ;;  %v8713_v52 = vrot.slane %v5942_v61, 1  ;;  %3261 = vmatprep.subr.mxu1 %v2876_v62  ;;  %v6133_v21 = vadd.f32 %v1595_v48, %v1540_v15  ;;  %vm6135_vm14 = vmand %vm1784_vm10, %vm1796_vm13  ;;  %v1006_v40 = vmul.f32 %v4072_v11, %v5864_v3  ;;  %v6143_v47 = vmul.f32 %v4069_v8, %v6083_v45  ;;  %v2874_v61 = vld [vmem:[#allocation10 + $0x30] sm:$0xff] }
 0x233   : > { %v6125_v4 = vsel %vm636_vm0, %v8712_v55, %v8188_v39  ;;  %3262 = vmatpush3.msra.mxu1 %v2876_v62  ;;  %v6150_v48 = vsel %vm6135_vm14, %v1736_v59, 0.0  ;;  %v1343_v3 = vadd.f32 %v5887_v56, %v5908_v41  ;;  %v6161_v55 = vpop.f32.mrf.mxu0  ;;  %v8719_v59 = vld [vmem:[#allocation33_spill] sm:$0xff]  ;;  %v1596_v62 = vmul.f32 %v4089_v18, %v6083_v45 }
 0x234   : > { %v819_v30 = vsel %vm793_vm1, %v8713_v52, %v8187_v43  ;;  %8716 = vst [vmem:[#allocation146_spill] sm:$0xff] %v6143_v47  ;;  %8717 = vst [vmem:[#allocation147_spill] sm:$0xff] %v6150_v48  ;;  %v6154_v32 = vmul.f32 %v4121_v29, %v6125_v4  ;;  %3263 = vmatprep.subr.mxu1 %v2875_v31  ;;  %v6167_v43 = vmul.f32 %v8719_v59, %v6150_v48  ;;  %v2873_v56 = vld [vmem:[#allocation10 + $0x28] sm:$0xff] }
 0x235   : > { %v6146_v60 = vmul.f32 %v4083_v16, %v819_v30  ;;  %v6159_v15 = vmul.f32 %v4127_v33, %v819_v30  ;;  %v6171_v39 = vmul.f32 %v8680_v2, %v6150_v48  ;;  %3264 = vmatpush3.msra.mxu1 %v2875_v31  ;;  %v1050_v41 = vadd.f32 %v1006_v40, %v951_v25  ;;  %v2872_v25 = vld [vmem:[#allocation10 + $0x20] sm:$0xff]  ;;  %v2871_v48 = vld [vmem:[#allocation10 + $0x18] sm:$0xff] }
 0x236   : > { %8718 = vst [vmem:[#allocation148_spill] sm:$0xff] %v6154_v32  ;;  %8720 = vst [vmem:[#allocation149_spill] sm:$0xff] %v6167_v43  ;;  %v1442_v54 = vadd.f32 %v6023_v63, %v1343_v3  ;;  %v1497_v47 = vmul.f32 %v4130_v34, %v6125_v4  ;;  %3265 = vmatprep.subr.mxu1 %v2874_v61  ;;  %v1693_v52 = vmul.f32 %v4135_v36, %v819_v30 }
 0x237   : > { %8721 = vst [vmem:[#allocation150_spill] sm:$0xff] %v6171_v39  ;;  %v8193_v43 = vrot.slane %v6161_v55, 7  ;;  %v952_v31 = vmul.f32 %v4077_v13, %v6161_v55  ;;  %3266 = vmatpush3.msra.mxu1 %v2874_v61  ;;  %v1149_v63 = vadd.f32 %v5876_v19, %v1050_v41  ;;  %v1007_v3 = vmul.f32 %v4056_v0, %v5938_v38 }
 0x238   : > { %v1541_v40 = vadd.f32 %v1497_v47, %v1442_v54  ;;  %v6188_v39 = vmul.f32 %v4066_v7, %v6161_v55  ;;  %3267 = vmatprep.subr.mxu1 %v2873_v56  ;;  %v1737_v30 = vadd.f32 %v1693_v52, %v6054_v10  ;;  %v8723_v32 = vrot.slane %v6017_v42, 7  ;;  %v8726_v47 = vld [vmem:[#allocation139_spill] sm:$0xff] }
 0x239   : > { %v8724_v19 = vrot.slane %v6161_v55, 1  ;;  %v8725_v54 = vrot.slane %v6017_v42, 1  ;;  %v1344_v41 = vadd.f32 %v8726_v47, %v5975_v49  ;;  %3268 = vmatpush3.msra.mxu1 %v2873_v56  ;;  %v6206_v10 = vadd.f32 %v6020_v51, %v1149_v63  ;;  %v6227_v63 = vpop.f32.mrf.mxu0 }
 0x23a   : > { %8722 = vst [vmem:[#allocation151_spill] sm:$0xff] %v6188_v39  ;;  %v659_v61 = vsel %vm636_vm0, %v8723_v32, %v8193_v43  ;;  %v6208_v52 = vadd.f32 %v1596_v62, %v1541_v40  ;;  %3269 = vmatprep.subr.mxu1 %v2872_v25  ;;  %v1051_v49 = vadd.f32 %v1007_v3, %v952_v31  ;;  %v2128_v62 = vld [vmem:[#allocation8] sm:$0x3]  ;;  %v2870_v40 = vld [vmem:[#allocation10 + $0x10] sm:$0xff]  ;;  %v8733_v3 = vld [vmem:[#allocation136_spill] sm:$0xff] }
 0x23b   : > { %v816_v38 = vsel %vm793_vm1, %v8725_v54, %v8724_v19  ;;  %v6212_v32 = vsel %vm687_vm2, %v659_v61, 0.0  ;;  %v6218_v19 = vsel %vm6135_vm14, %v1737_v30, 0.0  ;;  %3270 = vmatpush3.msra.mxu1 %v2872_v25  ;;  %v8730_v30 = vld [vmem:[#allocation36_spill] sm:$0xff]  ;;  %v1443_v25 = vadd.f32 %v6095_v1, %v1344_v41  ;;  %v2869_v54 = vld [vmem:[#allocation10 + $0x8] sm:$0xff] }
 0x23c   : > { %8727 = vst [vmem:[#allocation139_spill] sm:$0xff] %v6212_v32  ;;  %v876_v42 = vsel %vm847_vm3, %v816_v38, 0.0  ;;  %8728 = vst [vmem:[#allocation152_spill] sm:$0xff] %v6218_v19  ;;  %v6225_v51 = vmul.f32 %v4095_v20, %v6212_v32  ;;  %v6233_v38 = vmul.f32 %v8730_v30, %v6218_v19  ;;  %v6237_v31 = vmul.f32 %v8684_v46, %v6218_v19  ;;  %v8734_v19 = vld [vmem:[#allocation21_spill] sm:$0xff]  ;;  %v2868_v39 = vld [vmem:[#allocation10] sm:$0xff] }
 0x23d   : > { %v6221_v56 = vmul.f32 %v4059_v5, %v876_v42  ;;  %3271 = vmatprep.subr.mxu1 %v2871_v48  ;;  %v1150_v47 = vadd.f32 %v8733_v3, %v1051_v49  ;;  %v6241_v43 = vmul.f32 %v4104_v23, %v876_v42  ;;  %v1498_v61 = vmul.f32 %v4107_v24, %v6212_v32 }
 0x23e   : > { %8729 = vst [vmem:[#allocation153_spill] sm:$0xff] %v6225_v51  ;;  %8731 = vst [vmem:[#allocation154_spill] sm:$0xff] %v6233_v38  ;;  %3272 = vmatpush3.msra.mxu1 %v2871_v48  ;;  %v1597_v38 = vmul.f32 %v4086_v17, %v6161_v55  ;;  %v1694_v51 = vmul.f32 %v4112_v26, %v876_v42  ;;  %v8198_v49 = vrot.slane %v6227_v63, 7  ;;  %v8197_v41 = vrot.slane %v6227_v63, 1 }
 0x23f   : > { %8732 = vst [vmem:[#allocation155_spill] sm:$0xff] %v6237_v31  ;;  %v6250_v31 = vrot.slane %v2128_v62, %v8734_v19  ;;  %3273 = vmatprep.subr.mxu1 %v2870_v40  ;;  %v6254_v3 = vadd.f32 %v6077_v37, %v1150_v47  ;;  %v1542_v1 = vadd.f32 %v1498_v61, %v1443_v25  ;;  %v8736_v19 = vrot.slane %v6083_v45, 7 }
 0x240   : > { %v953_v48 = vmul.f32 %v4080_v14, %v6227_v63  ;;  %3274 = vmatpush3.msra.mxu1 %v2870_v40  ;;  %v1738_v32 = vadd.f32 %v1694_v51, %v6133_v21  ;;  %v1008_v61 = vmul.f32 %v4072_v11, %v5985_v53  ;;  %v8737_v21 = vrot.slane %v6083_v45, 1 }
 0x241   : > { %8735 = vst [vmem:[#allocation136_spill] sm:$0xff] %v6250_v31  ;;  %v2209_v42 = vmul.f32 %v6250_v31, %v6034_v22  ;;  %v660_v37 = vsel %vm636_vm0, %v8736_v19, %v8198_v49  ;;  %3275 = vmatprep.subr.mxu1 %v2869_v54  ;;  %v1641_v47 = vadd.f32 %v1597_v38, %v1542_v1  ;;  %v8742_v22 = vld [vmem:[#allocation22_spill] sm:$0xff] }
 0x242   : > { %v6272_v40 = vsel %vm687_vm2, %v660_v37, 0.0  ;;  %v817_v51 = vsel %vm793_vm1, %v8737_v21, %v8197_v41  ;;  %v6282_v25 = vmul.f32 %v4069_v8, %v6227_v63  ;;  %3276 = vmatpush3.msra.mxu1 %v2869_v54  ;;  %v6286_v53 = vsel %vm6135_vm14, %v1738_v32, 0.0  ;;  %v6304_v21 = vpop.f32.mrf.mxu0 }
 0x243   : > { %8738 = vst [vmem:[#allocation156_spill] sm:$0xff] %v6286_v53  ;;  %v877_v19 = vsel %vm847_vm3, %v817_v51, 0.0  ;;  %v1052_v38 = vadd.f32 %v1008_v61, %v953_v48  ;;  %v6292_v1 = vmul.f32 %v4121_v29, %v6272_v40  ;;  %3277 = vmatprep.subr.mxu1 %v2868_v39  ;;  %v2166_v37 = vmul.f32 %v8719_v59, %v6286_v53  ;;  %v8740_v48 = vld [vmem:[#allocation113_spill] sm:$0xff] }
 0x244   : > { %v6299_v54 = vmul.f32 %v8680_v2, %v6286_v53  ;;  %v6302_v32 = vmul.f32 %v4083_v16, %v877_v19  ;;  %3278 = vmatpush3.msra.mxu1 %v2868_v39  ;;  %v1345_v51 = vadd.f32 %v6005_v27, %v6037_v35  ;;  %v6310_v45 = vmul.f32 %v4127_v33, %v877_v19  ;;  %v6371_v50 = vpop.f32.mrf.mxu0 }
 0x245   : > { %v1151_v61 = vadd.f32 %v8740_v48, %v1052_v38  ;;  %v1499_v41 = vmul.f32 %v4130_v34, %v6272_v40  ;;  %v6314_v49 = vadd.f32 %v2209_v42, %v2166_v37  ;;  %v1695_v53 = vmul.f32 %v4135_v36, %v877_v19 }
 0x246   : > { %8739 = vst [vmem:[#allocation157_spill] sm:$0xff] %v6299_v54  ;;  %v1598_v54 = vmul.f32 %v4089_v18, %v6227_v63  ;;  %v6320_v39 = vrot.slane %v2128_v62, %v8742_v22  ;;  %v1444_v27 = vadd.f32 %v6159_v15, %v1345_v51  ;;  %v8204_v35 = vrot.slane %v6304_v21, 7 }
 0x247   : > { %8741 = vst [vmem:[#allocation113_spill] sm:$0xff] %v6314_v49  ;;  %v6323_v38 = vadd.f32 %v6146_v60, %v1151_v61  ;;  %v8203_v48 = vrot.slane %v6304_v21, 1  ;;  %v1739_v42 = vadd.f32 %v1695_v53, %v6208_v52  ;;  %v954_v19 = vmul.f32 %v4077_v13, %v6304_v21 }
 0x248   : > { %8743 = vst [vmem:[#allocation158_spill] sm:$0xff] %v6320_v39  ;;  %v2210_v37 = vmul.f32 %v6320_v39, %v6108_v57  ;;  %v1009_v62 = vmul.f32 %v4056_v0, %v6062_v28  ;;  %v1543_v49 = vadd.f32 %v1499_v41, %v1444_v27  ;;  %v8744_v60 = vrot.slane %v6161_v55, 7 }
 0x249   : > { %v8745_v52 = vrot.slane %v6161_v55, 1  ;;  %v6351_v61 = vmul.f32 %v4066_v7, %v6304_v21  ;;  %v6355_v28 = vsel %vm6135_vm14, %v1739_v42, 0.0  ;;  %v8748_v42 = vld [vmem:[#allocation28_spill] sm:$0xff]  ;;  %v1773_v22 = vadd.s32 5, %v8676_v44 }
 0x24a   : > { %v6341_v15 = vsel %vm636_vm0, %v8744_v60, %v8204_v35  ;;  %8746 = vst [vmem:[#allocation159_spill] sm:$0xff] %v6355_v28  ;;  %v1053_v41 = vadd.f32 %v1009_v62, %v954_v19  ;;  %v1642_v55 = vadd.f32 %v1598_v54, %v1543_v49  ;;  %v8749_v62 = vld [vmem:[#allocation131_spill] sm:$0xff]  ;;  %v1599_v60 = vmul.f32 %v4086_v17, %v6304_v21 }
 0x24b   : > { %v814_v53 = vsel %vm793_vm1, %v8745_v52, %v8203_v48  ;;  %v6362_v27 = vmul.f32 %v4095_v20, %v6341_v15  ;;  %v2167_v52 = vmul.f32 %v8730_v30, %v6355_v28  ;;  %v6369_v48 = vmul.f32 %v8684_v46, %v6355_v28 }
 0x24c   : > { %v6358_v51 = vmul.f32 %v4059_v5, %v814_v53  ;;  %v1152_v19 = vadd.f32 %v8748_v42, %v1053_v41  ;;  %v1346_v35 = vadd.f32 %v8749_v62, %v6114_v9  ;;  %v6377_v57 = vmul.f32 %v4104_v23, %v814_v53 }
 0x24d   : > { %8747 = vst [vmem:[#allocation160_spill] sm:$0xff] %v6369_v48  ;;  %v1500_v49 = vmul.f32 %v4107_v24, %v6341_v15  ;;  %v6381_v54 = vadd.f32 %v2210_v37, %v2167_v52  ;;  %v1696_v48 = vmul.f32 %v4112_v26, %v814_v53  ;;  %v8210_v42 = vrot.slane %v6371_v50, 7 }
 0x24e   : > { %v6388_v41 = vadd.f32 %v6221_v56, %v1152_v19  ;;  %v1445_v9 = vadd.f32 %v6241_v43, %v1346_v35  ;;  %v8209_v62 = vrot.slane %v6371_v50, 1  ;;  %vm1785_vm15 = vcmp.ge.s32.totalorder %v1773_v22, 0 }
 0x24f   : > { %8750 = vst [vmem:[#allocation28_spill] sm:$0xff] %v6381_v54  ;;  %v1740_v39 = vadd.f32 %v1696_v48, %v1641_v47  ;;  %vm1797_vm4 = vcmp.lt.s32.totalorder %v1773_v22, 16  ;;  %v955_v37 = vmul.f32 %v4080_v14, %v6371_v50  ;;  %v8753_v56 = vrot.slane %v6227_v63, 7  ;;  %v8760_v54 = vld [vmem:[#allocation148_spill] sm:$0xff] }
 0x250   : > { %v1544_v52 = vadd.f32 %v1500_v49, %v1445_v9  ;;  %vm6395_vm5 = vmand %vm1785_vm15, %vm1797_vm4  ;;  %v8754_v22 = vrot.slane %v6227_v63, 1  ;;  %v1010_v35 = vmul.f32 %v4072_v11, %v6125_v4  ;;  %v6421_v19 = vmul.f32 %v4069_v8, %v6371_v50  ;;  %v6430_v9 = vpop.f32.mrf.mxu0 }
 0x251   : > { %v6405_v43 = vsel %vm636_vm0, %v8753_v56, %v8210_v42  ;;  %v6417_v48 = vsel %vm6395_vm5, %v1740_v39, 0.0  ;;  %v1347_v28 = vadd.f32 %v8760_v54, %v6206_v10  ;;  %v8218_v4 = vrot.slane %v6430_v9, 7 }
 0x252   : > { %v815_v47 = vsel %vm793_vm1, %v8754_v22, %v8209_v62  ;;  %8755 = vst [vmem:[#allocation131_spill] sm:$0xff] %v6417_v48  ;;  %8756 = vst [vmem:[#allocation161_spill] sm:$0xff] %v6421_v19  ;;  %v6428_v63 = vmul.f32 %v4121_v29, %v6405_v43  ;;  %v1643_v56 = vadd.f32 %v1599_v60, %v1544_v52 }
 0x253   : > { %v6424_v49 = vmul.f32 %v4083_v16, %v815_v47  ;;  %v6436_v39 = vmul.f32 %v8719_v59, %v6417_v48  ;;  %v6440_v62 = vmul.f32 %v8680_v2, %v6417_v48  ;;  %v1054_v42 = vadd.f32 %v1010_v35, %v955_v37 }
 0x254   : > { %8757 = vst [vmem:[#allocation162_spill] sm:$0xff] %v6428_v63  ;;  %v1404_v63 = vmul.f32 %v4127_v33, %v815_v47  ;;  %v1501_v60 = vmul.f32 %v4130_v34, %v6405_v43  ;;  %v1600_v52 = vmul.f32 %v4089_v18, %v6371_v50  ;;  %v1697_v22 = vmul.f32 %v4135_v36, %v815_v47  ;;  %v8763_v47 = vld [vmem:[#allocation139_spill] sm:$0xff] }
 0x255   : > { %8758 = vst [vmem:[#allocation163_spill] sm:$0xff] %v6436_v39  ;;  %8759 = vst [vmem:[#allocation164_spill] sm:$0xff] %v6440_v62  ;;  %v8761_v39 = vld [vmem:[#allocation146_spill] sm:$0xff]  ;;  %v1446_v62 = vadd.f32 %v6310_v45, %v1347_v28  ;;  %v8217_v37 = vrot.slane %v6430_v9, 1  ;;  %v956_v10 = vmul.f32 %v4077_v13, %v6430_v9  ;;  %v8762_v35 = vrot.slane %v6304_v21, 7 }
 0x256   : > { %v1153_v19 = vadd.f32 %v8761_v39, %v1054_v42  ;;  %v1741_v54 = vadd.f32 %v1697_v22, %v1642_v55  ;;  %v1011_v16 = vmul.f32 %v4056_v0, %v8763_v47  ;;  %v1114_v42 = vmul.f32 %v4066_v7, %v6430_v9 }
 0x257   : > { %v655_v33 = vsel %vm636_vm0, %v8762_v35, %v8218_v4  ;;  %v1545_v28 = vadd.f32 %v1501_v60, %v1446_v62  ;;  %v8765_v22 = vrot.slane %v6304_v21, 1  ;;  %v8770_v4 = vld [vmem:[#allocation151_spill] sm:$0xff] }
 0x258   : > { %v6467_v45 = vadd.f32 %v6302_v32, %v1153_v19  ;;  %v725_v55 = vsel %vm687_vm2, %v655_v33, 0.0  ;;  %v6479_v35 = vsel %vm6395_vm5, %v1741_v54, 0.0  ;;  %v1055_v62 = vadd.f32 %v1011_v16, %v956_v10  ;;  %v8769_v54 = vld [vmem:[#allocation50_spill] sm:$0xff]  ;;  %v6499_v16 = vpop.f32.mrf.mxu0  ;;  %v8771_v10 = vld [vmem:[#allocation153_spill] sm:$0xff] }
 0x259   : > { %v812_v39 = vsel %vm793_vm1, %v8765_v22, %v8217_v37  ;;  %8766 = vst [vmem:[#allocation146_spill] sm:$0xff] %v6479_v35  ;;  %v1015_v32 = vmul.f32 %v4056_v0, %v725_v55  ;;  %v1644_v19 = vadd.f32 %v1600_v52, %v1545_v28  ;;  %v6488_v21 = vmul.f32 %v8730_v30, %v6479_v35 }
 0x25a   : > { %8764 = vst [vmem:[#allocation148_spill] sm:$0xff] %v6467_v45  ;;  %v880_v47 = vsel %vm847_vm3, %v812_v39, 0.0  ;;  %v6492_v22 = vmul.f32 %v8684_v46, %v6479_v35  ;;  %v1154_v39 = vadd.f32 %v8770_v4, %v1055_v62  ;;  %v1308_v52 = vmul.f32 %v4095_v20, %v725_v55 }
 0x25b   : > { %8767 = vst [vmem:[#allocation139_spill] sm:$0xff] %v6488_v21  ;;  %v1059_v37 = vadd.f32 %v1015_v32, %v8769_v54  ;;  %v6497_v45 = vmul.f32 %v4059_v5, %v880_v47  ;;  %v1348_v28 = vadd.f32 %v8771_v10, %v6254_v3  ;;  %v6505_v60 = vmul.f32 %v4104_v23, %v880_v47 }
 0x25c   : > { %8768 = vst [vmem:[#allocation165_spill] sm:$0xff] %v6492_v22  ;;  %v1502_v33 = vmul.f32 %v4107_v24, %v725_v55  ;;  %v1253_v32 = vadd.f32 %v6358_v51, %v1154_v39  ;;  %v1601_v4 = vmul.f32 %v4086_v17, %v6430_v9  ;;  %v1698_v62 = vmul.f32 %v4112_v26, %v880_v47 }
 0x25d   : > { %v1158_v21 = vadd.f32 %v1114_v42, %v1059_v37  ;;  %v1447_v54 = vadd.f32 %v6377_v57, %v1348_v28  ;;  %v8221_v22 = vrot.slane %v6499_v16, 7  ;;  %v8220_v46 = vrot.slane %v6499_v16, 1 }
 0x25e   : > { %v957_v3 = vmul.f32 %v4080_v14, %v6499_v16  ;;  %v6517_v10 = vadd.f32 %v1308_v52, %v1253_v32  ;;  %v1742_v55 = vadd.f32 %v1698_v62, %v1643_v56  ;;  %v1012_v51 = vmul.f32 %v4072_v11, %v6272_v40  ;;  %v532_v62 = vpop.f32.mrf.mxu0 }
 0x25f   : > { %v1115_v37 = vmul.f32 %v4069_v8, %v6499_v16  ;;  %v1546_v42 = vadd.f32 %v1502_v33, %v1447_v54  ;;  %v8772_v57 = vrot.slane %v6371_v50, 7  ;;  %v8773_v39 = vrot.slane %v6371_v50, 1 }
 0x260   : > { %v1349_v40 = vadd.f32 %v6292_v1, %v6323_v38  ;;  %v6539_v33 = vsel %vm6395_vm5, %v1742_v55, 0.0  ;;  %v1056_v32 = vadd.f32 %v1012_v51, %v957_v3  ;;  %v1602_v51 = vmul.f32 %v4089_v18, %v6499_v16 }
 0x261   : > { %v656_v47 = vsel %vm636_vm0, %v8772_v57, %v8221_v22  ;;  %v813_v56 = vsel %vm793_vm1, %v8773_v39, %v8220_v46  ;;  %8774 = vst [vmem:[#allocation50_spill] sm:$0xff] %v6539_v33  ;;  %v6547_v50 = vadd.f32 %v1601_v4, %v1546_v42  ;;  %v6552_v1 = vmul.f32 %v8719_v59, %v6539_v33 }
 0x262   : > { %v726_v52 = vsel %vm687_vm2, %v656_v47, 0.0  ;;  %v6545_v28 = vsel %vm847_vm3, %v813_v56, 0.0  ;;  %v6556_v38 = vmul.f32 %v8680_v2, %v6539_v33  ;;  %v1155_v57 = vadd.f32 %v6282_v25, %v1056_v32  ;;  %v8776_v56 = vld [vmem:[#allocation54_spill] sm:$0xff] }
 0x263   : > { %8775 = vst [vmem:[#allocation151_spill] sm:$0xff] %v6552_v1  ;;  %v1016_v55 = vmul.f32 %v4072_v11, %v726_v52  ;;  %v6561_v47 = vmul.f32 %v4121_v29, %v726_v52  ;;  %v1448_v3 = vadd.f32 %v1404_v63, %v1349_v40  ;;  %v1503_v4 = vmul.f32 %v4130_v34, %v726_v52  ;;  %v8777_v63 = vld [vmem:[#allocation38_spill] sm:$0xff] }
 0x264   : > { %v1699_v42 = vmul.f32 %v4135_v36, %v6545_v28  ;;  %v618_v39 = vrot.slane %v532_v62, 7  ;;  %v6570_v22 = vadd.f32 %v6424_v49, %v1155_v57  ;;  %v775_v54 = vrot.slane %v532_v62, 1 }
 0x265   : > { %v1060_v46 = vadd.f32 %v1016_v55, %v8776_v56  ;;  %v958_v25 = vmul.f32 %v4077_v13, %v532_v62  ;;  %v1547_v32 = vadd.f32 %v1503_v4, %v1448_v3  ;;  %v8778_v40 = vrot.slane %v8777_v63, 7  ;;  %v8784_v56 = vld [vmem:[#allocation57_spill] sm:$0xff] }
 0x266   : > { %v1743_v1 = vadd.f32 %v1699_v42, %v1644_v19  ;;  %v8779_v35 = vrot.slane %v6430_v9, 7  ;;  %v8780_v55 = vrot.slane %v8777_v63, 1  ;;  %v8781_v19 = vrot.slane %v6430_v9, 1 }
 0x267   : > { %v651_v52 = vsel %vm636_vm0, %v618_v39, %v8778_v40  ;;  %v6581_v18 = vadd.f32 %v1115_v37, %v1060_v46  ;;  %v6593_v3 = vadd.f32 %v1602_v51, %v1547_v32  ;;  %v1013_v37 = vmul.f32 %v4056_v0, %v6341_v15  ;;  %v8785_v15 = vld [vmem:[#allocation74_spill] sm:$0xff] }
 0x268   : > { %v653_v36 = vsel %vm636_vm0, %v8779_v35, %v618_v39  ;;  %v729_v49 = vsel %vm687_vm2, %v651_v52, 0.0  ;;  %v808_v13 = vsel %vm793_vm1, %v775_v54, %v8780_v55  ;;  %v810_v57 = vsel %vm793_vm1, %v8781_v19, %v775_v54  ;;  %v8786_v19 = vld [vmem:[#allocation51_spill] sm:$0xff] }
 0x269   : > { %v6597_v35 = vsel %vm6395_vm5, %v1743_v1, 0.0  ;;  %v884_v46 = vsel %vm847_vm3, %v808_v13, 0.0  ;;  %v1017_v54 = vmul.f32 %v4056_v0, %v653_v36  ;;  %v1019_v51 = vmul.f32 %v4056_v0, %v729_v49 }
 0x26a   : > { %8782 = vst [vmem:[#allocation153_spill] sm:$0xff] %v6597_v35  ;;  %v6606_v9 = vmul.f32 %v8730_v30, %v6597_v35  ;;  %v1057_v42 = vadd.f32 %v1013_v37, %v958_v25  ;;  %v1116_v53 = vmul.f32 %v4066_v7, %v532_v62  ;;  %v1213_v1 = vmul.f32 %v4059_v5, %v810_v57 }
 0x26b   : > { %v1215_v39 = vmul.f32 %v4059_v5, %v884_v46  ;;  %v1061_v32 = vadd.f32 %v1017_v54, %v8784_v56  ;;  %v1063_v63 = vadd.f32 %v1019_v51, %v8785_v15  ;;  %v1310_v40 = vmul.f32 %v4095_v20, %v653_v36 }
 0x26c   : > { %8783 = vst [vmem:[#allocation54_spill] sm:$0xff] %v6606_v9  ;;  %v1312_v52 = vmul.f32 %v4095_v20, %v729_v49  ;;  %v1156_v55 = vadd.f32 %v6351_v61, %v1057_v42  ;;  %v1257_v13 = vadd.f32 %v1213_v1, %v1158_v21  ;;  %v1350_v0 = vadd.f32 %v6362_v27, %v6388_v41  ;;  %v8787_v42 = vld [vmem:[#allocation62_spill] sm:$0xff] }
 0x26d   : > { %v1407_v7 = vmul.f32 %v4104_v23, %v810_v57  ;;  %v1160_v25 = vadd.f32 %v1116_v53, %v1061_v32  ;;  %v1162_v37 = vadd.f32 %v8786_v19, %v1063_v63  ;;  %v1409_v5 = vmul.f32 %v4104_v23, %v884_v46  ;;  %v8788_v32 = vld [vmem:[#allocation63_spill] sm:$0xff]  ;;  %v8789_v63 = vld [vmem:[#allocation60_spill] sm:$0xff] }
 0x26e   : > { %v1504_v54 = vmul.f32 %v4107_v24, %v653_v36  ;;  %v1255_v51 = vadd.f32 %v6497_v45, %v1156_v55  ;;  %v1356_v56 = vadd.f32 %v1312_v52, %v1257_v13  ;;  %v1449_v20 = vadd.f32 %v6505_v60, %v1350_v0  ;;  %v8790_v52 = vld [vmem:[#allocation77_spill] sm:$0xff]  ;;  %v8791_v13 = vld [vmem:[#allocation78_spill] sm:$0xff] }
 0x26f   : > { %v1451_v61 = vadd.f32 %v1407_v7, %v6517_v10  ;;  %v1259_v21 = vadd.f32 %v1215_v39, %v1160_v25  ;;  %v1261_v1 = vadd.f32 %v8787_v42, %v1162_v37  ;;  %v1506_v27 = vmul.f32 %v4107_v24, %v729_v49  ;;  %v8793_v49 = vld [vmem:[#allocation95_spill] sm:$0xff]  ;;  %v8794_v25 = vld [vmem:[#allocation52_spill] sm:$0xff]  ;;  %v8795_v37 = vld [vmem:[#allocation61_spill] sm:$0xff] }
 0x270   : > { %v1603_v41 = vmul.f32 %v4086_v17, %v532_v62  ;;  %v1354_v53 = vadd.f32 %v1310_v40, %v1255_v51  ;;  %v1455_v15 = vadd.f32 %v8788_v32, %v1356_v56  ;;  %v1548_v23 = vadd.f32 %v1504_v54, %v1449_v20  ;;  %v8792_v17 = vld [vmem:[#allocation80_spill] sm:$0xff]  ;;  %v8796_v51 = vld [vmem:[#allocation79_spill] sm:$0xff] }
 0x271   : > { %v1700_v36 = vmul.f32 %v4112_v26, %v810_v57  ;;  %v1358_v45 = vadd.f32 %v8789_v63, %v1259_v21  ;;  %v1360_v55 = vadd.f32 %v8790_v52, %v1261_v1  ;;  %v1550_v60 = vadd.f32 %v1506_v27, %v1451_v61  ;;  %v8798_v61 = vld [vmem:[#allocation116_spill] sm:$0xff]  ;;  %v8800_v27 = vld [vmem:[#allocation58_spill] sm:$0xff] }
 0x272   : > { %v1702_v10 = vmul.f32 %v4112_v26, %v884_v46  ;;  %v1453_v39 = vadd.f32 %v1409_v5, %v1354_v53  ;;  %v1554_v0 = vadd.f32 %v8791_v13, %v1455_v15  ;;  %v1647_v7 = vadd.f32 %v1603_v41, %v1548_v23  ;;  %v8797_v46 = vld [vmem:[#allocation126_spill] sm:$0xff]  ;;  %v8801_v53 = vld [vmem:[#allocation97_spill] sm:$0xff]  ;;  %v8810_v13 = vld [vmem:[#allocation111_spill] sm:$0xff] }
 0x273   : > { %v1744_v24 = vadd.f32 %v1700_v36, %v6547_v50  ;;  %v1457_v62 = vadd.f32 %v8792_v17, %v1358_v45  ;;  %v1459_v40 = vadd.f32 %v8793_v49, %v1360_v55  ;;  %v1649_v19 = vadd.f32 %v8794_v25, %v1550_v60  ;;  %v8799_v50 = vld [vmem:[#allocation64_spill] sm:$0xff]  ;;  %v8802_v15 = vld [vmem:[#allocation94_spill] sm:$0xff]  ;;  %v8803_v36 = vld [vmem:[#allocation109_spill] sm:$0xff] }
 0x274   : > { %v1774_v57 = vadd.s32 6, %v8676_v44  ;;  %v1552_v54 = vadd.f32 %v8795_v37, %v1453_v39  ;;  %v1653_v56 = vadd.f32 %v8796_v51, %v1554_v0  ;;  %v1746_v20 = vadd.f32 %v1702_v10, %v1647_v7  ;;  %v8804_v45 = vld [vmem:[#allocation81_spill] sm:$0xff]  ;;  %v8811_v7 = vld [vmem:[#allocation128_spill] sm:$0xff] }
 0x275   : > { %v1775_v26 = vadd.s32 7, %v8676_v44  ;;  %v1556_v5 = vadd.f32 %v8797_v46, %v1457_v62  ;;  %v1558_v21 = vadd.f32 %v8798_v61, %v1459_v40  ;;  %v1748_v42 = vadd.f32 %v8799_v50, %v1649_v19  ;;  %v8834_v61 = vld [vmem:[#allocation49_spill] sm:$0xff] }
 0x276   : > { %v1776_v1 = vadd.s32 8, %v8676_v44  ;;  %v1651_v41 = vadd.f32 %v8800_v27, %v1552_v54  ;;  %v1752_v32 = vadd.f32 %v8801_v53, %v1653_v56  ;;  %vm1786_vm6 = vcmp.ge.s32.totalorder %v1774_v57, 0 }
 0x277   : > { %vm1787_vm7 = vcmp.ge.s32.totalorder %v1775_v26, 0  ;;  %v1655_v23 = vadd.f32 %v8802_v15, %v1556_v5  ;;  %v1657_v63 = vadd.f32 %v8803_v36, %v1558_v21  ;;  %vm1798_vm9 = vcmp.lt.s32.totalorder %v1774_v57, 16  ;;  %v6714_v21 = vld [vmem:[#allocation8 + $0x6] sm:$0x3] }
 0x278   : > { %vm1788_vm8 = vcmp.ge.s32.totalorder %v1776_v1, 0  ;;  %v1750_v52 = vadd.f32 %v8804_v45, %v1651_v41  ;;  %vm1799_vm10 = vcmp.lt.s32.totalorder %v1775_v26, 16  ;;  %vm1800_vm13 = vcmp.lt.s32.totalorder %v1776_v1, 16  ;;  %vm6653_vm14 = vmand %vm1786_vm6, %vm1798_vm9  ;;  %v8830_v45 = vld [vmem:[#allocation21_spill] sm:$0xff] }
 0x279   : > { %v8807_v60 = vrot.slane %v6539_v33, 7  ;;  %v8808_v10 = vrot.slane %v6417_v48, 7  ;;  %v1754_v0 = vadd.f32 %v8810_v13, %v1655_v23  ;;  %v1756_v17 = vadd.f32 %v8811_v7, %v1657_v63  ;;  %vm6667_vm15 = vmand %vm1787_vm7, %vm1799_vm10 }
 0x27a   : > { %v6673_v49 = vsel %vm6653_vm14, %v1744_v24, 0.0  ;;  %v6677_v40 = vsel %vm6653_vm14, %v1746_v20, 0.0  ;;  %vm6679_vm4 = vmand %vm1788_vm8, %vm1800_vm13  ;;  %v6685_v19 = vsel %vm6667_vm15, %v1748_v42, 0.0  ;;  %v6689_v57 = vsel %vm6667_vm15, %v1750_v52, 0.0  ;;  %v6720_v42 = vpop.f32.mrf.mxu0 }
 0x27b   : > { %v6663_v39 = vsel %vm636_vm0, %v8808_v10, %v8807_v60  ;;  %8814 = vst [vmem:[#allocation57_spill] sm:$0xff] %v6673_v49  ;;  %8815 = vst [vmem:[#allocation74_spill] sm:$0xff] %v6677_v40  ;;  %v8228_v37 = vrot.slane %v6673_v49, 7  ;;  %v1908_v24 = vrot.slane %v6677_v40, 7  ;;  %v6695_v54 = vsel %vm6679_vm4, %v1752_v32, 0.0  ;;  %v8831_v60 = vld [vmem:[#allocation34_spill] sm:$0xff] }
 0x27c   : > { %8809 = vst [vmem:[#allocation38_spill] sm:$0xff] %v6663_v39  ;;  %8818 = vst [vmem:[#allocation51_spill] sm:$0xff] %v6685_v19  ;;  %v6699_v51 = vsel %vm6679_vm4, %v1754_v0, 0.0  ;;  %v6703_v20 = vsel %vm5235_vm12, %v1756_v17, 0.0  ;;  %v8227_v26 = vrot.slane %v6685_v19, 7  ;;  %v6718_v50 = vmul.f32 %v8719_v59, %v6673_v49 }
 0x27d   : > { %8819 = vst [vmem:[#allocation62_spill] sm:$0xff] %v6689_v57  ;;  %8820 = vst [vmem:[#allocation63_spill] sm:$0xff] %v6695_v54  ;;  %v6710_v46 = vsel %vm636_vm0, %v8228_v37, %v1908_v24  ;;  %v2174_v27 = vmul.f32 %v8719_v59, %v6677_v40  ;;  %v6732_v41 = vmul.f32 %v8719_v59, %v6685_v19  ;;  %v619_v13 = vrot.slane %v6720_v42, 7 }
 0x27e   : > { %8821 = vst [vmem:[#allocation60_spill] sm:$0xff] %v6699_v51  ;;  %8823 = vst [vmem:[#allocation77_spill] sm:$0xff] %v6703_v20  ;;  %v6726_v1 = vsel %vm636_vm0, %v1908_v24, %v8227_v26  ;;  %v2178_v53 = vmul.f32 %v8719_v59, %v6689_v57  ;;  %v6738_v32 = vmul.f32 %v8719_v59, %v6699_v51  ;;  %v776_v17 = vrot.slane %v6720_v42, 1  ;;  %v8846_v57 = vld [vmem:[#allocation55_spill] sm:$0xff] }
 0x27f   : > { %8824 = vst [vmem:[#allocation78_spill] sm:$0xff] %v6710_v46  ;;  %8825 = vst [vmem:[#allocation80_spill] sm:$0xff] %v6718_v50  ;;  %v2217_v15 = vmul.f32 %v6250_v31, %v6663_v39  ;;  %v2221_v23 = vmul.f32 %v6250_v31, %v6710_v46  ;;  %v6746_v36 = vmul.f32 %v8680_v2, %v6673_v49  ;;  %v8835_v37 = vrot.slane %v8834_v61, 7 }
 0x280   : > { %8826 = vst [vmem:[#allocation95_spill] sm:$0xff] %v6726_v1  ;;  %8827 = vst [vmem:[#allocation52_spill] sm:$0xff] %v6732_v41  ;;  %v2296_v63 = vmul.f32 %v8680_v2, %v6677_v40  ;;  %v6752_v52 = vrot.slane %v6714_v21, %v8830_v45  ;;  %v6756_v10 = vmul.f32 %v8831_v60, %v6677_v40  ;;  %v8836_v4 = vrot.slane %v6499_v16, 7 }
 0x281   : > { %8828 = vst [vmem:[#allocation61_spill] sm:$0xff] %v6738_v32  ;;  %8829 = vst [vmem:[#allocation79_spill] sm:$0xff] %v6746_v36  ;;  %v2249_v0 = vadd.f32 %v2217_v15, %v2174_v27  ;;  %v2253_v7 = vadd.f32 %v2221_v23, %v2178_v53  ;;  %v959_v24 = vmul.f32 %v4080_v14, %v6720_v42  ;;  %v8839_v20 = vrot.slane %v8834_v61, 1  ;;  %v8841_v61 = vld [vmem:[#allocation25_spill] sm:$0xff]  ;;  %v8843_v32 = vld [vmem:[#allocation83_spill] sm:$0xff] }
 0x282   : > { %8832 = vst [vmem:[#allocation126_spill] sm:$0xff] %v6756_v10  ;;  %v6764_v26 = vmul.f32 %v6752_v52, %v6710_v46  ;;  %v652_v5 = vsel %vm636_vm0, %v619_v13, %v8835_v37  ;;  %v654_v27 = vsel %vm636_vm0, %v8836_v4, %v619_v13  ;;  %v1014_v53 = vmul.f32 %v4072_v11, %v6405_v43  ;;  %v8850_v46 = vld [vmem:[#allocation68_spill] sm:$0xff] }
 0x283   : > { %v6777_v15 = vadd.f32 %v6556_v38, %v2249_v0  ;;  %v6779_v14 = vadd.f32 %v2296_v63, %v2253_v7  ;;  %v730_v23 = vsel %vm687_vm2, %v652_v5, 0.0  ;;  %v809_v37 = vsel %vm793_vm1, %v776_v17, %v8839_v20 }
 0x284   : > { %8833 = vst [vmem:[#allocation116_spill] sm:$0xff] %v6764_v26  ;;  %v8840_v51 = vrot.slane %v6499_v16, 1  ;;  %v885_v43 = vsel %vm847_vm3, %v809_v37, 0.0  ;;  %v1018_v38 = vmul.f32 %v4072_v11, %v654_v27  ;;  %v1020_v63 = vmul.f32 %v4072_v11, %v730_v23  ;;  %v8842_v16 = vld [vmem:[#allocation66_spill] sm:$0xff]  ;;  %v8844_v26 = vld [vmem:[#allocation161_spill] sm:$0xff] }
 0x285   : > { %8837 = vst [vmem:[#allocation64_spill] sm:$0xff] %v6777_v15  ;;  %8838 = vst [vmem:[#allocation58_spill] sm:$0xff] %v6779_v14  ;;  %v1058_v13 = vadd.f32 %v1014_v53, %v959_v24  ;;  %v1117_v5 = vmul.f32 %v4069_v8, %v6720_v42  ;;  %v1212_v0 = vmul.f32 %v8841_v61, %v6545_v28  ;;  %v8845_v8 = vld [vmem:[#allocation65_spill] sm:$0xff]  ;;  %v8847_v14 = vld [vmem:[#allocation148_spill] sm:$0xff] }
 0x286   : > { %v811_v4 = vsel %vm793_vm1, %v8840_v51, %v776_v17  ;;  %v1062_v7 = vadd.f32 %v1018_v38, %v8842_v16  ;;  %v1064_v51 = vadd.f32 %v1020_v63, %v8843_v32  ;;  %v1216_v17 = vmul.f32 %v8841_v61, %v885_v43  ;;  %v8848_v38 = vld [vmem:[#allocation162_spill] sm:$0xff] }
 0x287   : > { %v1214_v20 = vmul.f32 %v8841_v61, %v811_v4  ;;  %v1311_v37 = vmul.f32 %v4121_v29, %v654_v27  ;;  %v1157_v10 = vadd.f32 %v8844_v26, %v1058_v13  ;;  %v1313_v24 = vmul.f32 %v4121_v29, %v730_v23  ;;  %v8849_v26 = vld [vmem:[#allocation27_spill] sm:$0xff] }
 0x288   : > { %v1315_v53 = vmul.f32 %v4121_v29, %v8845_v8  ;;  %v1161_v54 = vadd.f32 %v1117_v5, %v1062_v7  ;;  %v1163_v1 = vadd.f32 %v8846_v57, %v1064_v51  ;;  %v1351_v16 = vadd.f32 %v8848_v38, %v8847_v14  ;;  %v8851_v5 = vld [vmem:[#allocation85_spill] sm:$0xff] }
 0x289   : > { %v1258_v11 = vadd.f32 %v1214_v20, %v6581_v18  ;;  %v1353_v32 = vadd.f32 %v6561_v47, %v6570_v22  ;;  %v1256_v63 = vadd.f32 %v1212_v0, %v1157_v10  ;;  %v1406_v13 = vmul.f32 %v8849_v26, %v6545_v28  ;;  %v8852_v8 = vld [vmem:[#allocation69_spill] sm:$0xff]  ;;  %v8853_v10 = vld [vmem:[#allocation88_spill] sm:$0xff] }
 0x28a   : > { %v1408_v18 = vmul.f32 %v8849_v26, %v811_v4  ;;  %v1260_v20 = vadd.f32 %v1216_v17, %v1161_v54  ;;  %v1262_v19 = vadd.f32 %v8850_v46, %v1163_v1  ;;  %v1410_v29 = vmul.f32 %v8849_v26, %v885_v43  ;;  %v8854_v17 = vld [vmem:[#allocation89_spill] sm:$0xff]  ;;  %v8855_v1 = vld [vmem:[#allocation26_spill] sm:$0xff] }
 0x28b   : > { %v1357_v61 = vadd.f32 %v1313_v24, %v1258_v11  ;;  %v1414_v57 = vmul.f32 %v8849_v26, %v8851_v5  ;;  %v1355_v7 = vadd.f32 %v1311_v37, %v1256_v63  ;;  %v1450_v14 = vadd.f32 %v1406_v13, %v1351_v16  ;;  %v8856_v38 = vld [vmem:[#allocation29_spill] sm:$0xff]  ;;  %v8857_v16 = vld [vmem:[#allocation103_spill] sm:$0xff] }
 0x28c   : > { %v1452_v51 = vadd.f32 %v1408_v18, %v1353_v32  ;;  %v1359_v47 = vadd.f32 %v1315_v53, %v1260_v20  ;;  %v1361_v0 = vadd.f32 %v8853_v10, %v1262_v19  ;;  %v1505_v28 = vmul.f32 %v4130_v34, %v654_v27  ;;  %v8858_v53 = vld [vmem:[#allocation70_spill] sm:$0xff]  ;;  %v8859_v19 = vld [vmem:[#allocation87_spill] sm:$0xff] }
 0x28d   : > { %v1456_v22 = vadd.f32 %v8852_v8, %v1357_v61  ;;  %v1507_v11 = vmul.f32 %v4130_v34, %v730_v23  ;;  %v1454_v54 = vadd.f32 %v1410_v29, %v1355_v7  ;;  %v1604_v24 = vmul.f32 %v8855_v1, %v6720_v42  ;;  %v8860_v23 = vld [vmem:[#allocation100_spill] sm:$0xff] }
 0x28e   : > { %v1701_v26 = vmul.f32 %v8856_v38, %v811_v4  ;;  %v1458_v37 = vadd.f32 %v1414_v57, %v1359_v47  ;;  %v1460_v32 = vadd.f32 %v8857_v16, %v1361_v0  ;;  %v1549_v63 = vadd.f32 %v1505_v28, %v1450_v14  ;;  %v8861_v29 = vld [vmem:[#allocation84_spill] sm:$0xff]  ;;  %v8863_v57 = vld [vmem:[#allocation71_spill] sm:$0xff]  ;;  %v8870_v0 = vld [vmem:[#allocation101_spill] sm:$0xff] }
 0x28f   : > { %v1555_v46 = vadd.f32 %v8854_v17, %v1456_v22  ;;  %v1551_v61 = vadd.f32 %v1507_v11, %v1452_v51  ;;  %v1553_v13 = vadd.f32 %v8858_v53, %v1454_v54  ;;  %v1703_v27 = vmul.f32 %v8856_v38, %v885_v43  ;;  %v8862_v7 = vld [vmem:[#allocation56_spill] sm:$0xff]  ;;  %v8867_v43 = vld [vmem:[#allocation146_spill] sm:$0xff]  ;;  %v8871_v11 = vld [vmem:[#allocation119_spill] sm:$0xff] }
 0x290   : > { %v1745_v34 = vadd.f32 %v1701_v26, %v6593_v3  ;;  %v1557_v20 = vadd.f32 %v8860_v23, %v1458_v37  ;;  %v1559_v5 = vadd.f32 %v8861_v29, %v1460_v32  ;;  %v1648_v42 = vadd.f32 %v1604_v24, %v1549_v63  ;;  %v8864_v22 = vld [vmem:[#allocation104_spill] sm:$0xff]  ;;  %v8873_v24 = vld [vmem:[#allocation90_spill] sm:$0xff]  ;;  %v8876_v32 = vld [vmem:[#allocation159_spill] sm:$0xff] }
 0x291   : > { %v1654_v18 = vadd.f32 %v8859_v19, %v1555_v46  ;;  %v1650_v4 = vadd.f32 %v8862_v7, %v1551_v61  ;;  %v1652_v8 = vadd.f32 %v8863_v57, %v1553_v13  ;;  %v8866_v47 = vrot.slane %v6597_v35, 7  ;;  %v8872_v46 = vld [vmem:[#allocation72_spill] sm:$0xff]  ;;  %v8878_v53 = vld [vmem:[#allocation121_spill] sm:$0xff] }
 0x292   : > { %v6841_v51 = vsel %vm6653_vm14, %v1745_v34, 0.0  ;;  %v8868_v10 = vrot.slane %v8867_v43, 7  ;;  %v1656_v28 = vadd.f32 %v8870_v0, %v1557_v20  ;;  %v1658_v54 = vadd.f32 %v8871_v11, %v1559_v5  ;;  %v8879_v19 = vld [vmem:[#allocation32_spill] sm:$0xff] }
 0x293   : > { %v1753_v14 = vadd.f32 %v8864_v22, %v1654_v18  ;;  %8865 = vst [vmem:[#allocation97_spill] sm:$0xff] %v6841_v51  ;;  %v1747_v17 = vadd.f32 %v1703_v27, %v1648_v42  ;;  %v1749_v1 = vadd.f32 %v8872_v46, %v1650_v4  ;;  %v1751_v38 = vadd.f32 %v8873_v24, %v1652_v8  ;;  %v8891_v24 = vld [vmem:[#allocation158_spill] sm:$0xff] }
 0x294   : > { %v6849_v3 = vsel %vm636_vm0, %v8868_v10, %v8866_v47  ;;  %v1907_v37 = vrot.slane %v6841_v51, 7  ;;  %v8875_v16 = vmov %v8868_v10  ;;  %v8877_v63 = vrot.slane %v8876_v32, 7 }
 0x295   : > { %8869 = vst [vmem:[#allocation94_spill] sm:$0xff] %v6849_v3  ;;  %v6857_v26 = vsel %vm6679_vm4, %v1753_v14, 0.0  ;;  %v1755_v13 = vadd.f32 %v8878_v53, %v1656_v28  ;;  %v1757_v18 = vadd.f32 %v8879_v19, %v1658_v54  ;;  %v6870_v27 = vsel %vm6653_vm14, %v1747_v17, 0.0 }
 0x296   : > { %8874 = vst [vmem:[#allocation109_spill] sm:$0xff] %v6857_v26  ;;  %v1949_v61 = vsel %vm636_vm0, %v8877_v63, %v8875_v16  ;;  %8880 = vst [vmem:[#allocation81_spill] sm:$0xff] %v6870_v27  ;;  %v6874_v34 = vsel %vm6667_vm15, %v1749_v1, 0.0  ;;  %v6878_v23 = vsel %vm6667_vm15, %v1751_v38, 0.0  ;;  %v1909_v20 = vrot.slane %v6870_v27, 7 }
 0x297   : > { %8881 = vst [vmem:[#allocation111_spill] sm:$0xff] %v6874_v34  ;;  %8882 = vst [vmem:[#allocation128_spill] sm:$0xff] %v6878_v23  ;;  %v1911_v29 = vrot.slane %v6874_v34, 7  ;;  %v8883_v5 = vmov %v8866_v47  ;;  %v6888_v55 = vsel %vm6679_vm4, %v1755_v13, 0.0  ;;  %v6892_v7 = vsel %vm5235_vm12, %v1757_v18, 0.0 }
 0x298   : > { %v1945_v42 = vsel %vm636_vm0, %v8883_v5, %v1907_v37  ;;  %8884 = vst [vmem:[#allocation135_spill] sm:$0xff] %v6888_v55  ;;  %8885 = vst [vmem:[#allocation21_spill] sm:$0xff] %v6892_v7  ;;  %v8238_v62 = vrot.slane %v6878_v23, 7  ;;  %v6897_v4 = vsel %vm687_vm2, %v1949_v61, 0.0  ;;  %v6904_v25 = vsel %vm636_vm0, %v1907_v37, %v1909_v20 }
 0x299   : > { %8886 = vst [vmem:[#allocation34_spill] sm:$0xff] %v6897_v4  ;;  %v1941_v8 = vsel %vm636_vm0, %v1909_v20, %v1911_v29  ;;  %8887 = vst [vmem:[#allocation49_spill] sm:$0xff] %v6904_v25  ;;  %v6908_v56 = vsel %vm687_vm2, %v1945_v42, 0.0  ;;  %v8240_v10 = vrot.slane %v6870_v27, 1  ;;  %v8239_v0 = vrot.slane %v6874_v34, 1  ;;  %v8893_v42 = vld [vmem:[#allocation35_spill] sm:$0xff] }
 0x29a   : > { %8888 = vst [vmem:[#allocation25_spill] sm:$0xff] %v6908_v56  ;;  %v6914_v22 = vsel %vm636_vm0, %v1911_v29, %v8238_v62  ;;  %v6918_v14 = vsel %vm687_vm2, %v1941_v8, 0.0  ;;  %v2173_v28 = vmul.f32 %v8730_v30, %v6841_v51  ;;  %v2175_v11 = vmul.f32 %v8730_v30, %v6870_v27 }
 0x29b   : > { %8889 = vst [vmem:[#allocation66_spill] sm:$0xff] %v6914_v22  ;;  %8890 = vst [vmem:[#allocation83_spill] sm:$0xff] %v6918_v14  ;;  %v2177_v54 = vmul.f32 %v8730_v30, %v6874_v34  ;;  %v2179_v17 = vmul.f32 %v8730_v30, %v6878_v23  ;;  %v2181_v46 = vmul.f32 %v8730_v30, %v6857_v26 }
 0x29c   : > { %v2183_v1 = vmul.f32 %v8730_v30, %v6888_v55  ;;  %v2216_v38 = vmul.f32 %v8891_v24, %v6897_v4  ;;  %v2065_v37 = vsel %vm793_vm1, %v8240_v10, %v8239_v0  ;;  %v2218_v16 = vmul.f32 %v8891_v24, %v6849_v3  ;;  %v6967_v10 = vld [vmem:[#allocation8 + $0x4] sm:$0x3] }
 0x29d   : > { %v2220_v63 = vmul.f32 %v8891_v24, %v6908_v56  ;;  %v2222_v61 = vmul.f32 %v8891_v24, %v6904_v25  ;;  %v6951_v53 = vsel %vm847_vm3, %v2065_v37, 0.0  ;;  %v2224_v13 = vmul.f32 %v8891_v24, %v6918_v14 }
 0x29e   : > { %8892 = vst [vmem:[#allocation161_spill] sm:$0xff] %v6951_v53  ;;  %v2226_v19 = vmul.f32 %v8891_v24, %v6914_v22  ;;  %v2248_v18 = vadd.f32 %v2216_v38, %v2173_v28  ;;  %v2250_v20 = vadd.f32 %v2218_v16, %v2175_v11  ;;  %v2293_v8 = vmul.f32 %v8893_v42, %v6597_v35 }
 0x29f   : > { %v2252_v29 = vadd.f32 %v2220_v63, %v2177_v54  ;;  %v2254_v5 = vadd.f32 %v2222_v61, %v2179_v17  ;;  %v6959_v57 = vadd.f32 %v2224_v13, %v2181_v46  ;;  %v2295_v37 = vmul.f32 %v8893_v42, %v6841_v51  ;;  %v8899_v17 = vld [vmem:[#allocation165_spill] sm:$0xff]  ;;  %v8903_v63 = vld [vmem:[#allocation22_spill] sm:$0xff] }
 0x2a0   : > { %v6961_v62 = vadd.f32 %v2226_v19, %v2183_v1  ;;  %v2297_v0 = vmul.f32 %v8893_v42, %v6870_v27  ;;  %v6971_v28 = vmul.f32 %v8893_v42, %v6874_v34  ;;  %v6975_v11 = vmul.f32 %v8893_v42, %v6878_v23  ;;  %v8904_v19 = vld [vmem:[#allocation39_spill] sm:$0xff] }
 0x2a1   : > { %8894 = vst [vmem:[#allocation65_spill] sm:$0xff] %v6959_v57  ;;  %v6979_v54 = vmul.f32 %v8893_v42, %v6888_v55  ;;  %v6982_v46 = vadd.f32 %v8899_v17, %v2248_v18  ;;  %v6984_v1 = vadd.f32 %v2293_v8, %v2250_v20  ;;  %v6986_v38 = vadd.f32 %v2295_v37, %v2252_v29  ;;  %v8907_v18 = vld [vmem:[#allocation124_spill] sm:$0xff]  ;;  %v8908_v20 = vld [vmem:[#allocation141_spill] sm:$0xff]  ;;  %v8910_v37 = vld [vmem:[#allocation75_spill] sm:$0xff] }
 0x2a2   : > { %8895 = vst [vmem:[#allocation55_spill] sm:$0xff] %v6961_v62  ;;  %8896 = vst [vmem:[#allocation148_spill] sm:$0xff] %v6971_v28  ;;  %v2329_v16 = vadd.f32 %v2297_v0, %v2254_v5  ;;  %v6990_v61 = vrot.slane %v6967_v10, %v8903_v63  ;;  %v6994_v13 = vrot.slane %v6714_v21, %v8903_v63  ;;  %v8909_v8 = vld [vmem:[#allocation93_spill] sm:$0xff]  ;;  %v1770_v5 = vadd.s32 2, %v8676_v44  ;;  %v8912_v63 = vld [vmem:[#allocation99_spill] sm:$0xff] }
 0x2a3   : > { %8897 = vst [vmem:[#allocation162_spill] sm:$0xff] %v6975_v11  ;;  %8898 = vst [vmem:[#allocation27_spill] sm:$0xff] %v6979_v54  ;;  %v6998_v47 = vmul.f32 %v8904_v19, %v6870_v27  ;;  %v8906_v54 = vld [vmem:[#allocation134_spill] sm:$0xff]  ;;  %v1729_v29 = vadd.f32 %v8909_v8, %v8908_v20  ;;  %v7010_v21 = vsel %vm5162_vm11, %v8910_v37, 0.0  ;;  %v7015_v55 = vsel %vm5162_vm11, %v8912_v63, 0.0 }
 0x2a4   : > { %8900 = vst [vmem:[#allocation68_spill] sm:$0xff] %v6982_v46  ;;  %8901 = vst [vmem:[#allocation85_spill] sm:$0xff] %v6984_v1  ;;  %v1728_v17 = vadd.f32 %v8907_v18, %v8906_v54  ;;  %v2372_v0 = vmul.f32 %v6990_v61, %v6951_v53  ;;  %v7019_v54 = vmul.f32 %v6994_v13, %v6849_v3  ;;  %vm1782_vm12 = vcmp.ge.s32.totalorder %v1770_v5, 0 }
 0x2a5   : > { %8902 = vst [vmem:[#allocation69_spill] sm:$0xff] %v6986_v38  ;;  %8905 = vst [vmem:[#allocation88_spill] sm:$0xff] %v6998_v47  ;;  %v7023_v18 = vmul.f32 %v6994_v13, %v6904_v25  ;;  %v7027_v44 = vmul.f32 %v6994_v13, %v6918_v14  ;;  %v2447_v20 = vmul.f32 %v6994_v13, %v6914_v22  ;;  %vm1794_vm5 = vcmp.lt.s32.totalorder %v1770_v5, 16  ;;  %v8919_v5 = vld [vmem:[#allocation115_spill] sm:$0xff]  ;;  %v8925_v47 = vld [vmem:[#allocation30_spill] sm:$0xff] }
 0x2a6   : > { %8913 = vst [vmem:[#allocation89_spill] sm:$0xff] %v7019_v54  ;;  %v2404_v8 = vadd.f32 %v2372_v0, %v2329_v16  ;;  %v1886_v7 = vrot.slane %v7010_v21, 7  ;;  %vm1806_vm11 = vmand %vm1782_vm12, %vm1794_vm5  ;;  %v1887_v37 = vrot.slane %v7015_v55, 7  ;;  %v2006_v63 = vrot.slane %v7010_v21, 1  ;;  %v8918_v16 = vld [vmem:[#allocation114_spill] sm:$0xff] }
 0x2a7   : > { %8914 = vst [vmem:[#allocation26_spill] sm:$0xff] %v7023_v18  ;;  %8915 = vst [vmem:[#allocation29_spill] sm:$0xff] %v7027_v44  ;;  %v2007_v11 = vrot.slane %v7015_v55, 1  ;;  %v8916_v18 = vld [vmem:[#allocation120_spill] sm:$0xff]  ;;  %v7038_v44 = vsel %vm1806_vm11, %v1728_v17, 0.0  ;;  %v7040_v14 = vsel %vm1806_vm11, %v1729_v29, 0.0 }
 0x2a8   : > { %v7036_v26 = vadd.f32 %v2447_v20, %v2404_v8  ;;  %v7043_v0 = vsel %vm1806_vm11, %v8918_v16, 0.0  ;;  %v7046_v22 = vsel %vm1806_vm11, %v8919_v5, 0.0  ;;  %v1890_v34 = vrot.slane %v7038_v44, 7  ;;  %v8920_v20 = vld [vmem:[#allocation132_spill] sm:$0xff]  ;;  %v8924_v5 = vld [vmem:[#allocation110_spill] sm:$0xff] }
 0x2a9   : > { %v1891_v28 = vrot.slane %v7040_v14, 7  ;;  %v1892_v57 = vrot.slane %v7043_v0, 7  ;;  %v1893_v62 = vrot.slane %v7046_v22, 7  ;;  %v8921_v8 = vrot.slane %v8920_v20, 7  ;;  %v8922_v29 = vld [vmem:[#allocation96_spill] sm:$0xff] }
 0x2aa   : > { %8917 = vst [vmem:[#allocation103_spill] sm:$0xff] %v7036_v26  ;;  %v8923_v26 = vrot.slane %v8922_v29, 7  ;;  %v1964_v23 = vsel %vm636_vm0, %v8924_v5, %v1886_v7  ;;  %v8926_v53 = vrot.slane %v8925_v47, 7  ;;  %v8932_v40 = vrot.slane %v8925_v47, 1 }
 0x2ab   : > { %v1962_v17 = vsel %vm636_vm0, %v1886_v7, %v8921_v8  ;;  %v7069_v54 = vsel %vm636_vm0, %v1890_v34, %v1892_v57  ;;  %v1960_v56 = vsel %vm636_vm0, %v8921_v8, %v1890_v34  ;;  %v8927_v7 = vld [vmem:[#allocation91_spill] sm:$0xff]  ;;  %v1966_v34 = vsel %vm687_vm2, %v1964_v23, 0.0 }
 0x2ac   : > { %v1963_v16 = vsel %vm636_vm0, %v1887_v37, %v8923_v26  ;;  %v1956_v25 = vsel %vm636_vm0, %v1892_v57, %v8926_v53  ;;  %v1961_v36 = vsel %vm636_vm0, %v8923_v26, %v1891_v28  ;;  %v8928_v5 = vrot.slane %v8927_v7, 7  ;;  %v8929_v57 = vld [vmem:[#allocation117_spill] sm:$0xff] }
 0x2ad   : > { %v7085_v53 = vsel %vm636_vm0, %v1891_v28, %v1893_v62  ;;  %v1965_v41 = vsel %vm636_vm0, %v8929_v57, %v1887_v37  ;;  %v7096_v26 = vsel %vm687_vm2, %v1960_v56, 0.0  ;;  %v2010_v23 = vrot.slane %v7038_v44, 1  ;;  %v8930_v57 = vld [vmem:[#allocation107_spill] sm:$0xff] }
 0x2ae   : > { %v1957_v38 = vsel %vm636_vm0, %v1893_v62, %v8928_v5  ;;  %v1967_v8 = vsel %vm687_vm2, %v1965_v41, 0.0  ;;  %v7100_v5 = vsel %vm687_vm2, %v1961_v36, 0.0  ;;  %v7104_v62 = vsel %vm687_vm2, %v1956_v25, 0.0 }
 0x2af   : > { %v7108_v28 = vsel %vm687_vm2, %v1957_v38, 0.0  ;;  %v2011_v41 = vrot.slane %v7040_v14, 1  ;;  %v2012_v37 = vrot.slane %v7043_v0, 1  ;;  %v2013_v56 = vrot.slane %v7046_v22, 1 }
 0x2b0   : > { %v8931_v36 = vrot.slane %v8916_v18, 1  ;;  %v8933_v38 = vrot.slane %v8920_v20, 1  ;;  %v8934_v39 = vmov %v8932_v40  ;;  %v8938_v51 = vrot.slane %v8927_v7, 1 }
 0x2b1   : > { %v2080_v1 = vsel %vm793_vm1, %v2012_v37, %v8934_v39  ;;  %v7135_v27 = vsel %vm793_vm1, %v2010_v23, %v2012_v37  ;;  %v2200_v4 = vmul.f32 %v8891_v24, %v1967_v8  ;;  %v2201_v46 = vmul.f32 %v6250_v31, %v1962_v17 }
 0x2b2   : > { %v7121_v25 = vsel %vm793_vm1, %v8932_v40, %v8931_v36  ;;  %v7127_v3 = vsel %vm793_vm1, %v2006_v63, %v8933_v38  ;;  %v8935_v15 = vmov %v8933_v38  ;;  %v8936_v36 = vrot.slane %v8922_v29, 1 }
 0x2b3   : > { %v2084_v40 = vsel %vm793_vm1, %v8935_v15, %v2010_v23  ;;  %v8937_v38 = vrot.slane %v8930_v57, 1  ;;  %v8939_v37 = vmov %v8938_v51  ;;  %v7159_v15 = vsel %vm793_vm1, %v2011_v41, %v2013_v56 }
 0x2b4   : > { %v2085_v63 = vsel %vm793_vm1, %v8936_v36, %v2011_v41  ;;  %v2081_v20 = vsel %vm793_vm1, %v2013_v56, %v8939_v37  ;;  %v8940_v23 = vmov %v8936_v36  ;;  %v2090_v49 = vsel %vm847_vm3, %v2084_v40, 0.0 }
 0x2b5   : > { %v7151_v39 = vsel %vm793_vm1, %v8938_v51, %v8937_v38  ;;  %v2087_v36 = vsel %vm793_vm1, %v2007_v11, %v8940_v23  ;;  %v2091_v51 = vsel %vm847_vm3, %v2085_v63, 0.0  ;;  %v7171_v38 = vsel %vm847_vm3, %v2080_v1, 0.0 }
 0x2b6   : > { %v7175_v37 = vsel %vm847_vm3, %v2081_v20, 0.0  ;;  %v2156_v29 = vmul.f32 %v8719_v59, %v7038_v44  ;;  %v2157_v11 = vmul.f32 %v8730_v30, %v7040_v14  ;;  %v2158_v41 = vmul.f32 %v8719_v59, %v7043_v0 }
 0x2b7   : > { %v2159_v56 = vmul.f32 %v8730_v30, %v7046_v22  ;;  %v2160_v1 = vmul.f32 %v8719_v59, %v8925_v47  ;;  %v2161_v40 = vmul.f32 %v8730_v30, %v8927_v7  ;;  %v2162_v63 = vmul.f32 %v8719_v59, %v8916_v18  ;;  %v8942_v18 = vld [vmem:[#allocation154_spill] sm:$0xff] }
 0x2b8   : > { %v2163_v20 = vmul.f32 %v8730_v30, %v8930_v57  ;;  %v2199_v23 = vmul.f32 %v6250_v31, %v1966_v34  ;;  %v2202_v50 = vmul.f32 %v8891_v24, %v1963_v16  ;;  %v2203_v35 = vmul.f32 %v6250_v31, %v7096_v26  ;;  %v8941_v57 = vld [vmem:[#allocation149_spill] sm:$0xff] }
 0x2b9   : > { %v2204_v33 = vmul.f32 %v8891_v24, %v7100_v5  ;;  %v2205_v59 = vmul.f32 %v6250_v31, %v7069_v54  ;;  %v2206_v30 = vmul.f32 %v8891_v24, %v7085_v53  ;;  %v2207_v34 = vmul.f32 %v6250_v31, %v7104_v62 }
 0x2ba   : > { %v2208_v17 = vmul.f32 %v8891_v24, %v7108_v28  ;;  %v2231_v8 = vadd.f32 %v2199_v23, %v2156_v29  ;;  %v2232_v16 = vadd.f32 %v2200_v4, %v2157_v11  ;;  %v2233_v9 = vadd.f32 %v2201_v46, %v2158_v41  ;;  %v8944_v4 = vld [vmem:[#allocation118_spill] sm:$0xff] }
 0x2bb   : > { %v2234_v43 = vadd.f32 %v2202_v50, %v2159_v56  ;;  %v2235_v48 = vadd.f32 %v2203_v35, %v2160_v1  ;;  %v2236_v32 = vadd.f32 %v2204_v33, %v2161_v40  ;;  %v2237_v6 = vadd.f32 %v2205_v59, %v2162_v63  ;;  %v8943_v33 = vld [vmem:[#allocation137_spill] sm:$0xff]  ;;  %v8945_v56 = vld [vmem:[#allocation130_spill] sm:$0xff] }
 0x2bc   : > { %v2238_v12 = vadd.f32 %v2206_v30, %v2163_v20  ;;  %v2239_v58 = vadd.f32 %v2207_v34, %v8941_v57  ;;  %v2240_v19 = vadd.f32 %v2208_v17, %v8942_v18  ;;  %v2274_v7 = vmul.f32 %v8680_v2, %v7010_v21  ;;  %v8946_v40 = vld [vmem:[#allocation98_spill] sm:$0xff] }
 0x2bd   : > { %v2275_v31 = vmul.f32 %v8893_v42, %v7015_v55  ;;  %v2278_v29 = vmul.f32 %v8680_v2, %v7038_v44  ;;  %v2279_v50 = vmul.f32 %v8893_v42, %v7040_v14  ;;  %v2280_v59 = vmul.f32 %v8680_v2, %v7043_v0  ;;  %v8982_v2 = vld [vmem:[#allocation155_spill] sm:$0xff] }
 0x2be   : > { %v2281_v30 = vmul.f32 %v8893_v42, %v7046_v22  ;;  %v2308_v35 = vadd.f32 %v8943_v33, %v2233_v9  ;;  %v2309_v46 = vadd.f32 %v8944_v4, %v2234_v43  ;;  %v2306_v21 = vadd.f32 %v2274_v7, %v2231_v8  ;;  %v8947_v4 = vld [vmem:[#allocation45_spill] sm:$0xff] }
 0x2bf   : > { %v2307_v18 = vadd.f32 %v2275_v31, %v2232_v16  ;;  %v2310_v57 = vadd.f32 %v2278_v29, %v2235_v48  ;;  %v2311_v55 = vadd.f32 %v2279_v50, %v2236_v32  ;;  %v2312_v11 = vadd.f32 %v2280_v59, %v2237_v6 }
 0x2c0   : > { %v2313_v41 = vadd.f32 %v2281_v30, %v2238_v12  ;;  %v2314_v1 = vadd.f32 %v8945_v56, %v2239_v58  ;;  %v2315_v63 = vadd.f32 %v8946_v40, %v2240_v19  ;;  %v7229_v20 = vrot.slane %v6967_v10, %v8830_v45 }
 0x2c1   : > { %v2350_v23 = vmul.f32 %v6990_v61, %v2087_v36  ;;  %v2352_v9 = vmul.f32 %v6990_v61, %v2091_v51  ;;  %v2354_v43 = vmul.f32 %v6990_v61, %v7159_v15  ;;  %v2356_v31 = vmul.f32 %v6990_v61, %v7175_v37 }
 0x2c2   : > { %v2358_v6 = vmul.f32 %v6990_v61, %v7151_v39  ;;  %v2424_v58 = vmul.f32 %v6752_v52, %v7096_v26  ;;  %v2425_v12 = vmul.f32 %v6994_v13, %v7100_v5  ;;  %v2349_v48 = vmul.f32 %v7229_v20, %v7127_v3 }
 0x2c3   : > { %v2351_v45 = vmul.f32 %v7229_v20, %v2090_v49  ;;  %v2353_v32 = vmul.f32 %v7229_v20, %v7135_v27  ;;  %v2355_v10 = vmul.f32 %v7229_v20, %v7171_v38  ;;  %v2357_v19 = vmul.f32 %v7229_v20, %v7121_v25 }
 0x2c4   : > { %v2382_v7 = vadd.f32 %v2350_v23, %v2307_v18  ;;  %v2384_v36 = vadd.f32 %v2352_v9, %v2309_v46  ;;  %v2386_v26 = vadd.f32 %v2354_v43, %v2311_v55  ;;  %v2381_v51 = vadd.f32 %v2349_v48, %v2306_v21  ;;  %v8948_v21 = vld [vmem:[#allocation108_spill] sm:$0xff]  ;;  %v8950_v23 = vld [vmem:[#allocation129_spill] sm:$0xff] }
 0x2c5   : > { %v2383_v34 = vadd.f32 %v2351_v45, %v2308_v35  ;;  %v2385_v5 = vadd.f32 %v2353_v32, %v2310_v57  ;;  %v7252_v17 = vadd.f32 %v2355_v10, %v2312_v11  ;;  %v7254_v3 = vadd.f32 %v2356_v31, %v2313_v41  ;;  %v8953_v45 = vld [vmem:[#allocation91_spill] sm:$0xff] }
 0x2c6   : > { %v7256_v49 = vadd.f32 %v2357_v19, %v2314_v1  ;;  %v7258_v8 = vadd.f32 %v2358_v6, %v2315_v63  ;;  %v2426_v16 = vmul.f32 %v6752_v52, %v7069_v54  ;;  %v2427_v29 = vmul.f32 %v6994_v13, %v7085_v53  ;;  %v8954_v32 = vld [vmem:[#allocation39_spill] sm:$0xff] }
 0x2c7   : > { %v2428_v50 = vmul.f32 %v6752_v52, %v7104_v62  ;;  %v2429_v59 = vmul.f32 %v6994_v13, %v7108_v28  ;;  %v2456_v30 = vadd.f32 %v2424_v58, %v2381_v51  ;;  %v2457_v33 = vadd.f32 %v2425_v12, %v2382_v7  ;;  %v8957_v51 = vld [vmem:[#allocation147_spill] sm:$0xff] }
 0x2c8   : > { %v2458_v35 = vadd.f32 %v2426_v16, %v2383_v34  ;;  %v2499_v46 = vmul.f32 %v8947_v4, %v7135_v27  ;;  %v2500_v18 = vmul.f32 %v8948_v21, %v7159_v15  ;;  %v2459_v57 = vadd.f32 %v2427_v29, %v2384_v36  ;;  %v8949_v15 = vld [vmem:[#allocation46_spill] sm:$0xff]  ;;  %v8956_v36 = vld [vmem:[#allocation76_spill] sm:$0xff] }
 0x2c9   : > { %v2460_v54 = vadd.f32 %v2428_v50, %v2385_v5  ;;  %v2461_v55 = vadd.f32 %v2429_v59, %v2386_v26  ;;  %v2501_v53 = vmul.f32 %v8947_v4, %v7171_v38  ;;  %v2502_v11 = vmul.f32 %v8948_v21, %v7175_v37  ;;  %v8951_v38 = vld [vmem:[#allocation123_spill] sm:$0xff]  ;;  %v8952_v37 = vld [vmem:[#allocation133_spill] sm:$0xff]  ;;  %v8959_v5 = vld [vmem:[#allocation120_spill] sm:$0xff] }
 0x2ca   : > { %v2503_v41 = vmul.f32 %v8947_v4, %v7121_v25  ;;  %v2504_v56 = vmul.f32 %v8948_v21, %v7151_v39  ;;  %v2531_v1 = vadd.f32 %v2499_v46, %v2456_v30  ;;  %v2532_v27 = vadd.f32 %v2500_v18, %v2457_v33  ;;  %v8962_v33 = vld [vmem:[#allocation152_spill] sm:$0xff]  ;;  %v8964_v46 = vld [vmem:[#allocation107_spill] sm:$0xff] }
 0x2cb   : > { %v2533_v40 = vadd.f32 %v2501_v53, %v2458_v35  ;;  %v2574_v63 = vmul.f32 %v8949_v15, %v7104_v62  ;;  %v2575_v9 = vmul.f32 %v8950_v23, %v7108_v28  ;;  %v2534_v43 = vadd.f32 %v2502_v11, %v2459_v57  ;;  %v8955_v62 = vld [vmem:[#allocation37_spill] sm:$0xff]  ;;  %v8967_v11 = vld [vmem:[#allocation142_spill] sm:$0xff]  ;;  %v9104_v57 = vld [vmem:[#allocation48_spill] sm:$0xff] }
 0x2cc   : > { %v2576_v31 = vmul.f32 %v8949_v15, %v8951_v38  ;;  %v2577_v6 = vmul.f32 %v8950_v23, %v8952_v37  ;;  %v2649_v58 = vmul.f32 %v8831_v60, %v8925_v47  ;;  %v2650_v10 = vmul.f32 %v8954_v32, %v8953_v45 }
 0x2cd   : > { %v2606_v12 = vadd.f32 %v2574_v63, %v2531_v1  ;;  %v2607_v48 = vadd.f32 %v2575_v9, %v2532_v27  ;;  %v2724_v19 = vmul.f32 %v8955_v62, %v7121_v25  ;;  %v2725_v26 = vmul.f32 %v8956_v36, %v7151_v39  ;;  %v8968_v27 = vld [vmem:[#allocation145_spill] sm:$0xff] }
 0x2ce   : > { %v2608_v7 = vadd.f32 %v2576_v31, %v2533_v40  ;;  %v2609_v28 = vadd.f32 %v2577_v6, %v2534_v43  ;;  %v8958_v34 = vrot.slane %v8957_v51, 1  ;;  %v8960_v16 = vrot.slane %v8959_v5, 1 }
 0x2cf   : > { %v2681_v59 = vadd.f32 %v2649_v58, %v2606_v12  ;;  %v2682_v30 = vadd.f32 %v2650_v10, %v2607_v48  ;;  %v8963_v35 = vrot.slane %v8962_v33, 1  ;;  %v8965_v18 = vrot.slane %v8964_v46, 1 }
 0x2d0   : > { %v2076_v50 = vsel %vm793_vm1, %v8960_v16, %v8958_v34  ;;  %v2683_v1 = vadd.f32 %v8967_v11, %v2608_v7  ;;  %v2684_v40 = vadd.f32 %v8968_v27, %v2609_v28  ;;  %v8969_v6 = vrot.slane %v8957_v51, 7  ;;  %v8974_v34 = vld [vmem:[#allocation156_spill] sm:$0xff] }
 0x2d1   : > { %v2077_v25 = vsel %vm793_vm1, %v8965_v18, %v8963_v35  ;;  %v7310_v53 = vsel %vm847_vm3, %v2076_v50, 0.0  ;;  %v2756_v9 = vadd.f32 %v2724_v19, %v2681_v59  ;;  %v2757_v43 = vadd.f32 %v2725_v26, %v2682_v30  ;;  %v8975_v30 = vld [vmem:[#allocation159_spill] sm:$0xff]  ;;  %v8977_v11 = vld [vmem:[#allocation136_spill] sm:$0xff] }
 0x2d2   : > { %v7314_v39 = vsel %vm847_vm3, %v2077_v25, 0.0  ;;  %v2726_v63 = vmul.f32 %v8955_v62, %v7310_v53  ;;  %v8970_v58 = vrot.slane %v8959_v5, 7  ;;  %v8971_v10 = vrot.slane %v8962_v33, 7 }
 0x2d3   : > { %v2727_v31 = vmul.f32 %v8956_v36, %v7314_v39  ;;  %v8972_v7 = vrot.slane %v8964_v46, 7  ;;  %v2020_v16 = vrot.slane %v8974_v34, 1  ;;  %3467 = vtanh.f32 %v2756_v9 }
 0x2d4   : > { %v1952_v12 = vsel %vm636_vm0, %v8970_v58, %v8969_v6  ;;  %v2758_v48 = vadd.f32 %v2726_v63, %v2683_v1  ;;  %v2021_v35 = vrot.slane %v8975_v30, 1  ;;  %3469 = vtanh.f32 %v2757_v43  ;;  %v8980_v58 = vld [vmem:[#allocation139_spill] sm:$0xff] }
 0x2d5   : > { %v1953_v28 = vsel %vm636_vm0, %v8972_v7, %v8971_v10  ;;  %v7336_v26 = vsel %vm687_vm2, %v1952_v12, 0.0  ;;  %v2759_v50 = vadd.f32 %v2727_v31, %v2684_v40  ;;  %v8976_v18 = vrot.slane %v8957_v51, 1  ;;  %v8979_v31 = vld [vmem:[#allocation163_spill] sm:$0xff] }
 0x2d6   : > { %v7341_v59 = vsel %vm687_vm2, %v1953_v28, 0.0  ;;  %v2211_v1 = vmul.f32 %v8977_v11, %v7336_v26  ;;  %3471 = vtanh.f32 %v2758_v48  ;;  %v8978_v40 = vrot.slane %v8962_v33, 1 }
 0x2d7   : > { %v2074_v25 = vsel %vm793_vm1, %v8976_v18, %v2020_v16  ;;  %v2212_v27 = vmul.f32 %v8891_v24, %v7341_v59  ;;  %3473 = vtanh.f32 %v2759_v50  ;;  %v2535_v48 = vadd.f32 %v2503_v41, %v2460_v54 }
 0x2d8   : > { %v2075_v63 = vsel %vm793_vm1, %v8978_v40, %v2021_v35  ;;  %v2361_v9 = vmul.f32 %v7229_v20, %v2074_v25  ;;  %v7358_v43 = vmul.f32 %v8947_v4, %v2074_v25  ;;  %v2243_v6 = vadd.f32 %v2211_v1, %v8979_v31  ;;  %v8981_v40 = vld [vmem:[#allocation150_spill] sm:$0xff] }
 0x2d9   : > { %v2244_v12 = vadd.f32 %v2212_v27, %v8980_v58  ;;  %v2362_v10 = vmul.f32 %v6990_v61, %v2075_v63  ;;  %v7364_v7 = vmul.f32 %v8948_v21, %v2075_v63  ;;  %v2536_v28 = vadd.f32 %v2504_v56, %v2461_v55 }
 0x2da   : > { %v2578_v18 = vmul.f32 %v8949_v15, %v7336_v26  ;;  %v2318_v42 = vadd.f32 %v8981_v40, %v2243_v6  ;;  %v2579_v50 = vmul.f32 %v8950_v23, %v7341_v59  ;;  %v2653_v1 = vmul.f32 %v8831_v60, %v8957_v51 }
 0x2db   : > { %v2319_v46 = vadd.f32 %v8982_v2, %v2244_v12  ;;  %v2654_v31 = vmul.f32 %v8954_v32, %v8962_v33  ;;  %v2728_v54 = vmul.f32 %v8955_v62, %v2074_v25  ;;  %v2729_v55 = vmul.f32 %v8956_v36, %v2075_v63 }
 0x2dc   : > { %v2610_v27 = vadd.f32 %v2578_v18, %v2535_v48  ;;  %v7378_v41 = vadd.f32 %v2361_v9, %v2318_v42  ;;  %v2611_v6 = vadd.f32 %v2579_v50, %v2536_v28  ;;  %v8984_v2 = vrot.slane %v8974_v34, 7 }
 0x2dd   : > { %v7380_v56 = vadd.f32 %v2362_v10, %v2319_v46  ;;  %v8985_v58 = vrot.slane %v8957_v51, 7  ;;  %v8986_v18 = vrot.slane %v8975_v30, 7  ;;  %v8987_v25 = vrot.slane %v8962_v33, 7  ;;  %v8988_v46 = vld [vmem:[#allocation131_spill] sm:$0xff]  ;;  %v8990_v10 = vld [vmem:[#allocation146_spill] sm:$0xff] }
 0x2de   : > { %v2685_v48 = vadd.f32 %v2653_v1, %v2610_v27  ;;  %v8989_v63 = vrot.slane %v8988_v46, 1  ;;  %v8991_v28 = vrot.slane %v8990_v10, 1  ;;  %v2686_v50 = vadd.f32 %v2654_v31, %v2611_v6 }
 0x2df   : > { %8983 = vst [vmem:[#allocation70_spill] sm:$0xff] %v7380_v56  ;;  %v7388_v12 = vsel %vm636_vm0, %v8985_v58, %v8984_v2  ;;  %v7396_v42 = vsel %vm636_vm0, %v8987_v25, %v8986_v18  ;;  %v2430_v6 = vmul.f32 %v6752_v52, %v8951_v38 }
 0x2e0   : > { %v2072_v9 = vsel %vm793_vm1, %v2020_v16, %v8989_v63  ;;  %v2073_v40 = vsel %vm793_vm1, %v2021_v35, %v8991_v28  ;;  %v2213_v2 = vmul.f32 %v8977_v11, %v7388_v12  ;;  %v2760_v58 = vadd.f32 %v2728_v54, %v2685_v48  ;;  %v8992_v35 = vld [vmem:[#allocation151_spill] sm:$0xff]  ;;  %v8993_v28 = vld [vmem:[#allocation54_spill] sm:$0xff] }
 0x2e1   : > { %v2102_v1 = vsel %vm847_vm3, %v2072_v9, 0.0  ;;  %v2103_v27 = vsel %vm847_vm3, %v2073_v40, 0.0  ;;  %v2214_v18 = vmul.f32 %v8891_v24, %v7396_v42  ;;  %v2761_v63 = vadd.f32 %v2729_v55, %v2686_v50  ;;  %v3468_v24 = vpop.eup %3467  ;;  %v8994_v55 = vld [vmem:[#allocation157_spill] sm:$0xff] }
 0x2e2   : > { %v2363_v16 = vmul.f32 %v7229_v20, %v2102_v1  ;;  %v2364_v25 = vmul.f32 %v6990_v61, %v2103_v27  ;;  %v2245_v31 = vadd.f32 %v2213_v2, %v8992_v35  ;;  %v2431_v9 = vmul.f32 %v6994_v13, %v8952_v37  ;;  %v3470_v35 = vpop.eup %3469 }
 0x2e3   : > { %3475 = vtanh.f32 %v2760_v58  ;;  %v2246_v40 = vadd.f32 %v2214_v18, %v8993_v28  ;;  %v2505_v54 = vmul.f32 %v8947_v4, %v7310_v53  ;;  %v2506_v48 = vmul.f32 %v8948_v21, %v7314_v39  ;;  %v8995_v58 = vld [vmem:[#allocation160_spill] sm:$0xff]  ;;  %v3472_v51 = vpop.eup %3471 }
 0x2e4   : > { %3477 = vtanh.f32 %v2761_v63  ;;  %v2320_v50 = vadd.f32 %v8994_v55, %v2245_v31  ;;  %v2462_v2 = vadd.f32 %v2430_v6, %v7252_v17  ;;  %v2463_v38 = vadd.f32 %v2431_v9, %v7254_v3  ;;  %v3474_v6 = vpop.eup %3473 }
 0x2e5   : > { %v2820_v37 = vadd.f32 %v3468_v24, %v7038_v44  ;;  %v2321_v33 = vadd.f32 %v8995_v58, %v2246_v40  ;;  %v7432_v18 = vmul.f32 %v8947_v4, %v2102_v1  ;;  %v7435_v28 = vmul.f32 %v8948_v21, %v2103_v27 }
 0x2e6   : > { %v2821_v63 = vadd.f32 %v3470_v35, %v7040_v14  ;;  %v7438_v56 = vadd.f32 %v2363_v16, %v2320_v50  ;;  %v2537_v31 = vadd.f32 %v2505_v54, %v2462_v2  ;;  %v2538_v17 = vadd.f32 %v2506_v48, %v2463_v38  ;;  %v8998_v2 = vld [vmem:[#allocation50_spill] sm:$0xff]  ;;  %v8999_v35 = vld [vmem:[#allocation153_spill] sm:$0xff] }
 0x2e7   : > { %v2822_v3 = vadd.f32 %v3472_v51, %v7043_v0  ;;  %v7441_v9 = vadd.f32 %v2364_v25, %v2321_v33  ;;  %v2580_v24 = vmul.f32 %v8949_v15, %v7388_v12  ;;  %v2581_v44 = vmul.f32 %v8950_v23, %v7396_v42 }
 0x2e8   : > { %v2852_v40 = vmul.f32 %v2821_v63, %v2820_v37  ;;  %v2823_v55 = vadd.f32 %v3474_v6, %v7046_v22  ;;  %v2655_v14 = vmul.f32 %v8831_v60, %v8974_v34  ;;  %v2656_v16 = vmul.f32 %v8954_v32, %v8975_v30 }
 0x2e9   : > { %v2612_v54 = vadd.f32 %v2580_v24, %v2537_v31  ;;  %v2613_v48 = vadd.f32 %v2581_v44, %v2538_v17  ;;  %v2730_v0 = vmul.f32 %v8955_v62, %v2102_v1  ;;  %v2731_v51 = vmul.f32 %v8956_v36, %v2103_v27 }
 0x2ea   : > { %3279 = vmatprep.mubr.f32.mxu1 %v2852_v40  ;;  %v2853_v33 = vmul.f32 %v2823_v55, %v2822_v3  ;;  %v8996_v25 = vrot.slane %v8988_v46, 7  ;;  %v8997_v50 = vrot.slane %v8974_v34, 7  ;;  %v2024_v38 = vrot.slane %v8998_v2, 1 }
 0x2eb   : > { %v2025_v37 = vrot.slane %v8999_v35, 1  ;;  %v2687_v58 = vadd.f32 %v2655_v14, %v2612_v54  ;;  %v2688_v63 = vadd.f32 %v2656_v16, %v2613_v48  ;;  %v2432_v27 = vmul.f32 %v6752_v52, %v7336_v26  ;;  %v9002_v16 = vld [vmem:[#allocation80_spill] sm:$0xff] }
 0x2ec   : > { %v1948_v22 = vsel %vm636_vm0, %v8997_v50, %v8996_v25  ;;  %3280 = vmatmul.mubr.f32.vlgmr.msra.gmra.mxu1 %v2853_v33  ;;  %v9000_v31 = vrot.slane %v8988_v46, 1  ;;  %v9001_v6 = vrot.slane %v8990_v10, 1  ;;  %v2433_v44 = vmul.f32 %v6994_v13, %v7341_v59  ;;  %v9003_v50 = vld [vmem:[#allocation68_spill] sm:$0xff] }
 0x2ed   : > { %v7464_v1 = vsel %vm687_vm2, %v1948_v22, 0.0  ;;  %v2762_v40 = vadd.f32 %v2730_v0, %v2687_v58  ;;  %v2763_v55 = vadd.f32 %v2731_v51, %v2688_v63  ;;  %v2464_v48 = vadd.f32 %v2432_v27, %v7256_v49  ;;  %v9004_v58 = vld [vmem:[#allocation164_spill] sm:$0xff] }
 0x2ee   : > { %v2070_v17 = vsel %vm793_vm1, %v9000_v31, %v2024_v38  ;;  %v2071_v3 = vsel %vm793_vm1, %v9001_v6, %v2025_v37  ;;  %v2215_v24 = vmul.f32 %v8977_v11, %v7464_v1  ;;  %v2465_v33 = vadd.f32 %v2433_v44, %v7258_v8  ;;  %v9005_v6 = vld [vmem:[#allocation34_spill] sm:$0xff] }
 0x2ef   : > { %v2365_v26 = vmul.f32 %v7229_v20, %v2070_v17  ;;  %v2366_v14 = vmul.f32 %v6990_v61, %v2071_v3  ;;  %v7486_v25 = vmul.f32 %v8947_v4, %v2070_v17  ;;  %3479 = vtanh.f32 %v2762_v40 }
 0x2f0   : > { %v2247_v54 = vadd.f32 %v2215_v24, %v9002_v16  ;;  %v7492_v59 = vmul.f32 %v8948_v21, %v2071_v3  ;;  %v2582_v0 = vmul.f32 %v8949_v15, %v7464_v1  ;;  %v3476_v51 = vpop.eup %3475  ;;  %3481 = vtanh.f32 %v2763_v55 }
 0x2f1   : > { %v7489_v22 = vadd.f32 %v2366_v14, %v9003_v50  ;;  %v2539_v49 = vadd.f32 %v7358_v43, %v2464_v48  ;;  %v2540_v8 = vadd.f32 %v7364_v7, %v2465_v33  ;;  %v3478_v27 = vpop.eup %3477  ;;  %v2824_v31 = vadd.f32 %v3476_v51, %v8925_v47  ;;  %v9006_v47 = vld [vmem:[#allocation57_spill] sm:$0xff] }
 0x2f2   : > { %v2322_v63 = vadd.f32 %v9004_v58, %v2247_v54  ;;  %v2583_v24 = vmul.f32 %v8950_v23, %v9005_v6  ;;  %v2657_v44 = vmul.f32 %v8831_v60, %v8988_v46  ;;  %v2658_v40 = vmul.f32 %v8954_v32, %v8990_v10  ;;  %v9008_v50 = vld [vmem:[#allocation97_spill] sm:$0xff] }
 0x2f3   : > { %v2825_v55 = vadd.f32 %v3478_v27, %v8953_v45  ;;  %v2614_v16 = vadd.f32 %v2582_v0, %v2539_v49  ;;  %v2732_v43 = vmul.f32 %v8955_v62, %v2070_v17  ;;  %v2733_v54 = vmul.f32 %v8956_v36, %v2071_v3  ;;  %v9010_v3 = vld [vmem:[#allocation113_spill] sm:$0xff]  ;;  %v9013_v27 = vld [vmem:[#allocation144_spill] sm:$0xff] }
 0x2f4   : > { %v7507_v14 = vadd.f32 %v2365_v26, %v2322_v63  ;;  %v2615_v7 = vadd.f32 %v2583_v24, %v2540_v8  ;;  %v9007_v48 = vrot.slane %v9006_v47, 1  ;;  %v9009_v51 = vrot.slane %v9008_v50, 1  ;;  %v9011_v63 = vld [vmem:[#allocation92_spill] sm:$0xff] }
 0x2f5   : > { %v2854_v10 = vmul.f32 %v2825_v55, %v2824_v31  ;;  %v2689_v45 = vadd.f32 %v2657_v44, %v2614_v16  ;;  %v2316_v49 = vadd.f32 %v9011_v63, %v9010_v3  ;;  %v9012_v8 = vld [vmem:[#allocation28_spill] sm:$0xff]  ;;  %v2359_v24 = vmul.f32 %v7229_v20, %v7310_v53 }
 0x2f6   : > { %v2068_v33 = vsel %vm793_vm1, %v2024_v38, %v9007_v48  ;;  %v2069_v58 = vsel %vm793_vm1, %v2025_v37, %v9009_v51  ;;  %v2690_v0 = vadd.f32 %v2658_v40, %v2615_v7  ;;  %v2317_v38 = vadd.f32 %v9013_v27, %v9012_v8  ;;  %v9014_v53 = vld [vmem:[#allocation64_spill] sm:$0xff] }
 0x2f7   : > { %v2106_v26 = vsel %vm847_vm3, %v2068_v33, 0.0  ;;  %v2107_v17 = vsel %vm847_vm3, %v2069_v58, 0.0  ;;  %3282 = vmatprep.mubr.f32.mxu1 %v2854_v10  ;;  %v2764_v37 = vadd.f32 %v2732_v43, %v2689_v45  ;;  %v2360_v31 = vmul.f32 %v6990_v61, %v7314_v39  ;;  %v9015_v43 = vld [vmem:[#allocation85_spill] sm:$0xff]  ;;  %v9016_v45 = vld [vmem:[#allocation38_spill] sm:$0xff] }
 0x2f8   : > { %v2367_v44 = vmul.f32 %v7229_v20, %v2106_v26  ;;  %v2368_v55 = vmul.f32 %v6990_v61, %v2107_v17  ;;  %v2765_v16 = vadd.f32 %v2733_v54, %v2690_v0  ;;  %v2391_v40 = vadd.f32 %v2359_v24, %v2316_v49  ;;  %v9017_v0 = vld [vmem:[#allocation94_spill] sm:$0xff] }
 0x2f9   : > { %v2434_v7 = vmul.f32 %v6752_v52, %v7388_v12  ;;  %v2435_v48 = vmul.f32 %v6994_v13, %v7396_v42  ;;  %3483 = vtanh.f32 %v2764_v37  ;;  %v2392_v33 = vadd.f32 %v2360_v31, %v2317_v38 }
 0x2fa   : > { %v7538_v10 = vadd.f32 %v2367_v44, %v9014_v53  ;;  %v7541_v51 = vadd.f32 %v2368_v55, %v9015_v43  ;;  %3485 = vtanh.f32 %v2765_v16  ;;  %v7544_v58 = vmul.f32 %v8947_v4, %v2106_v26  ;;  %v9020_v16 = vld [vmem:[#allocation74_spill] sm:$0xff] }
 0x2fb   : > { %v2466_v39 = vadd.f32 %v2434_v7, %v2391_v40  ;;  %v7547_v54 = vmul.f32 %v8948_v21, %v2107_v17  ;;  %v2467_v12 = vadd.f32 %v2435_v48, %v2392_v33  ;;  %v2584_v42 = vmul.f32 %v8949_v15, %v9016_v45 }
 0x2fc   : > { %v2585_v3 = vmul.f32 %v8950_v23, %v9017_v0  ;;  %v2659_v63 = vmul.f32 %v8831_v60, %v8998_v2  ;;  %v2660_v8 = vmul.f32 %v8954_v32, %v8999_v35  ;;  %v2734_v27 = vmul.f32 %v8955_v62, %v2106_v26  ;;  %v3480_v24 = vpop.eup %3479  ;;  %v9023_v26 = vld [vmem:[#allocation81_spill] sm:$0xff]  ;;  %v9026_v0 = vld [vmem:[#allocation107_spill] sm:$0xff] }
 0x2fd   : > { %v2541_v49 = vadd.f32 %v7432_v18, %v2466_v39  ;;  %v2735_v38 = vmul.f32 %v8956_v36, %v2107_v17  ;;  %v2542_v37 = vadd.f32 %v7435_v28, %v2467_v12  ;;  %v9018_v31 = vrot.slane %v9006_v47, 7  ;;  %v3482_v33 = vpop.eup %3481 }
 0x2fe   : > { %v9019_v44 = vrot.slane %v8998_v2, 7  ;;  %v9021_v40 = vrot.slane %v9020_v16, 1  ;;  %v9022_v18 = vrot.slane %v9006_v47, 1  ;;  %v9024_v48 = vrot.slane %v9023_v26, 1  ;;  %v9030_v2 = vld [vmem:[#allocation79_spill] sm:$0xff] }
 0x2ff   : > { %v9025_v17 = vrot.slane %v9008_v50, 1  ;;  %v2826_v53 = vadd.f32 %v3480_v24, %v8959_v5  ;;  %v2616_v43 = vadd.f32 %v2584_v42, %v2541_v49  ;;  %v2437_v5 = vmul.f32 %v6994_v13, %v9005_v6 }
 0x300   : > { %v1944_v55 = vsel %vm636_vm0, %v9019_v44, %v9018_v31  ;;  %v2066_v7 = vsel %vm793_vm1, %v9022_v18, %v9021_v40  ;;  %v2827_v31 = vadd.f32 %v3482_v33, %v9026_v0  ;;  %v2617_v44 = vadd.f32 %v2585_v3, %v2542_v37  ;;  %v9028_v3 = vld [vmem:[#allocation69_spill] sm:$0xff] }
 0x301   : > { %v2067_v28 = vsel %vm793_vm1, %v9025_v17, %v9024_v48  ;;  %v7582_v39 = vsel %vm687_vm2, %v1944_v55, 0.0  ;;  %v2369_v12 = vmul.f32 %v7229_v20, %v2066_v7  ;;  %v2691_v26 = vadd.f32 %v2659_v63, %v2616_v43  ;;  %v9027_v55 = vld [vmem:[#allocation52_spill] sm:$0xff]  ;;  %v9029_v63 = vld [vmem:[#allocation70_spill] sm:$0xff] }
 0x302   : > { %v2219_v40 = vmul.f32 %v8977_v11, %v7582_v39  ;;  %v2370_v18 = vmul.f32 %v6990_v61, %v2067_v28  ;;  %v2436_v48 = vmul.f32 %v6752_v52, %v7464_v1  ;;  %v7594_v42 = vmul.f32 %v8947_v4, %v2066_v7 }
 0x303   : > { %v2855_v49 = vmul.f32 %v2827_v31, %v2826_v53  ;;  %v2692_v24 = vadd.f32 %v2660_v8, %v2617_v44  ;;  %v2766_v33 = vadd.f32 %v2734_v27, %v2691_v26  ;;  %v2469_v43 = vadd.f32 %v2437_v5, %v9029_v63  ;;  %v9031_v53 = vld [vmem:[#allocation25_spill] sm:$0xff] }
 0x304   : > { %v2251_v17 = vadd.f32 %v2219_v40, %v9027_v55  ;;  %v7598_v37 = vadd.f32 %v2370_v18, %v9028_v3  ;;  %v2468_v0 = vadd.f32 %v2436_v48, %v7378_v41  ;;  %v7603_v1 = vmul.f32 %v8948_v21, %v2067_v28  ;;  %v9035_v3 = vld [vmem:[#allocation78_spill] sm:$0xff] }
 0x305   : > { %3283 = vmatmul.mubr.f32.gmra.mxu1 %v2855_v49  ;;  %v2767_v6 = vadd.f32 %v2735_v38, %v2692_v24  ;;  %v2586_v8 = vmul.f32 %v8949_v15, %v7582_v39  ;;  %v2587_v31 = vmul.f32 %v8950_v23, %v9031_v53  ;;  %3487 = vtanh.f32 %v2766_v33  ;;  %v9032_v49 = vld [vmem:[#allocation51_spill] sm:$0xff] }
 0x306   : > { %v2326_v35 = vadd.f32 %v9030_v2, %v2251_v17  ;;  %v2543_v27 = vadd.f32 %v7486_v25, %v2468_v0  ;;  %v2544_v41 = vadd.f32 %v7492_v59, %v2469_v43  ;;  %v2661_v26 = vmul.f32 %v8831_v60, %v9006_v47  ;;  %v3484_v40 = vpop.eup %3483  ;;  %v9033_v59 = vld [vmem:[#allocation147_spill] sm:$0xff] }
 0x307   : > { %3489 = vtanh.f32 %v2767_v6  ;;  %v2662_v2 = vmul.f32 %v8954_v32, %v9008_v50  ;;  %v2736_v38 = vmul.f32 %v8955_v62, %v2066_v7  ;;  %v2737_v5 = vmul.f32 %v8956_v36, %v2067_v28  ;;  %v3486_v24 = vpop.eup %3485  ;;  %v9036_v7 = vld [vmem:[#allocation152_spill] sm:$0xff] }
 0x308   : > { %v7614_v44 = vadd.f32 %v2369_v12, %v2326_v35  ;;  %v2618_v18 = vadd.f32 %v2586_v8, %v2543_v27  ;;  %v2619_v48 = vadd.f32 %v2587_v31, %v2544_v41  ;;  %v2030_v25 = vrot.slane %v9032_v49, 1  ;;  %v9034_v35 = vld [vmem:[#allocation89_spill] sm:$0xff] }
 0x309   : > { %v2828_v55 = vadd.f32 %v3484_v40, %v9033_v59  ;;  %v2438_v17 = vmul.f32 %v6752_v52, %v9016_v45  ;;  %v2471_v12 = vadd.f32 %v9034_v35, %v7441_v9  ;;  %v2588_v33 = vmul.f32 %v8949_v15, %v9035_v3  ;;  %v9038_v9 = vld [vmem:[#allocation49_spill] sm:$0xff]  ;;  %v9044_v3 = vld [vmem:[#allocation62_spill] sm:$0xff] }
 0x30a   : > { %v2829_v0 = vadd.f32 %v3486_v24, %v9036_v7  ;;  %v2693_v63 = vadd.f32 %v2661_v26, %v2618_v18  ;;  %v2694_v43 = vadd.f32 %v2662_v2, %v2619_v48  ;;  %v9037_v28 = vrot.slane %v9020_v16, 1 }
 0x30b   : > { %v2470_v45 = vadd.f32 %v2438_v17, %v7438_v56  ;;  %v2546_v31 = vadd.f32 %v7547_v54, %v2471_v12  ;;  %v2589_v27 = vmul.f32 %v8950_v23, %v9038_v9  ;;  %v9039_v56 = vld [vmem:[#allocation58_spill] sm:$0xff]  ;;  %v9041_v17 = vld [vmem:[#allocation161_spill] sm:$0xff]  ;;  %v9043_v12 = vld [vmem:[#allocation88_spill] sm:$0xff]  ;;  %v2032_v7 = vrot.slane %v9044_v3, 1 }
 0x30c   : > { %v2064_v6 = vsel %vm793_vm1, %v9037_v28, %v2030_v25  ;;  %v2856_v41 = vmul.f32 %v2829_v0, %v2828_v55  ;;  %v2768_v40 = vadd.f32 %v2736_v38, %v2693_v63  ;;  %v2769_v24 = vadd.f32 %v2737_v5, %v2694_v43  ;;  %v9042_v38 = vld [vmem:[#allocation95_spill] sm:$0xff]  ;;  %v9045_v0 = vld [vmem:[#allocation128_spill] sm:$0xff]  ;;  %v9047_v28 = vld [vmem:[#allocation33_spill] sm:$0xff] }
 0x30d   : > { %v2110_v8 = vsel %vm847_vm3, %v2064_v6, 0.0  ;;  %v2545_v18 = vadd.f32 %v7544_v58, %v2470_v45  ;;  %v2621_v48 = vadd.f32 %v2589_v27, %v2546_v31  ;;  %v2739_v55 = vmul.f32 %v8956_v36, %v9041_v17  ;;  %v9046_v43 = vld [vmem:[#allocation63_spill] sm:$0xff]  ;;  %v9049_v9 = vld [vmem:[#allocation126_spill] sm:$0xff] }
 0x30e   : > { %v2371_v26 = vmul.f32 %v7229_v20, %v2110_v8  ;;  %v7641_v2 = vmul.f32 %v8947_v4, %v2110_v8  ;;  %v2738_v59 = vmul.f32 %v8955_v62, %v2110_v8  ;;  %3285 = vmatprep.mubr.f32.mxu1 %v2856_v41  ;;  %3491 = vtanh.f32 %v2768_v40  ;;  %v9048_v45 = vld [vmem:[#allocation31_spill] sm:$0xff]  ;;  %v9050_v40 = vld [vmem:[#allocation65_spill] sm:$0xff] }
 0x30f   : > { %v7653_v5 = vsel %vm687_vm2, %v9042_v38, 0.0  ;;  %3493 = vtanh.f32 %v2769_v24  ;;  %v2620_v35 = vadd.f32 %v2588_v33, %v2545_v18  ;;  %v2696_v58 = vadd.f32 %v9043_v12, %v2621_v48  ;;  %v9051_v24 = vld [vmem:[#allocation148_spill] sm:$0xff]  ;;  %v9052_v18 = vld [vmem:[#allocation111_spill] sm:$0xff] }
 0x310   : > { %v7646_v54 = vadd.f32 %v2371_v26, %v9039_v56  ;;  %v2033_v63 = vrot.slane %v9045_v0, 1  ;;  %v2180_v6 = vmul.f32 %v9047_v28, %v9046_v43  ;;  %v2223_v8 = vmul.f32 %v8977_v11, %v7653_v5 }
 0x311   : > { %v2298_v31 = vmul.f32 %v9048_v45, %v9032_v49  ;;  %v2695_v27 = vadd.f32 %v9049_v9, %v2620_v35  ;;  %v2771_v41 = vadd.f32 %v2739_v55, %v2696_v58  ;;  %v2062_v33 = vsel %vm793_vm1, %v2030_v25, %v2032_v7 }
 0x312   : > { %9040 = vst [vmem:[#allocation87_spill] sm:$0xff] %v7646_v54  ;;  %v2331_v26 = vadd.f32 %v9051_v24, %v9050_v40  ;;  %v9053_v48 = vrot.slane %v9052_v18, 1  ;;  %v2255_v38 = vadd.f32 %v2223_v8, %v2180_v6  ;;  %v2373_v12 = vmul.f32 %v7229_v20, %v2062_v33  ;;  %v3488_v54 = vpop.eup %3487 }
 0x313   : > { %v2440_v16 = vmul.f32 %v6752_v52, %v7582_v39  ;;  %v2770_v35 = vadd.f32 %v2738_v59, %v2695_v27  ;;  %3495 = vtanh.f32 %v2771_v41  ;;  %v2441_v25 = vmul.f32 %v6994_v13, %v9031_v53 }
 0x314   : > { %v2063_v56 = vsel %vm793_vm1, %v9053_v48, %v2033_v63  ;;  %v3490_v58 = vpop.eup %3489  ;;  %v2830_v9 = vadd.f32 %v3488_v54, %v8974_v34  ;;  %v2330_v40 = vadd.f32 %v2298_v31, %v2255_v38  ;;  %v7682_v6 = vmul.f32 %v8947_v4, %v2062_v33  ;;  %v9054_v31 = vld [vmem:[#allocation83_spill] sm:$0xff] }
 0x315   : > { %v2374_v55 = vmul.f32 %v6990_v61, %v2063_v56  ;;  %v2472_v24 = vadd.f32 %v2440_v16, %v7507_v14  ;;  %v2831_v8 = vadd.f32 %v3490_v58, %v8975_v30  ;;  %3497 = vtanh.f32 %v2770_v35  ;;  %v9055_v35 = vld [vmem:[#allocation109_spill] sm:$0xff] }
 0x316   : > { %v2473_v59 = vadd.f32 %v2441_v25, %v7489_v22  ;;  %v7688_v27 = vadd.f32 %v2373_v12, %v2330_v40  ;;  %v7691_v53 = vmul.f32 %v8948_v21, %v2063_v56  ;;  %v2590_v14 = vmul.f32 %v8949_v15, %v7653_v5  ;;  %v9057_v40 = vld [vmem:[#allocation162_spill] sm:$0xff] }
 0x317   : > { %v7685_v39 = vadd.f32 %v2374_v55, %v2331_v26  ;;  %v2547_v34 = vadd.f32 %v7594_v42, %v2472_v24  ;;  %v2857_v16 = vmul.f32 %v2831_v8, %v2830_v9  ;;  %v2591_v30 = vmul.f32 %v8950_v23, %v9054_v31  ;;  %v9056_v9 = vld [vmem:[#allocation55_spill] sm:$0xff]  ;;  %v9058_v8 = vld [vmem:[#allocation116_spill] sm:$0xff] }
 0x318   : > { %v2548_v54 = vadd.f32 %v7603_v1, %v2473_v59  ;;  %v2665_v41 = vmul.f32 %v8831_v60, %v9032_v49  ;;  %v2666_v26 = vmul.f32 %v8954_v32, %v9052_v18  ;;  %v2740_v48 = vmul.f32 %v8955_v62, %v2062_v33 }
 0x319   : > { %v2622_v22 = vadd.f32 %v2590_v14, %v2547_v34  ;;  %v2741_v42 = vmul.f32 %v8956_v36, %v2063_v56  ;;  %3286 = vmatmul.mubr.f32.gmra.mxu1 %v2857_v16  ;;  %v1912_v12 = vrot.slane %v9044_v3, 7  ;;  %v2034_v1 = vrot.slane %v9046_v43, 1 }
 0x31a   : > { %v2623_v38 = vadd.f32 %v2591_v30, %v2548_v54  ;;  %v2035_v55 = vrot.slane %v9055_v35, 1  ;;  %v2300_v58 = vmul.f32 %v9048_v45, %v9044_v3  ;;  %v2333_v24 = vadd.f32 %v9057_v40, %v9056_v9 }
 0x31b   : > { %v2697_v25 = vadd.f32 %v2665_v41, %v2622_v22  ;;  %v2474_v33 = vadd.f32 %v9058_v8, %v7538_v10  ;;  %v3492_v59 = vpop.eup %3491  ;;  %v9059_v34 = vrot.slane %v9032_v49, 7  ;;  %v2060_v16 = vsel %vm793_vm1, %v2032_v7, %v2034_v1 }
 0x31c   : > { %v2698_v56 = vadd.f32 %v2666_v26, %v2623_v38  ;;  %v2061_v54 = vsel %vm793_vm1, %v2033_v63, %v2035_v55  ;;  %v3494_v31 = vpop.eup %3493  ;;  %v2832_v30 = vadd.f32 %v3492_v59, %v8988_v46  ;;  %v2114_v10 = vsel %vm847_vm3, %v2060_v16, 0.0  ;;  %v9060_v26 = vld [vmem:[#allocation146_spill] sm:$0xff]  ;;  %v9062_v59 = vld [vmem:[#allocation61_spill] sm:$0xff] }
 0x31d   : > { %v7718_v14 = vsel %vm636_vm0, %v9059_v34, %v1912_v12  ;;  %v2772_v41 = vadd.f32 %v2740_v48, %v2697_v25  ;;  %v2115_v22 = vsel %vm847_vm3, %v2061_v54, 0.0  ;;  %v2833_v38 = vadd.f32 %v3494_v31, %v9060_v26  ;;  %v9061_v46 = vld [vmem:[#allocation26_spill] sm:$0xff] }
 0x31e   : > { %v2773_v9 = vadd.f32 %v2741_v42, %v2698_v56  ;;  %v2225_v40 = vmul.f32 %v8977_v11, %v7718_v14  ;;  %v2375_v7 = vmul.f32 %v7229_v20, %v2114_v10  ;;  %v2376_v63 = vmul.f32 %v6990_v61, %v2115_v22 }
 0x31f   : > { %3499 = vtanh.f32 %v2772_v41  ;;  %v2475_v48 = vadd.f32 %v9061_v46, %v7541_v51  ;;  %v2518_v25 = vmul.f32 %v8948_v21, %v9041_v17  ;;  %v2858_v8 = vmul.f32 %v2833_v38, %v2832_v30  ;;  %v9064_v51 = vld [vmem:[#allocation153_spill] sm:$0xff]  ;;  %v9065_v38 = vld [vmem:[#allocation66_spill] sm:$0xff] }
 0x320   : > { %3501 = vtanh.f32 %v2773_v9  ;;  %v2257_v34 = vadd.f32 %v2225_v40, %v9062_v59  ;;  %v7740_v42 = vmul.f32 %v8947_v4, %v2114_v10  ;;  %v3496_v56 = vpop.eup %3495  ;;  %v7742_v16 = vadd.f32 %v2376_v63, %v2333_v24  ;;  %v9066_v46 = vld [vmem:[#allocation50_spill] sm:$0xff] }
 0x321   : > { %v7745_v54 = vmul.f32 %v8948_v21, %v2115_v22  ;;  %v2549_v31 = vadd.f32 %v7641_v2, %v2474_v33  ;;  %v2550_v41 = vadd.f32 %v2518_v25, %v2475_v48  ;;  %3288 = vmatprep.mubr.f32.mxu1 %v2858_v8  ;;  %v2835_v26 = vadd.f32 %v3496_v56, %v9064_v51  ;;  %v9068_v56 = vld [vmem:[#allocation60_spill] sm:$0xff] }
 0x322   : > { %9063 = vst [vmem:[#allocation100_spill] sm:$0xff] %v7742_v16  ;;  %v2332_v17 = vadd.f32 %v2300_v58, %v2257_v34  ;;  %v2592_v30 = vmul.f32 %v8949_v15, %v7718_v14  ;;  %v2593_v9 = vmul.f32 %v8950_v23, %v9065_v38  ;;  %v3498_v40 = vpop.eup %3497  ;;  %v2667_v24 = vmul.f32 %v8831_v60, %v9044_v3  ;;  %v9069_v38 = vld [vmem:[#allocation135_spill] sm:$0xff] }
 0x323   : > { %v2668_v63 = vmul.f32 %v8954_v32, %v9045_v0  ;;  %v2742_v2 = vmul.f32 %v8955_v62, %v2114_v10  ;;  %v2743_v33 = vmul.f32 %v8956_v36, %v2115_v22  ;;  %v2834_v48 = vadd.f32 %v3498_v40, %v9066_v46  ;;  %v9070_v10 = vld [vmem:[#allocation77_spill] sm:$0xff]  ;;  %v9074_v46 = vld [vmem:[#allocation158_spill] sm:$0xff] }
 0x324   : > { %v7760_v58 = vadd.f32 %v2375_v7, %v2332_v17  ;;  %v2624_v25 = vadd.f32 %v2592_v30, %v2549_v31  ;;  %v2625_v8 = vadd.f32 %v2593_v9, %v2550_v41  ;;  %v1914_v59 = vrot.slane %v9046_v43, 7  ;;  %v9072_v40 = vld [vmem:[#allocation21_spill] sm:$0xff] }
 0x325   : > { %v1915_v34 = vrot.slane %v9055_v35, 7  ;;  %v2036_v51 = vrot.slane %v9068_v56, 1  ;;  %v8303_v3 = vrot.slane %v9069_v38, 1  ;;  %v2859_v16 = vmul.f32 %v2835_v26, %v2834_v48 }
 0x326   : > { %9067 = vst [vmem:[#allocation84_spill] sm:$0xff] %v7760_v58  ;;  %v2699_v49 = vadd.f32 %v2667_v24, %v2624_v25  ;;  %v2700_v18 = vadd.f32 %v2668_v63, %v2625_v8  ;;  %v2184_v22 = vmul.f32 %v9047_v28, %v9070_v10  ;;  %v1936_v7 = vsel %vm636_vm0, %v1912_v12, %v1914_v59  ;;  %v9073_v24 = vld [vmem:[#allocation36_spill] sm:$0xff] }
 0x327   : > { %v9071_v31 = vrot.slane %v9045_v0, 7  ;;  %v2058_v17 = vsel %vm793_vm1, %v2034_v1, %v2036_v51  ;;  %v2059_v26 = vsel %vm793_vm1, %v2035_v55, %v8303_v3  ;;  %3289 = vmatmul.mubr.f32.gmra.mxu1 %v2859_v16  ;;  %v7782_v28 = vsel %vm687_vm2, %v1936_v7, 0.0 }
 0x328   : > { %v2774_v30 = vadd.f32 %v2742_v2, %v2699_v49  ;;  %v2775_v9 = vadd.f32 %v2743_v33, %v2700_v18  ;;  %v2185_v63 = vmul.f32 %v9073_v24, %v9072_v40  ;;  %v2227_v1 = vmul.f32 %v8977_v11, %v7782_v28  ;;  %v9075_v18 = vld [vmem:[#allocation35_spill] sm:$0xff] }
 0x329   : > { %v1937_v41 = vsel %vm636_vm0, %v9071_v31, %v1915_v34  ;;  %v2302_v49 = vmul.f32 %v9048_v45, %v9046_v43  ;;  %v2303_v16 = vmul.f32 %v9075_v18, %v9055_v35  ;;  %v2377_v2 = vmul.f32 %v7229_v20, %v2058_v17  ;;  %v9076_v31 = vld [vmem:[#allocation29_spill] sm:$0xff] }
 0x32a   : > { %v7786_v12 = vsel %vm687_vm2, %v1937_v41, 0.0  ;;  %3503 = vtanh.f32 %v2774_v30  ;;  %v2378_v33 = vmul.f32 %v6990_v61, %v2059_v26  ;;  %v2259_v48 = vadd.f32 %v2227_v1, %v2184_v22 }
 0x32b   : > { %v2228_v55 = vmul.f32 %v9074_v46, %v7786_v12  ;;  %3505 = vtanh.f32 %v2775_v9  ;;  %v2444_v8 = vmul.f32 %v6752_v52, %v7653_v5  ;;  %v2477_v41 = vadd.f32 %v9076_v31, %v7598_v37 }
 0x32c   : > { %v3500_v7 = vpop.eup %3499  ;;  %v7805_v24 = vmul.f32 %v8947_v4, %v2058_v17  ;;  %v7808_v30 = vmul.f32 %v8948_v21, %v2059_v26  ;;  %v2594_v18 = vmul.f32 %v8949_v15, %v7782_v28  ;;  %v2334_v9 = vadd.f32 %v2302_v49, %v2259_v48 }
 0x32d   : > { %v2260_v25 = vadd.f32 %v2228_v55, %v2185_v63  ;;  %v3502_v3 = vpop.eup %3501  ;;  %v2836_v22 = vadd.f32 %v3500_v7, %v9006_v47  ;;  %v2476_v5 = vadd.f32 %v2444_v8, %v7614_v44  ;;  %v2552_v37 = vadd.f32 %v7691_v53, %v2477_v41 }
 0x32e   : > { %v2837_v1 = vadd.f32 %v3502_v3, %v9008_v50  ;;  %v2595_v55 = vmul.f32 %v8950_v23, %v7786_v12  ;;  %v2669_v31 = vmul.f32 %v8831_v60, %v9046_v43  ;;  %v7820_v0 = vadd.f32 %v2377_v2, %v2334_v9 }
 0x32f   : > { %v2335_v63 = vadd.f32 %v2303_v16, %v2260_v25  ;;  %v2551_v47 = vadd.f32 %v7682_v6, %v2476_v5  ;;  %v2670_v49 = vmul.f32 %v8954_v32, %v9055_v35  ;;  %v2744_v50 = vmul.f32 %v8955_v62, %v2058_v17 }
 0x330   : > { %v2860_v44 = vmul.f32 %v2837_v1, %v2836_v22  ;;  %v2627_v16 = vadd.f32 %v2595_v55, %v2552_v37  ;;  %v2745_v3 = vmul.f32 %v8956_v36, %v2059_v26  ;;  %v1916_v48 = vrot.slane %v9068_v56, 7  ;;  %v9080_v37 = vld [vmem:[#allocation140_spill] sm:$0xff] }
 0x331   : > { %v7822_v58 = vadd.f32 %v2378_v33, %v2335_v63  ;;  %v2626_v53 = vadd.f32 %v2594_v18, %v2551_v47  ;;  %v9077_v25 = vrot.slane %v9069_v38, 7  ;;  %v2038_v6 = vrot.slane %v9070_v10, 1  ;;  %v9081_v47 = vld [vmem:[#allocation87_spill] sm:$0xff] }
 0x332   : > { %3291 = vmatprep.mubr.f32.mxu1 %v2860_v44  ;;  %v2702_v33 = vadd.f32 %v2670_v49, %v2627_v16  ;;  %v2039_v8 = vrot.slane %v9072_v40, 1  ;;  %v2304_v26 = vmul.f32 %v9048_v45, %v9068_v56  ;;  %v7844_v41 = vsel %vm636_vm0, %v1914_v59, %v1916_v48  ;;  %v9082_v16 = vld [vmem:[#allocation27_spill] sm:$0xff] }
 0x333   : > { %v7834_v2 = vsel %vm636_vm0, %v1915_v34, %v9077_v25  ;;  %v2701_v7 = vadd.f32 %v2669_v31, %v2626_v53  ;;  %v2056_v34 = vsel %vm793_vm1, %v2036_v51, %v2038_v6  ;;  %v2446_v18 = vmul.f32 %v6752_v52, %v7718_v14  ;;  %v9079_v51 = vld [vmem:[#allocation143_spill] sm:$0xff]  ;;  %v9083_v25 = vld [vmem:[#allocation74_spill] sm:$0xff] }
 0x334   : > { %v2230_v17 = vmul.f32 %v9074_v46, %v7834_v2  ;;  %v2777_v22 = vadd.f32 %v2745_v3, %v2702_v33  ;;  %v9078_v9 = vrot.slane %v9069_v38, 1  ;;  %v2118_v45 = vsel %vm847_vm3, %v2056_v34, 0.0  ;;  %v9085_v34 = vld [vmem:[#allocation81_spill] sm:$0xff] }
 0x335   : > { %v2229_v63 = vmul.f32 %v8977_v11, %v7844_v41  ;;  %v2776_v59 = vadd.f32 %v2744_v50, %v2701_v7  ;;  %v2379_v14 = vmul.f32 %v7229_v20, %v2118_v45  ;;  %v2478_v49 = vadd.f32 %v2446_v18, %v9081_v47  ;;  %v9084_v7 = vld [vmem:[#allocation103_spill] sm:$0xff]  ;;  %v9086_v47 = vld [vmem:[#allocation138_spill] sm:$0xff] }
 0x336   : > { %v2057_v46 = vsel %vm793_vm1, %v9078_v9, %v2039_v8  ;;  %v2262_v1 = vadd.f32 %v2230_v17, %v9079_v51  ;;  %3507 = vtanh.f32 %v2777_v22  ;;  %v7867_v11 = vmul.f32 %v8947_v4, %v2118_v45 }
 0x337   : > { %v2119_v5 = vsel %vm847_vm3, %v2057_v46, 0.0  ;;  %v2261_v55 = vadd.f32 %v2229_v63, %v9080_v37  ;;  %v3504_v44 = vpop.eup %3503  ;;  %3509 = vtanh.f32 %v2776_v59  ;;  %v2553_v17 = vadd.f32 %v7740_v42, %v2478_v49 }
 0x338   : > { %v2380_v31 = vmul.f32 %v6990_v61, %v2119_v5  ;;  %v2337_v3 = vadd.f32 %v9082_v16, %v2262_v1  ;;  %v7870_v50 = vmul.f32 %v8948_v21, %v2119_v5  ;;  %v3506_v53 = vpop.eup %3505  ;;  %v2838_v20 = vadd.f32 %v3504_v44, %v9083_v25  ;;  %v9088_v44 = vld [vmem:[#allocation42_spill] sm:$0xff] }
 0x339   : > { %v2336_v33 = vadd.f32 %v2304_v26, %v2261_v55  ;;  %v2554_v61 = vadd.f32 %v7745_v54, %v9084_v7  ;;  %v2839_v18 = vadd.f32 %v3506_v53, %v9085_v34  ;;  %v2596_v9 = vmul.f32 %v8949_v15, %v7844_v41 }
 0x33a   : > { %v7877_v22 = vadd.f32 %v2380_v31, %v2337_v3  ;;  %v2597_v46 = vmul.f32 %v8950_v23, %v7834_v2  ;;  %v2671_v26 = vmul.f32 %v8831_v60, %v9068_v56  ;;  %v2672_v42 = vmul.f32 %v8954_v32, %v9069_v38 }
 0x33b   : > { %v7883_v63 = vadd.f32 %v2379_v14, %v2336_v33  ;;  %v2746_v54 = vmul.f32 %v8955_v62, %v2118_v45  ;;  %v2861_v59 = vmul.f32 %v2839_v18, %v2838_v20  ;;  %v2628_v51 = vadd.f32 %v2596_v9, %v2553_v17 }
 0x33c   : > { %v2629_v1 = vadd.f32 %v2597_v46, %v2554_v61  ;;  %v2747_v37 = vmul.f32 %v8956_v36, %v2119_v5  ;;  %v1918_v55 = vrot.slane %v9070_v10, 7  ;;  %v1919_v31 = vrot.slane %v9072_v40, 7 }
 0x33d   : > { %v9087_v14 = vrot.slane %v9086_v47, 1  ;;  %v9089_v16 = vrot.slane %v9088_v44, 1  ;;  %3292 = vmatmul.mubr.f32.gmra.mxu1 %v2861_v59  ;;  %v2703_v45 = vadd.f32 %v2671_v26, %v2628_v51  ;;  %v2448_v5 = vmul.f32 %v6752_v52, %v7782_v28 }
 0x33e   : > { %v2704_v53 = vadd.f32 %v2672_v42, %v2629_v1  ;;  %v2449_v25 = vmul.f32 %v6994_v13, %v7786_v12  ;;  %v1932_v20 = vsel %vm636_vm0, %v1916_v48, %v1918_v55  ;;  %v9090_v33 = vrot.slane %v9069_v38, 7 }
 0x33f   : > { %v2054_v49 = vsel %vm793_vm1, %v2038_v6, %v9087_v14  ;;  %v2055_v3 = vsel %vm793_vm1, %v2039_v8, %v9089_v16  ;;  %v2778_v7 = vadd.f32 %v2746_v54, %v2703_v45  ;;  %v1998_v28 = vsel %vm687_vm2, %v1932_v20, 0.0 }
 0x340   : > { %v1933_v6 = vsel %vm636_vm0, %v9090_v33, %v1919_v31  ;;  %v2527_v17 = vmul.f32 %v8947_v4, %v2054_v49  ;;  %v2528_v8 = vmul.f32 %v8948_v21, %v2055_v3  ;;  %v2779_v61 = vadd.f32 %v2747_v37, %v2704_v53  ;;  %v9096_v33 = vld [vmem:[#allocation100_spill] sm:$0xff] }
 0x341   : > { %v1999_v12 = vsel %vm687_vm2, %v1933_v6, 0.0  ;;  %v2452_v34 = vmul.f32 %v6752_v52, %v1998_v28  ;;  %v2480_v18 = vadd.f32 %v2448_v5, %v7688_v27  ;;  %v2481_v9 = vadd.f32 %v2449_v25, %v7685_v39 }
 0x342   : > { %v2453_v48 = vmul.f32 %v6994_v13, %v1999_v12  ;;  %3511 = vtanh.f32 %v2778_v7  ;;  %v2598_v4 = vmul.f32 %v8949_v15, %v1998_v28  ;;  %v2599_v21 = vmul.f32 %v8950_v23, %v1999_v12 }
 0x343   : > { %v2673_v46 = vmul.f32 %v8831_v60, %v9070_v10  ;;  %3513 = vtanh.f32 %v2779_v61  ;;  %v2555_v19 = vadd.f32 %v7805_v24, %v2480_v18  ;;  %v2556_v26 = vadd.f32 %v7808_v30, %v2481_v9  ;;  %v3508_v54 = vpop.eup %3507  ;;  %v9093_v30 = vld [vmem:[#allocation111_spill] sm:$0xff]  ;;  %v9097_v9 = vld [vmem:[#allocation122_spill] sm:$0xff] }
 0x344   : > { %v2674_v42 = vmul.f32 %v8954_v32, %v9072_v40  ;;  %v2748_v27 = vmul.f32 %v8955_v62, %v2054_v49  ;;  %v2749_v39 = vmul.f32 %v8956_v36, %v2055_v3  ;;  %v9091_v59 = vrot.slane %v9086_v47, 7  ;;  %v3510_v1 = vpop.eup %3509  ;;  %v9094_v49 = vld [vmem:[#allocation51_spill] sm:$0xff] }
 0x345   : > { %v9092_v60 = vrot.slane %v9088_v44, 7  ;;  %v2841_v37 = vadd.f32 %v3508_v54, %v9093_v30  ;;  %v2630_v14 = vadd.f32 %v2598_v4, %v2555_v19  ;;  %v2631_v32 = vadd.f32 %v2599_v21, %v2556_v26  ;;  %v9100_v19 = vld [vmem:[#allocation102_spill] sm:$0xff]  ;;  %v9102_v26 = vld [vmem:[#allocation53_spill] sm:$0xff] }
 0x346   : > { %v1930_v51 = vsel %vm636_vm0, %v1918_v55, %v9091_v59  ;;  %v2450_v62 = vmul.f32 %v6752_v52, %v7844_v41  ;;  %v2840_v16 = vadd.f32 %v3510_v1, %v9094_v49  ;;  %v2451_v3 = vmul.f32 %v6994_v13, %v7834_v2  ;;  %v9106_v59 = vld [vmem:[#allocation73_spill] sm:$0xff] }
 0x347   : > { %v1931_v24 = vsel %vm636_vm0, %v1919_v31, %v9092_v60  ;;  %v2454_v55 = vmul.f32 %v6752_v52, %v1930_v51  ;;  %v2705_v53 = vadd.f32 %v2673_v46, %v2630_v14  ;;  %v2706_v29 = vadd.f32 %v2674_v42, %v2631_v32  ;;  %v9095_v31 = vld [vmem:[#allocation84_spill] sm:$0xff]  ;;  %v9103_v42 = vld [vmem:[#allocation82_spill] sm:$0xff]  ;;  %v9107_v60 = vld [vmem:[#allocation41_spill] sm:$0xff] }
 0x348   : > { %v2455_v45 = vmul.f32 %v6994_v13, %v1931_v24  ;;  %v2482_v5 = vadd.f32 %v2450_v62, %v9095_v31  ;;  %v2600_v25 = vmul.f32 %v8949_v15, %v1930_v51  ;;  %v2862_v20 = vmul.f32 %v2841_v37, %v2840_v16  ;;  %v9108_v37 = vld [vmem:[#allocation127_spill] sm:$0xff]  ;;  %v9109_v14 = vld [vmem:[#allocation106_spill] sm:$0xff] }
 0x349   : > { %v2483_v6 = vadd.f32 %v2451_v3, %v9096_v33  ;;  %v2601_v41 = vmul.f32 %v8950_v23, %v1931_v24  ;;  %v2484_v7 = vadd.f32 %v2452_v34, %v7820_v0  ;;  %v2780_v61 = vadd.f32 %v2748_v27, %v2705_v53  ;;  %v9110_v16 = vld [vmem:[#allocation62_spill] sm:$0xff]  ;;  %v9112_v53 = vld [vmem:[#allocation59_spill] sm:$0xff] }
 0x34a   : > { %v2781_v28 = vadd.f32 %v2749_v39, %v2706_v29  ;;  %v2557_v2 = vadd.f32 %v7867_v11, %v2482_v5  ;;  %v2485_v52 = vadd.f32 %v2453_v48, %v7822_v58  ;;  %3294 = vmatprep.mubr.f32.mxu1 %v2862_v20  ;;  %v2486_v18 = vadd.f32 %v2454_v55, %v7883_v63  ;;  %v9098_v11 = vld [vmem:[#allocation40_spill] sm:$0xff]  ;;  %v9105_v39 = vld [vmem:[#allocation125_spill] sm:$0xff]  ;;  %v9111_v55 = vld [vmem:[#allocation86_spill] sm:$0xff] }
 0x34b   : > { %v2558_v13 = vadd.f32 %v7870_v50, %v2483_v6  ;;  %v2559_v12 = vadd.f32 %v2527_v17, %v2484_v7  ;;  %v2487_v15 = vadd.f32 %v2455_v45, %v7877_v22  ;;  %v2127_v4 = vsel %vm847_vm3, %v9097_v9, 0.0  ;;  %v9099_v58 = vld [vmem:[#allocation44_spill] sm:$0xff]  ;;  %v9113_v31 = vld [vmem:[#allocation47_spill] sm:$0xff] }
 0x34c   : > { %3515 = vtanh.f32 %v2780_v61  ;;  %v2632_v0 = vadd.f32 %v2600_v25, %v2557_v2  ;;  %v2560_v34 = vadd.f32 %v2528_v8, %v2485_v52  ;;  %v2561_v48 = vadd.f32 %v9099_v58, %v2486_v18  ;;  %v9101_v17 = vld [vmem:[#allocation112_spill] sm:$0xff]  ;;  %v9115_v6 = vld [vmem:[#allocation67_spill] sm:$0xff] }
 0x34d   : > { %3517 = vtanh.f32 %v2781_v28  ;;  %v2633_v21 = vadd.f32 %v2601_v41, %v2558_v13  ;;  %v2634_v46 = vadd.f32 %v9098_v11, %v2559_v12  ;;  %v2605_v50 = vmul.f32 %v8950_v23, %v9100_v19  ;;  %v9114_v25 = vld [vmem:[#allocation128_spill] sm:$0xff]  ;;  %v9116_v41 = vld [vmem:[#allocation43_spill] sm:$0xff] }
 0x34e   : > { %v2707_v63 = vadd.f32 %v9101_v17, %v2632_v0  ;;  %v2635_v22 = vadd.f32 %v9102_v26, %v2560_v34  ;;  %v2562_v54 = vadd.f32 %v9103_v42, %v2487_v15  ;;  %v2753_v27 = vmul.f32 %v8956_v36, %v9104_v57 }
 0x34f   : > { %v2708_v8 = vadd.f32 %v9105_v39, %v2633_v21  ;;  %v2709_v51 = vadd.f32 %v9106_v59, %v2634_v46  ;;  %v2636_v24 = vadd.f32 %v9107_v60, %v2561_v48  ;;  %v3512_v1 = vpop.eup %3511  ;;  %v2755_v30 = vmul.f32 %v8956_v36, %v2127_v4 }
 0x350   : > { %v2782_v23 = vadd.f32 %v9108_v37, %v2707_v63  ;;  %v2710_v32 = vadd.f32 %v9109_v14, %v2635_v22  ;;  %v2637_v62 = vadd.f32 %v2605_v50, %v2562_v54  ;;  %v3514_v49 = vpop.eup %3513  ;;  %v2842_v3 = vadd.f32 %v3512_v1, %v9110_v16 }
 0x351   : > { %v2783_v45 = vadd.f32 %v9111_v55, %v2708_v8  ;;  %v2784_v29 = vadd.f32 %v9112_v53, %v2709_v51  ;;  %v2711_v5 = vadd.f32 %v9113_v31, %v2636_v24  ;;  %v2843_v20 = vadd.f32 %v3514_v49, %v9114_v25 }
 0x352   : > { %3519 = vtanh.f32 %v2782_v23  ;;  %v2785_v33 = vadd.f32 %v2753_v27, %v2710_v32  ;;  %v2712_v36 = vadd.f32 %v9115_v6, %v2637_v62 }
 0x353   : > { %3521 = vtanh.f32 %v2783_v45  ;;  %v2786_v7 = vadd.f32 %v9116_v41, %v2711_v5  ;;  %v2863_v61 = vmul.f32 %v2843_v20, %v2842_v3 }
 0x354   : > { %3523 = vtanh.f32 %v2784_v29  ;;  %v2787_v28 = vadd.f32 %v2755_v30, %v2712_v36 }
 0x355   : > { %3525 = vtanh.f32 %v2785_v33  ;;  %3295 = vmatmul.mubr.f32.gmra.mxu1 %v2863_v61 }
 0x356   : > { %3527 = vtanh.f32 %v2786_v7 }
 0x357   : > { %3529 = vtanh.f32 %v2787_v28 }
 0x359   : > { %v3516_v2 = vpop.eup %3515 }
 0x35a   : > { %v3518_v52 = vpop.eup %3517  ;;  %v2844_v13 = vadd.f32 %v3516_v2, %v9046_v43 }
 0x35b   : > { %v2845_v12 = vadd.f32 %v3518_v52, %v9055_v35 }
 0x35d   : > { %v2864_v18 = vmul.f32 %v2845_v12, %v2844_v13 }
 0x35f   : > { %v3520_v15 = vpop.eup %3519  ;;  %3297 = vmatprep.mubr.f32.mxu1 %v2864_v18 }
 0x360   : > { %v3522_v9 = vpop.eup %3521  ;;  %v2846_v4 = vadd.f32 %v3520_v15, %v9068_v56 }
 0x361   : > { %v3524_v0 = vpop.eup %3523  ;;  %v2847_v34 = vadd.f32 %v3522_v9, %v9069_v38 }
 0x362   : > { %v3526_v21 = vpop.eup %3525  ;;  %v2848_v11 = vadd.f32 %v3524_v0, %v9070_v10 }
 0x363   : > { %v3528_v46 = vpop.eup %3527  ;;  %v2865_v58 = vmul.f32 %v2847_v34, %v2846_v4  ;;  %v2849_v48 = vadd.f32 %v3526_v21, %v9072_v40 }
 0x364   : > { %v3530_v43 = vpop.eup %3529  ;;  %v2850_v35 = vadd.f32 %v3528_v46, %v9086_v47 }
 0x365   : > { %3298 = vmatmul.mubr.f32.gmra.mxu1 %v2865_v58  ;;  %v2866_v19 = vmul.f32 %v2849_v48, %v2848_v11  ;;  %v2851_v50 = vadd.f32 %v3530_v43, %v9088_v44 }
 0x367   : > { %3300 = vmatprep.mubr.f32.mxu1 %v2866_v19  ;;  %v2867_v56 = vmul.f32 %v2851_v50, %v2850_v35 }
 0x369   : > { %3301 = vmatmul.mubr.f32.gmra.mxu1 %v2867_v56 }
 0x3ac   : > { %v3281_v17 = vpop.f32.mrf.mxu1 }
 0x3ad   : > { %3030 = vst [vmem:[%s7991_s7 + $0x8] sm:$0xff] %v3281_v17 }
 0x3ae   : > { %v2950_v38 = vpop.f32.mrf.mxu1 }
 0x3af   : > { %3029 = vst [vmem:[%s7991_s7] sm:$0xff] %v2950_v38 }
 0x3c5   : > { %v3284_v10 = vpop.f32.mrf.mxu1 }
 0x3c6   : > { %3032 = vst [vmem:[%s7991_s7 + $0x18] sm:$0xff] %v3284_v10 }
 0x3c7   : > { %v2960_v40 = vpop.f32.mrf.mxu1 }
 0x3c8   : > { %3031 = vst [vmem:[%s7991_s7 + $0x10] sm:$0xff] %v2960_v40 }
 0x3d9   : > { %v3287_v47 = vpop.f32.mrf.mxu1 }
 0x3da   : > { %3034 = vst [vmem:[%s7991_s7 + $0x28] sm:$0xff] %v3287_v47 }
 0x3db   : > { %v2970_v44 = vpop.f32.mrf.mxu1 }
 0x3dc   : > { %3033 = vst [vmem:[%s7991_s7 + $0x20] sm:$0xff] %v2970_v44 }
 0x3e7   : > { %v3290_v63 = vpop.f32.mrf.mxu1 }
 0x3e8   : > { %3036 = vst [vmem:[%s7991_s7 + $0x38] sm:$0xff] %v3290_v63 }
 0x3e9   : > { %v2980_v26 = vpop.f32.mrf.mxu1 }
 0x3ea   : > { %3035 = vst [vmem:[%s7991_s7 + $0x30] sm:$0xff] %v2980_v26 }
 0x3fd   : > { %v3293_v22 = vpop.f32.mrf.mxu1 }
 0x3fe   : > { %3038 = vst [vmem:[%s7991_s7 + $0x48] sm:$0xff] %v3293_v22 }
 0x3ff   : > { %v2990_v42 = vpop.f32.mrf.mxu1 }
 0x400   : > { %3037 = vst [vmem:[%s7991_s7 + $0x40] sm:$0xff] %v2990_v42 }
 0x415   : > { %v3296_v54 = vpop.f32.mrf.mxu1 }
 0x416   : > { %3040 = vst [vmem:[%s7991_s7 + $0x58] sm:$0xff] %v3296_v54 }
 0x417   : > { %v3000_v57 = vpop.f32.mrf.mxu1 }
 0x418   : > { %3039 = vst [vmem:[%s7991_s7 + $0x50] sm:$0xff] %v3000_v57 }
 0x425   : > { %v3299_v27 = vpop.f32.mrf.mxu1 }
 0x426   : > { %3042 = vst [vmem:[%s7991_s7 + $0x68] sm:$0xff] %v3299_v27 }
 0x427   : > { %v3010_v39 = vpop.f32.mrf.mxu1 }
 0x428   : > { %3041 = vst [vmem:[%s7991_s7 + $0x60] sm:$0xff] %v3010_v39 }
 0x429   : > { %v3302_v8 = vpop.f32.mrf.mxu1 }
 0x42a   : > { %3044 = vst [vmem:[%s7991_s7 + $0x78] sm:$0xff] %v3302_v8 }
 0x42b   : > { %v3020_v59 = vpop.f32.mrf.mxu1 }
 0x42c   : > { %3043 = vst [vmem:[%s7991_s7 + $0x70] sm:$0xff] %v3020_v59 }
 0x42d   : > { %3678 = shalt.err (!%p3675_p0)
}
 0x42e   : > { %s3679_s18 = scalar_lea.hbm %s8016_s21, 2048  ;;  %s3683_s16 = scalar_lea.hbm %s8075_s5, 8192 }
 0x42f   : > { %p3680_p11 = scmp.ne.s32.totalorder %s8016_s21, %s3679_s18  ;;  %p3684_p3 = scmp.lt.s32.totalorder %s8016_s21, %s8075_s5 }
 0x430   : > { %p3685_p10 = scmp.lt.s32.totalorder %s3683_s16, %s3679_s18 }
 0x431   : > { %p3681_p13 = pnand %p3680_p11, %p3946_p5 }
 0x432   : > { %p3686_p7 = por %p3685_p10, %p3684_p3 }
 0x433   : > { %p3682_p6 = pneg %p3681_p13 }
 0x435   : > { %p3687_p4 = pnand %p3686_p7, %p3682_p6 }
 0x437   : > { %3690 = shalt.err (!%p3687_p4)
}
 0x438   : > { %s3784_s30 = smov 128   ;;  %s3785_s7 = smov 8  }
 0x439   : > { %3357 = dma.vmem_to_hbm [thread:$0]  (%p3946_p5), %s8010_s13, 2048, %s8016_s21, %s3046_s22, %s3784_s30, %s3784_s30, %s3785_s7  }
 0x43a PF: > { %s9117_s15 = sld [smem:[#allocation16_spill]]  ;;  %p3389_p8 = scmp.ge.s32.totalorder %s3769_s25, 2 }
 0x43b   : > { %s9118_s26 = sld [smem:[#allocation17_spill]] }
 0x440   : > { %s3077_s11 = sand.u32 1, %s9117_s15  }
 0x441   : > { %p9119_p9 = scmp.ne.s32.totalorder %s9118_s26, 0  ;;  %s3078_s29 = scalar_lea.sflag [#allocation4], %s3077_s11 }
 0x443   : > { %p3377_p1 = pnand %p3389_p8, %p9119_p9 }
 0x445   : > { %p3378_p2 = pneg %p3377_p1 }
 0x447   : > { %3736 = dma.done.wait (%p3378_p2), %s3078_s29, 2048  }
 0x448   : > { %3738 = vsyncadd (%p3378_p2), %s3078_s29, 4294965248  ;;  %s23_s25 = sadd.s32 1, %s3769_s25   ;;  %s9120_s12 = sld [smem:[#allocation18_spill]] }
 0x449   : > { %p20_p12 = scmp.ge.s32.totalorder %s23_s25, 6   ;;  %s9121_s6 = sld [smem:[#allocation19_spill]] }
 0x44a   : > { %s9122_s18 = smov %s3745_s19  ;;  %s9123_s19 = smov %s3749_s20 }
 0x44b   : > { %s9124_s20 = smov %s3965_s3  ;;  %s9125_s21 = smov %s3761_s23 }
 0x44c   : > { %s9126_s22 = smov %s3765_s24  ;;  %22 = sbr.rel (!%p20_p12) target bundleno = 14 (0xe), region = 117 }
 0x44e   : > { %s9127_s23 = smov %s9120_s12 }
 0x44f   : > { %s9128_s24 = smov %s9121_s6 }
 0x451   :  { %3083 = vsyncpa [#allocation3], 1 }
 0x452   :  { %3085 = vsyncpa [#allocation3 + $0x1], 1 }
 0x453   :  { %3086 = vsyncpa [#allocation6], 1 }
 0x454   :  { %3087 = vsyncpa [#allocation9], 1 }
 0x455   :  { %3088 = vsyncpa [#allocation4], 1 }
 0x456   :  { %3090 = vsyncpa [#allocation4 + $0x1], 1 }

</bundles_post_ra>
